<compile_context>
chip_gen: v5e
topology: v5e:2x2
jax: 0.10.0
libtpu: 0.0.40
codegen_flags: <defaults>
</compile_context>

<pallas_src>
import functools

import numpy as np

import jax
import jax.numpy as jnp
from jax import lax
from jax.experimental import pallas as pl
from jax.experimental.pallas import tpu as pltpu


def _round_up(x, m):
    return (x + m - 1) // m * m


# --------------------------- Pallas row-GEMM kernel --------------------------

def _conv_rows_kernel(a_ref, w_ref, b_ref, o_ref, *, taps, hout):
    """One batch element of a stride-1 conv in row-GEMM form.

    a_ref: (Hp, WCp)       bf16  padded input rows, lanes = (w, cin) flattened
    w_ref: (taps, WCp, Np) bf16  kw-banded weight, one slab per kh tap
    b_ref: (1, Np)         f32   bias tiled over the Wout positions
    o_ref: (hout, Np)      bf16  output rows, lanes = (wout, cout) flattened
    """
    x = a_ref[...]
    acc = jnp.dot(x[0:hout, :], w_ref[0],
                  preferred_element_type=jnp.float32)
    for kh in range(1, taps):              # static unroll (2 or 3 taps)
        acc = acc + jnp.dot(x[kh:kh + hout, :], w_ref[kh],
                            preferred_element_type=jnp.float32)
    o_ref[...] = (acc + b_ref[...]).astype(o_ref.dtype)


def _band_weight(w_conv, Wp, Wout, WCp, Np):
    """(Kh, Kw, Cin, Cout) conv weight -> (Kh, WCp, Np) banded GEMM weight.

    band[kh, (j + kw) * Cin + c, j * Cout + n] = w_conv[kh, kw, c, n]
    """
    Kh, Kw, Cin, Cout = w_conv.shape
    sel = np.zeros((Kw, Wp, Wout), np.float32)      # static 0/1 selector
    for kw in range(Kw):
        for j in range(Wout):
            sel[kw, j + kw, j] = 1.0
    band = jnp.einsum("kaj,hkcn->hacjn", jnp.asarray(sel),
                      w_conv.astype(jnp.float32))
    band = band.reshape(Kh, Wp * Cin, Wout * Cout)
    band = jnp.pad(band, ((0, 0), (0, WCp - Wp * Cin), (0, Np - Wout * Cout)))
    return band.astype(jnp.bfloat16)


def _conv_stride1(x_pad, w_conv, bias):
    """Generic stride-1 'valid' conv of an already padded NHWC input.

    x_pad: (B, Hp, Wp, Cin), w_conv: (Kh, Kw, Cin, Cout), bias: (Cout,)
    Returns (B, Hout, Wout, Cout) bf16 via a single pallas_call, grid=(B,).
    """
    B, Hp, Wp, Cin = x_pad.shape
    Kh, Kw, _, Cout = w_conv.shape
    Hout, Wout = Hp - Kh + 1, Wp - Kw + 1

    WC = Wp * Cin
    WCp = _round_up(WC, 128)        # contraction lanes -> multiple of 128
    Nout = Wout * Cout
    Np = _round_up(Nout, 128)       # output lanes -> multiple of 128

    a = x_pad.reshape(B, Hp, WC).astype(jnp.bfloat16)
    if WCp != WC:
        a = jnp.pad(a, ((0, 0), (0, 0), (0, WCp - WC)))
    w_band = _band_weight(w_conv, Wp, Wout, WCp, Np)
    b_row = jnp.pad(jnp.tile(bias.astype(jnp.float32), Wout),
                    (0, Np - Nout)).reshape(1, Np)

    out = pl.pallas_call(
        functools.partial(_conv_rows_kernel, taps=Kh, hout=Hout),
        out_shape=jax.ShapeDtypeStruct((B, Hout, Np), jnp.bfloat16),
        grid=(B,),
        in_specs=[
            pl.BlockSpec((None, Hp, WCp), lambda b: (b, 0, 0)),
            pl.BlockSpec((Kh, WCp, Np), lambda b: (0, 0, 0)),
            pl.BlockSpec((1, Np), lambda b: (0, 0)),
        ],
        out_specs=pl.BlockSpec((None, Hout, Np), lambda b: (b, 0, 0)),
        compiler_params=pltpu.CompilerParams(
            dimension_semantics=("parallel",)),
    )(a, w_band, b_row)

    if Np != Nout:
        out = out[:, :, :Nout]
    return out.reshape(B, Hout, Wout, Cout)


# ----------------------------- layer wrappers --------------------------------

def conv2d_3x3(x, w_oihw, b):
    """nn.Conv2d(Cin, Cout, 3, padding=1) on NHWC input."""
    xp = jnp.pad(x, ((0, 0), (1, 1), (1, 1), (0, 0)))
    w = jnp.transpose(w_oihw, (2, 3, 1, 0))              # (3, 3, Cin, Cout)
    return _conv_stride1(xp, w, b)


def conv2d_4x4_s2(x, w_oihw, b):
    """nn.Conv2d(Cin, Cout, 4, stride=2, padding=1) via space-to-depth."""
    Cout, Cin = w_oihw.shape[:2]
    B, H, W, _ = x.shape
    xp = jnp.pad(x, ((0, 0), (1, 1), (1, 1), (0, 0)))    # (B, H+2, W+2, Cin)
    Hp, Wp = H + 2, W + 2
    # space-to-depth: channel index = (r*2 + s)*Cin + c  (r/s = row/col parity)
    xd = xp.reshape(B, Hp // 2, 2, Wp // 2, 2, Cin)
    xd = jnp.transpose(xd, (0, 1, 3, 2, 4, 5)).reshape(B, Hp // 2, Wp // 2, 4 * Cin)
    # weight: kh = 2a + r, kw = 2b + s  ->  stride-1 2x2 conv over xd
    wc = jnp.transpose(w_oihw, (2, 3, 1, 0))             # (4, 4, Cin, Cout)
    w2 = wc.reshape(2, 2, 2, 2, Cin, Cout)               # (a, r, b, s, c, n)
    w2 = jnp.transpose(w2, (0, 2, 1, 3, 4, 5)).reshape(2, 2, 4 * Cin, Cout)
    return _conv_stride1(xd, w2, b)


def conv_transpose2d_s2k4p1(x, w_iohw, b):
    """nn.ConvTranspose2d(Cin, Cout, 4, stride=2, padding=1) on NHWC input.

    Sub-pixel decomposition: output pixel (2a+r, 2c+s) is a dense 2x2
    correlation over the original resolution; the four phases are fused into a
    single stride-1 3x3 conv with 4*Cout channels + a pixel shuffle.
    """
    Cin, Cout, K, _ = w_iohw.shape
    assert K == 4
    B, H, W, _ = x.shape
    # y[2a+r, 2c+s, n] = sum_{dh,dw} x_pad[a+r+dh, c+s+dw] . W[:, n, 3-2dh-r, 3-2dw-s]
    w6 = jnp.zeros((3, 3, Cin, 2, 2, Cout), jnp.float32)
    for r in range(2):
        for s in range(2):
            for dh in range(2):
                for dw in range(2):
                    p, q = 3 - 2 * dh - r, 3 - 2 * dw - s
                    w6 = w6.at[r + dh, s + dw, :, r, s, :].set(w_iohw[:, :, p, q])
    w_conv = w6.reshape(3, 3, Cin, 4 * Cout)             # phases on out-channels
    b4 = jnp.tile(b, 4)
    xp = jnp.pad(x, ((0, 0), (1, 1), (1, 1), (0, 0)))
    out = _conv_stride1(xp, w_conv, b4)                  # (B, H, W, 4*Cout)
    out = out.reshape(B, H, W, 2, 2, Cout)
    return jnp.transpose(out, (0, 1, 3, 2, 4, 5)).reshape(B, 2 * H, 2 * W, Cout)


# ----------------------------- UNet ------------------------------------------

def init_unet_params(key, dim_in, dim_out, dim_basic, dim_multipliers):
    channels = [dim_basic * m for m in dim_multipliers]
    in_out_pairs = list(zip(channels[:-1], channels[1:]))

    def conv_w(key, cout, cin, k):
        kw, kb = jax.random.split(key)
        bound = 1.0 / jnp.sqrt(cin * k * k)
        w = jax.random.uniform(kw, (cout, cin, k, k), jnp.float32, -bound, bound)
        b = jax.random.uniform(kb, (cout,), jnp.float32, -bound, bound)
        return w, b

    def convT_w(key, cin, cout, k):
        kw, kb = jax.random.split(key)
        bound = 1.0 / jnp.sqrt(cout * k * k)
        w = jax.random.uniform(kw, (cin, cout, k, k), jnp.float32, -bound, bound)
        b = jax.random.uniform(kb, (cout,), jnp.float32, -bound, bound)
        return w, b

    keys = jax.random.split(key, 3 + 2 * len(in_out_pairs))
    ki = iter(keys)
    params = {}
    params["init"] = conv_w(next(ki), channels[0], dim_in, 3)
    params["down"] = []
    for (ci, co) in in_out_pairs:
        ci = ci if ci != 0 else dim_in
        params["down"].append(conv_w(next(ki), co, ci, 4))
    params["neck"] = conv_w(next(ki), channels[-1], channels[-1], 3)
    params["up"] = []
    for (co, ci) in reversed(in_out_pairs):
        ci = 2 * ci
        co = co if co != 0 else dim_out
        params["up"].append(convT_w(next(ki), ci, co, 4))
    params["final"] = conv_w(next(ki), dim_out, channels[0], 3)
    return params


def unet_forward(params, x_nchw, skip_connection_scale=1.0):
    x = jnp.transpose(x_nchw, (0, 2, 3, 1)).astype(jnp.bfloat16)   # NCHW->NHWC
    w, b = params["init"]
    x = conv2d_3x3(x, w, b)
    skips = []
    for (w, b) in params["down"]:
        x = conv2d_4x4_s2(x, w, b)
        skips.append((x * skip_connection_scale).astype(jnp.bfloat16))
    w, b = params["neck"]
    x = conv2d_3x3(x, w, b)
    for (w, b) in params["up"]:
        x = jnp.concatenate([x, skips.pop()], axis=-1)   # dim=1 in NCHW
        x = conv_transpose2d_s2k4p1(x, w, b)
    w, b = params["final"]
    x = conv2d_3x3(x, w, b)
    return jnp.transpose(x, (0, 3, 1, 2)).astype(jnp.float32)      # NHWC->NCHW


# -------------------- pure-JAX reference (same precision policy) -------------

def unet_reference(params, x_nchw, skip_connection_scale=1.0):
    def conv(x, w, b, stride, pad):
        out = lax.conv_general_dilated(
            x.astype(jnp.bfloat16), w.astype(jnp.bfloat16),
            (stride, stride), [(pad, pad), (pad, pad)],
            dimension_numbers=("NHWC", "OIHW", "NHWC"),
            preferred_element_type=jnp.float32)
        return (out + b).astype(jnp.bfloat16)

    def convT(x, w_iohw, b):
        w = jnp.transpose(jnp.flip(w_iohw, (2, 3)), (1, 0, 2, 3))
        out = lax.conv_general_dilated(
            x.astype(jnp.bfloat16), w.astype(jnp.bfloat16),
            (1, 1), [(2, 2), (2, 2)], lhs_dilation=(2, 2),
            dimension_numbers=("NHWC", "OIHW", "NHWC"),
            preferred_element_type=jnp.float32)
        return (out + b).astype(jnp.bfloat16)

    x = jnp.transpose(x_nchw, (0, 2, 3, 1)).astype(jnp.bfloat16)
    w, b = params["init"]
    x = conv(x, w, b, 1, 1)
    skips = []
    for (w, b) in params["down"]:
        x = conv(x, w, b, 2, 1)
        skips.append((x * skip_connection_scale).astype(jnp.bfloat16))
    w, b = params["neck"]
    x = conv(x, w, b, 1, 1)
    for (w, b) in params["up"]:
        x = jnp.concatenate([x, skips.pop()], axis=-1)
        x = convT(x, w, b)
    w, b = params["final"]
    x = conv(x, w, b, 1, 1)
    return jnp.transpose(x, (0, 3, 1, 2)).astype(jnp.float32)


if __name__ == "__main__":
    # small config: dim_in=4, dim_out=4, dim_basic=8, dim_multipliers=[1,2,4]
    # -> channels [8,16,32], 2 down blocks, 2 up blocks, skip_scale=1.0
    key = jax.random.PRNGKey(0)
    kx, kp = jax.random.split(key)

    B, C, H, W = 2, 4, 16, 16
    x = jax.random.normal(kx, (B, C, H, W), jnp.float32)

    params = init_unet_params(kp, dim_in=4, dim_out=4, dim_basic=8,
                              dim_multipliers=[1, 2, 4])

    fwd = jax.jit(functools.partial(unet_forward, skip_connection_scale=1.0))
    out = jax.block_until_ready(fwd(params, x))
    assert out.shape == (B, 4, H, W), out.shape
    assert bool(jnp.all(jnp.isfinite(out)))

    # correctness vs pure-JAX lax.conv reference (matching bf16/f32 policy)
    ref_fn = jax.jit(functools.partial(unet_reference, skip_connection_scale=1.0))
    ref = jax.block_until_ready(ref_fn(params, x))
    err = float(jnp.max(jnp.abs(out - ref)))
    tol = 1e-2 + 5e-2 * float(jnp.max(jnp.abs(ref)))
    assert err <= tol, (err, tol)

    print("KERNEL_OK")
</pallas_src>

<mosaic_0001>
module attributes {stable_mosaic.version = 11 : i64} {
  func.func @_conv_rows_kernel(%arg0: i32, %arg1: memref<1x18x128xbf16, #tpu.memory_space<vmem>>, %arg2: memref<3x128x128xbf16, #tpu.memory_space<vmem>>, %arg3: memref<1x128xf32, #tpu.memory_space<vmem>>, %arg4: memref<1x16x128xbf16, #tpu.memory_space<vmem>>) attributes {dimension_semantics = [#tpu.dimension_semantics<parallel>], iteration_bounds = array<i64: 2>, scalar_prefetch = 0 : i64, scratch_operands = 0 : i64, tpu.core_type = #tpu.core_type<tc>, window_params = [{transform_indices = @transform_0, window_bounds = array<i64: 1, 18, 128>}, {pipeline_mode = #tpu.pipeline_mode<synchronous>, transform_indices = @transform_1, window_bounds = array<i64: 3, 128, 128>}, {pipeline_mode = #tpu.pipeline_mode<synchronous>, transform_indices = @transform_2, window_bounds = array<i64: 1, 128>}, {transform_indices = @transform_3, window_bounds = array<i64: 1, 16, 128>}]} {
    %c0 = arith.constant 0 : index
    %c0_0 = arith.constant 0 : index
    %c0_1 = arith.constant 0 : index
    %0 = vector.load %arg1[%c0, %c0_0, %c0_1] : memref<1x18x128xbf16, #tpu.memory_space<vmem>>, vector<1x18x128xbf16>
    %1 = vector.shape_cast %0 : vector<1x18x128xbf16> to vector<18x128xbf16>
    %2 = vector.extract_strided_slice %1 {offsets = [0, 0], sizes = [16, 128], strides = [1, 1]} : vector<18x128xbf16> to vector<16x128xbf16>
    %c0_2 = arith.constant 0 : index
    %c0_3 = arith.constant 0 : index
    %c0_4 = arith.constant 0 : index
    %3 = vector.load %arg2[%c0_2, %c0_3, %c0_4] : memref<3x128x128xbf16, #tpu.memory_space<vmem>>, vector<1x128x128xbf16>
    %4 = vector.shape_cast %3 : vector<1x128x128xbf16> to vector<128x128xbf16>
    %cst = arith.constant dense<0.000000e+00> : vector<16x128xf32>
    %5 = tpu.matmul %2, %4, %cst {dimension_numbers = #tpu.dot_dimension_numbers<[1], [0], [0], [1], [0, 0, 1, 1], [], []>} : vector<16x128xbf16>, vector<128x128xbf16>, vector<16x128xf32> -> vector<16x128xf32>
    %6 = vector.extract_strided_slice %1 {offsets = [1, 0], sizes = [16, 128], strides = [1, 1]} : vector<18x128xbf16> to vector<16x128xbf16>
    %c1 = arith.constant 1 : index
    %c0_5 = arith.constant 0 : index
    %c0_6 = arith.constant 0 : index
    %7 = vector.load %arg2[%c1, %c0_5, %c0_6] : memref<3x128x128xbf16, #tpu.memory_space<vmem>>, vector<1x128x128xbf16>
    %8 = vector.shape_cast %7 : vector<1x128x128xbf16> to vector<128x128xbf16>
    %cst_7 = arith.constant dense<0.000000e+00> : vector<16x128xf32>
    %9 = tpu.matmul %6, %8, %cst_7 {dimension_numbers = #tpu.dot_dimension_numbers<[1], [0], [0], [1], [0, 0, 1, 1], [], []>} : vector<16x128xbf16>, vector<128x128xbf16>, vector<16x128xf32> -> vector<16x128xf32>
    %10 = arith.addf %5, %9 : vector<16x128xf32>
    %11 = vector.extract_strided_slice %1 {offsets = [2, 0], sizes = [16, 128], strides = [1, 1]} : vector<18x128xbf16> to vector<16x128xbf16>
    %c2 = arith.constant 2 : index
    %c0_8 = arith.constant 0 : index
    %c0_9 = arith.constant 0 : index
    %12 = vector.load %arg2[%c2, %c0_8, %c0_9] : memref<3x128x128xbf16, #tpu.memory_space<vmem>>, vector<1x128x128xbf16>
    %13 = vector.shape_cast %12 : vector<1x128x128xbf16> to vector<128x128xbf16>
    %cst_10 = arith.constant dense<0.000000e+00> : vector<16x128xf32>
    %14 = tpu.matmul %11, %13, %cst_10 {dimension_numbers = #tpu.dot_dimension_numbers<[1], [0], [0], [1], [0, 0, 1, 1], [], []>} : vector<16x128xbf16>, vector<128x128xbf16>, vector<16x128xf32> -> vector<16x128xf32>
    %15 = arith.addf %10, %14 : vector<16x128xf32>
    %c0_11 = arith.constant 0 : index
    %c0_12 = arith.constant 0 : index
    %16 = vector.load %arg3[%c0_11, %c0_12] : memref<1x128xf32, #tpu.memory_space<vmem>>, vector<1x128xf32>
    %17 = vector.broadcast %16 : vector<1x128xf32> to vector<16x128xf32>
    %18 = arith.addf %15, %17 : vector<16x128xf32>
    %19 = arith.truncf %18 : vector<16x128xf32> to vector<16x128xbf16>
    %c0_13 = arith.constant 0 : index
    %c0_14 = arith.constant 0 : index
    %c0_15 = arith.constant 0 : index
    %20 = vector.load %arg4[%c0_13, %c0_14, %c0_15] : memref<1x16x128xbf16, #tpu.memory_space<vmem>>, vector<1x16x128xbf16>
    %21 = vector.shape_cast %20 : vector<1x16x128xbf16> to vector<16x128xbf16>
    %22 = vector.shape_cast %19 : vector<16x128xbf16> to vector<1x16x128xbf16>
    tpu.vector_store %arg4[%c0_13, %c0_14, %c0_15], %22 {strides = array<i32>} : memref<1x16x128xbf16, #tpu.memory_space<vmem>>, vector<1x16x128xbf16>,
    return
  }
  func.func @transform_0(%arg0: i32) -> (i32, i32, i32) {
    %c0_i32 = arith.constant 0 : i32
    %c0_i32_0 = arith.constant 0 : i32
    %c0_i32_1 = arith.constant 0 : i32
    return %arg0, %c0_i32, %c0_i32_0 : i32, i32, i32
  }
  func.func @transform_1(%arg0: i32) -> (i32, i32, i32) {
    %c0_i32 = arith.constant 0 : i32
    %c0_i32_0 = arith.constant 0 : i32
    %c0_i32_1 = arith.constant 0 : i32
    %c0_i32_2 = arith.constant 0 : i32
    return %c0_i32, %c0_i32_0, %c0_i32_1 : i32, i32, i32
  }
  func.func @transform_2(%arg0: i32) -> (i32, i32) {
    %c0_i32 = arith.constant 0 : i32
    %c0_i32_0 = arith.constant 0 : i32
    %c0_i32_1 = arith.constant 0 : i32
    return %c0_i32, %c0_i32_0 : i32, i32
  }
  func.func @transform_3(%arg0: i32) -> (i32, i32, i32) {
    %c0_i32 = arith.constant 0 : i32
    %c0_i32_0 = arith.constant 0 : i32
    %c0_i32_1 = arith.constant 0 : i32
    return %arg0, %c0_i32, %c0_i32_0 : i32, i32, i32
  }
}

module attributes {stable_mosaic.version = 11 : i64} {
  func.func @_conv_rows_kernel(%arg0: i32, %arg1: memref<1x9x384xbf16, #tpu.memory_space<vmem>>, %arg2: memref<2x384x128xbf16, #tpu.memory_space<vmem>>, %arg3: memref<1x128xf32, #tpu.memory_space<vmem>>, %arg4: memref<1x8x128xbf16, #tpu.memory_space<vmem>>) attributes {dimension_semantics = [#tpu.dimension_semantics<parallel>], iteration_bounds = array<i64: 2>, scalar_prefetch = 0 : i64, scratch_operands = 0 : i64, tpu.core_type = #tpu.core_type<tc>, window_params = [{transform_indices = @transform_0, window_bounds = array<i64: 1, 9, 384>}, {pipeline_mode = #tpu.pipeline_mode<synchronous>, transform_indices = @transform_1, window_bounds = array<i64: 2, 384, 128>}, {pipeline_mode = #tpu.pipeline_mode<synchronous>, transform_indices = @transform_2, window_bounds = array<i64: 1, 128>}, {transform_indices = @transform_3, window_bounds = array<i64: 1, 8, 128>}]} {
    %c0 = arith.constant 0 : index
    %c0_0 = arith.constant 0 : index
    %c0_1 = arith.constant 0 : index
    %0 = vector.load %arg1[%c0, %c0_0, %c0_1] : memref<1x9x384xbf16, #tpu.memory_space<vmem>>, vector<1x9x384xbf16>
    %1 = vector.shape_cast %0 : vector<1x9x384xbf16> to vector<9x384xbf16>
    %2 = vector.extract_strided_slice %1 {offsets = [0, 0], sizes = [8, 384], strides = [1, 1]} : vector<9x384xbf16> to vector<8x384xbf16>
    %c0_2 = arith.constant 0 : index
    %c0_3 = arith.constant 0 : index
    %c0_4 = arith.constant 0 : index
    %3 = vector.load %arg2[%c0_2, %c0_3, %c0_4] : memref<2x384x128xbf16, #tpu.memory_space<vmem>>, vector<1x384x128xbf16>
    %4 = vector.shape_cast %3 : vector<1x384x128xbf16> to vector<384x128xbf16>
    %cst = arith.constant dense<0.000000e+00> : vector<8x128xf32>
    %5 = tpu.matmul %2, %4, %cst {dimension_numbers = #tpu.dot_dimension_numbers<[1], [0], [0], [1], [0, 0, 1, 1], [], []>} : vector<8x384xbf16>, vector<384x128xbf16>, vector<8x128xf32> -> vector<8x128xf32>
    %6 = vector.extract_strided_slice %1 {offsets = [1, 0], sizes = [8, 384], strides = [1, 1]} : vector<9x384xbf16> to vector<8x384xbf16>
    %c1 = arith.constant 1 : index
    %c0_5 = arith.constant 0 : index
    %c0_6 = arith.constant 0 : index
    %7 = vector.load %arg2[%c1, %c0_5, %c0_6] : memref<2x384x128xbf16, #tpu.memory_space<vmem>>, vector<1x384x128xbf16>
    %8 = vector.shape_cast %7 : vector<1x384x128xbf16> to vector<384x128xbf16>
    %cst_7 = arith.constant dense<0.000000e+00> : vector<8x128xf32>
    %9 = tpu.matmul %6, %8, %cst_7 {dimension_numbers = #tpu.dot_dimension_numbers<[1], [0], [0], [1], [0, 0, 1, 1], [], []>} : vector<8x384xbf16>, vector<384x128xbf16>, vector<8x128xf32> -> vector<8x128xf32>
    %10 = arith.addf %5, %9 : vector<8x128xf32>
    %c0_8 = arith.constant 0 : index
    %c0_9 = arith.constant 0 : index
    %11 = vector.load %arg3[%c0_8, %c0_9] : memref<1x128xf32, #tpu.memory_space<vmem>>, vector<1x128xf32>
    %12 = vector.broadcast %11 : vector<1x128xf32> to vector<8x128xf32>
    %13 = arith.addf %10, %12 : vector<8x128xf32>
    %14 = arith.truncf %13 : vector<8x128xf32> to vector<8x128xbf16>
    %c0_10 = arith.constant 0 : index
    %c0_11 = arith.constant 0 : index
    %c0_12 = arith.constant 0 : index
    %15 = vector.load %arg4[%c0_10, %c0_11, %c0_12] : memref<1x8x128xbf16, #tpu.memory_space<vmem>>, vector<1x8x128xbf16>
    %16 = vector.shape_cast %15 : vector<1x8x128xbf16> to vector<8x128xbf16>
    %17 = vector.shape_cast %14 : vector<8x128xbf16> to vector<1x8x128xbf16>
    tpu.vector_store %arg4[%c0_10, %c0_11, %c0_12], %17 {strides = array<i32>} : memref<1x8x128xbf16, #tpu.memory_space<vmem>>, vector<1x8x128xbf16>,
    return
  }
  func.func @transform_0(%arg0: i32) -> (i32, i32, i32) {
    %c0_i32 = arith.constant 0 : i32
    %c0_i32_0 = arith.constant 0 : i32
    %c0_i32_1 = arith.constant 0 : i32
    return %arg0, %c0_i32, %c0_i32_0 : i32, i32, i32
  }
  func.func @transform_1(%arg0: i32) -> (i32, i32, i32) {
    %c0_i32 = arith.constant 0 : i32
    %c0_i32_0 = arith.constant 0 : i32
    %c0_i32_1 = arith.constant 0 : i32
    %c0_i32_2 = arith.constant 0 : i32
    return %c0_i32, %c0_i32_0, %c0_i32_1 : i32, i32, i32
  }
  func.func @transform_2(%arg0: i32) -> (i32, i32) {
    %c0_i32 = arith.constant 0 : i32
    %c0_i32_0 = arith.constant 0 : i32
    %c0_i32_1 = arith.constant 0 : i32
    return %c0_i32, %c0_i32_0 : i32, i32
  }
  func.func @transform_3(%arg0: i32) -> (i32, i32, i32) {
    %c0_i32 = arith.constant 0 : i32
    %c0_i32_0 = arith.constant 0 : i32
    %c0_i32_1 = arith.constant 0 : i32
    return %arg0, %c0_i32, %c0_i32_0 : i32, i32, i32
  }
}

module attributes {stable_mosaic.version = 11 : i64} {
  func.func @_conv_rows_kernel(%arg0: i32, %arg1: memref<1x5x384xbf16, #tpu.memory_space<vmem>>, %arg2: memref<2x384x128xbf16, #tpu.memory_space<vmem>>, %arg3: memref<1x128xf32, #tpu.memory_space<vmem>>, %arg4: memref<1x4x128xbf16, #tpu.memory_space<vmem>>) attributes {dimension_semantics = [#tpu.dimension_semantics<parallel>], iteration_bounds = array<i64: 2>, scalar_prefetch = 0 : i64, scratch_operands = 0 : i64, tpu.core_type = #tpu.core_type<tc>, window_params = [{transform_indices = @transform_0, window_bounds = array<i64: 1, 5, 384>}, {pipeline_mode = #tpu.pipeline_mode<synchronous>, transform_indices = @transform_1, window_bounds = array<i64: 2, 384, 128>}, {pipeline_mode = #tpu.pipeline_mode<synchronous>, transform_indices = @transform_2, window_bounds = array<i64: 1, 128>}, {transform_indices = @transform_3, window_bounds = array<i64: 1, 4, 128>}]} {
    %c0 = arith.constant 0 : index
    %c0_0 = arith.constant 0 : index
    %c0_1 = arith.constant 0 : index
    %0 = vector.load %arg1[%c0, %c0_0, %c0_1] : memref<1x5x384xbf16, #tpu.memory_space<vmem>>, vector<1x5x384xbf16>
    %1 = vector.shape_cast %0 : vector<1x5x384xbf16> to vector<5x384xbf16>
    %2 = vector.extract_strided_slice %1 {offsets = [0, 0], sizes = [4, 384], strides = [1, 1]} : vector<5x384xbf16> to vector<4x384xbf16>
    %c0_2 = arith.constant 0 : index
    %c0_3 = arith.constant 0 : index
    %c0_4 = arith.constant 0 : index
    %3 = vector.load %arg2[%c0_2, %c0_3, %c0_4] : memref<2x384x128xbf16, #tpu.memory_space<vmem>>, vector<1x384x128xbf16>
    %4 = vector.shape_cast %3 : vector<1x384x128xbf16> to vector<384x128xbf16>
    %cst = arith.constant dense<0.000000e+00> : vector<4x128xf32>
    %5 = tpu.matmul %2, %4, %cst {dimension_numbers = #tpu.dot_dimension_numbers<[1], [0], [0], [1], [0, 0, 1, 1], [], []>} : vector<4x384xbf16>, vector<384x128xbf16>, vector<4x128xf32> -> vector<4x128xf32>
    %6 = vector.extract_strided_slice %1 {offsets = [1, 0], sizes = [4, 384], strides = [1, 1]} : vector<5x384xbf16> to vector<4x384xbf16>
    %c1 = arith.constant 1 : index
    %c0_5 = arith.constant 0 : index
    %c0_6 = arith.constant 0 : index
    %7 = vector.load %arg2[%c1, %c0_5, %c0_6] : memref<2x384x128xbf16, #tpu.memory_space<vmem>>, vector<1x384x128xbf16>
    %8 = vector.shape_cast %7 : vector<1x384x128xbf16> to vector<384x128xbf16>
    %cst_7 = arith.constant dense<0.000000e+00> : vector<4x128xf32>
    %9 = tpu.matmul %6, %8, %cst_7 {dimension_numbers = #tpu.dot_dimension_numbers<[1], [0], [0], [1], [0, 0, 1, 1], [], []>} : vector<4x384xbf16>, vector<384x128xbf16>, vector<4x128xf32> -> vector<4x128xf32>
    %10 = arith.addf %5, %9 : vector<4x128xf32>
    %c0_8 = arith.constant 0 : index
    %c0_9 = arith.constant 0 : index
    %11 = vector.load %arg3[%c0_8, %c0_9] : memref<1x128xf32, #tpu.memory_space<vmem>>, vector<1x128xf32>
    %12 = vector.broadcast %11 : vector<1x128xf32> to vector<4x128xf32>
    %13 = arith.addf %10, %12 : vector<4x128xf32>
    %14 = arith.truncf %13 : vector<4x128xf32> to vector<4x128xbf16>
    %c0_10 = arith.constant 0 : index
    %c0_11 = arith.constant 0 : index
    %c0_12 = arith.constant 0 : index
    %15 = vector.load %arg4[%c0_10, %c0_11, %c0_12] : memref<1x4x128xbf16, #tpu.memory_space<vmem>>, vector<1x4x128xbf16>
    %16 = vector.shape_cast %15 : vector<1x4x128xbf16> to vector<4x128xbf16>
    %17 = vector.shape_cast %14 : vector<4x128xbf16> to vector<1x4x128xbf16>
    tpu.vector_store %arg4[%c0_10, %c0_11, %c0_12], %17 {strides = array<i32>} : memref<1x4x128xbf16, #tpu.memory_space<vmem>>, vector<1x4x128xbf16>,
    return
  }
  func.func @transform_0(%arg0: i32) -> (i32, i32, i32) {
    %c0_i32 = arith.constant 0 : i32
    %c0_i32_0 = arith.constant 0 : i32
    %c0_i32_1 = arith.constant 0 : i32
    return %arg0, %c0_i32, %c0_i32_0 : i32, i32, i32
  }
  func.func @transform_1(%arg0: i32) -> (i32, i32, i32) {
    %c0_i32 = arith.constant 0 : i32
    %c0_i32_0 = arith.constant 0 : i32
    %c0_i32_1 = arith.constant 0 : i32
    %c0_i32_2 = arith.constant 0 : i32
    return %c0_i32, %c0_i32_0, %c0_i32_1 : i32, i32, i32
  }
  func.func @transform_2(%arg0: i32) -> (i32, i32) {
    %c0_i32 = arith.constant 0 : i32
    %c0_i32_0 = arith.constant 0 : i32
    %c0_i32_1 = arith.constant 0 : i32
    return %c0_i32, %c0_i32_0 : i32, i32
  }
  func.func @transform_3(%arg0: i32) -> (i32, i32, i32) {
    %c0_i32 = arith.constant 0 : i32
    %c0_i32_0 = arith.constant 0 : i32
    %c0_i32_1 = arith.constant 0 : i32
    return %arg0, %c0_i32, %c0_i32_0 : i32, i32, i32
  }
}

module attributes {stable_mosaic.version = 11 : i64} {
  func.func @_conv_rows_kernel(%arg0: i32, %arg1: memref<1x6x256xbf16, #tpu.memory_space<vmem>>, %arg2: memref<3x256x128xbf16, #tpu.memory_space<vmem>>, %arg3: memref<1x128xf32, #tpu.memory_space<vmem>>, %arg4: memref<1x4x128xbf16, #tpu.memory_space<vmem>>) attributes {dimension_semantics = [#tpu.dimension_semantics<parallel>], iteration_bounds = array<i64: 2>, scalar_prefetch = 0 : i64, scratch_operands = 0 : i64, tpu.core_type = #tpu.core_type<tc>, window_params = [{transform_indices = @transform_0, window_bounds = array<i64: 1, 6, 256>}, {pipeline_mode = #tpu.pipeline_mode<synchronous>, transform_indices = @transform_1, window_bounds = array<i64: 3, 256, 128>}, {pipeline_mode = #tpu.pipeline_mode<synchronous>, transform_indices = @transform_2, window_bounds = array<i64: 1, 128>}, {transform_indices = @transform_3, window_bounds = array<i64: 1, 4, 128>}]} {
    %c0 = arith.constant 0 : index
    %c0_0 = arith.constant 0 : index
    %c0_1 = arith.constant 0 : index
    %0 = vector.load %arg1[%c0, %c0_0, %c0_1] : memref<1x6x256xbf16, #tpu.memory_space<vmem>>, vector<1x6x256xbf16>
    %1 = vector.shape_cast %0 : vector<1x6x256xbf16> to vector<6x256xbf16>
    %2 = vector.extract_strided_slice %1 {offsets = [0, 0], sizes = [4, 256], strides = [1, 1]} : vector<6x256xbf16> to vector<4x256xbf16>
    %c0_2 = arith.constant 0 : index
    %c0_3 = arith.constant 0 : index
    %c0_4 = arith.constant 0 : index
    %3 = vector.load %arg2[%c0_2, %c0_3, %c0_4] : memref<3x256x128xbf16, #tpu.memory_space<vmem>>, vector<1x256x128xbf16>
    %4 = vector.shape_cast %3 : vector<1x256x128xbf16> to vector<256x128xbf16>
    %cst = arith.constant dense<0.000000e+00> : vector<4x128xf32>
    %5 = tpu.matmul %2, %4, %cst {dimension_numbers = #tpu.dot_dimension_numbers<[1], [0], [0], [1], [0, 0, 1, 1], [], []>} : vector<4x256xbf16>, vector<256x128xbf16>, vector<4x128xf32> -> vector<4x128xf32>
    %6 = vector.extract_strided_slice %1 {offsets = [1, 0], sizes = [4, 256], strides = [1, 1]} : vector<6x256xbf16> to vector<4x256xbf16>
    %c1 = arith.constant 1 : index
    %c0_5 = arith.constant 0 : index
    %c0_6 = arith.constant 0 : index
    %7 = vector.load %arg2[%c1, %c0_5, %c0_6] : memref<3x256x128xbf16, #tpu.memory_space<vmem>>, vector<1x256x128xbf16>
    %8 = vector.shape_cast %7 : vector<1x256x128xbf16> to vector<256x128xbf16>
    %cst_7 = arith.constant dense<0.000000e+00> : vector<4x128xf32>
    %9 = tpu.matmul %6, %8, %cst_7 {dimension_numbers = #tpu.dot_dimension_numbers<[1], [0], [0], [1], [0, 0, 1, 1], [], []>} : vector<4x256xbf16>, vector<256x128xbf16>, vector<4x128xf32> -> vector<4x128xf32>
    %10 = arith.addf %5, %9 : vector<4x128xf32>
    %11 = vector.extract_strided_slice %1 {offsets = [2, 0], sizes = [4, 256], strides = [1, 1]} : vector<6x256xbf16> to vector<4x256xbf16>
    %c2 = arith.constant 2 : index
    %c0_8 = arith.constant 0 : index
    %c0_9 = arith.constant 0 : index
    %12 = vector.load %arg2[%c2, %c0_8, %c0_9] : memref<3x256x128xbf16, #tpu.memory_space<vmem>>, vector<1x256x128xbf16>
    %13 = vector.shape_cast %12 : vector<1x256x128xbf16> to vector<256x128xbf16>
    %cst_10 = arith.constant dense<0.000000e+00> : vector<4x128xf32>
    %14 = tpu.matmul %11, %13, %cst_10 {dimension_numbers = #tpu.dot_dimension_numbers<[1], [0], [0], [1], [0, 0, 1, 1], [], []>} : vector<4x256xbf16>, vector<256x128xbf16>, vector<4x128xf32> -> vector<4x128xf32>
    %15 = arith.addf %10, %14 : vector<4x128xf32>
    %c0_11 = arith.constant 0 : index
    %c0_12 = arith.constant 0 : index
    %16 = vector.load %arg3[%c0_11, %c0_12] : memref<1x128xf32, #tpu.memory_space<vmem>>, vector<1x128xf32>
    %17 = vector.broadcast %16 : vector<1x128xf32> to vector<4x128xf32>
    %18 = arith.addf %15, %17 : vector<4x128xf32>
    %19 = arith.truncf %18 : vector<4x128xf32> to vector<4x128xbf16>
    %c0_13 = arith.constant 0 : index
    %c0_14 = arith.constant 0 : index
    %c0_15 = arith.constant 0 : index
    %20 = vector.load %arg4[%c0_13, %c0_14, %c0_15] : memref<1x4x128xbf16, #tpu.memory_space<vmem>>, vector<1x4x128xbf16>
    %21 = vector.shape_cast %20 : vector<1x4x128xbf16> to vector<4x128xbf16>
    %22 = vector.shape_cast %19 : vector<4x128xbf16> to vector<1x4x128xbf16>
    tpu.vector_store %arg4[%c0_13, %c0_14, %c0_15], %22 {strides = array<i32>} : memref<1x4x128xbf16, #tpu.memory_space<vmem>>, vector<1x4x128xbf16>,
    return
  }
  func.func @transform_0(%arg0: i32) -> (i32, i32, i32) {
    %c0_i32 = arith.constant 0 : i32
    %c0_i32_0 = arith.constant 0 : i32
    %c0_i32_1 = arith.constant 0 : i32
    return %arg0, %c0_i32, %c0_i32_0 : i32, i32, i32
  }
  func.func @transform_1(%arg0: i32) -> (i32, i32, i32) {
    %c0_i32 = arith.constant 0 : i32
    %c0_i32_0 = arith.constant 0 : i32
    %c0_i32_1 = arith.constant 0 : i32
    %c0_i32_2 = arith.constant 0 : i32
    return %c0_i32, %c0_i32_0, %c0_i32_1 : i32, i32, i32
  }
  func.func @transform_2(%arg0: i32) -> (i32, i32) {
    %c0_i32 = arith.constant 0 : i32
    %c0_i32_0 = arith.constant 0 : i32
    %c0_i32_1 = arith.constant 0 : i32
    return %c0_i32, %c0_i32_0 : i32, i32
  }
  func.func @transform_3(%arg0: i32) -> (i32, i32, i32) {
    %c0_i32 = arith.constant 0 : i32
    %c0_i32_0 = arith.constant 0 : i32
    %c0_i32_1 = arith.constant 0 : i32
    return %arg0, %c0_i32, %c0_i32_0 : i32, i32, i32
  }
}

module attributes {stable_mosaic.version = 11 : i64} {
  func.func @_conv_rows_kernel(%arg0: i32, %arg1: memref<1x6x384xbf16, #tpu.memory_space<vmem>>, %arg2: memref<3x384x256xbf16, #tpu.memory_space<vmem>>, %arg3: memref<1x256xf32, #tpu.memory_space<vmem>>, %arg4: memref<1x4x256xbf16, #tpu.memory_space<vmem>>) attributes {dimension_semantics = [#tpu.dimension_semantics<parallel>], iteration_bounds = array<i64: 2>, scalar_prefetch = 0 : i64, scratch_operands = 0 : i64, tpu.core_type = #tpu.core_type<tc>, window_params = [{transform_indices = @transform_0, window_bounds = array<i64: 1, 6, 384>}, {pipeline_mode = #tpu.pipeline_mode<synchronous>, transform_indices = @transform_1, window_bounds = array<i64: 3, 384, 256>}, {pipeline_mode = #tpu.pipeline_mode<synchronous>, transform_indices = @transform_2, window_bounds = array<i64: 1, 256>}, {transform_indices = @transform_3, window_bounds = array<i64: 1, 4, 256>}]} {
    %c0 = arith.constant 0 : index
    %c0_0 = arith.constant 0 : index
    %c0_1 = arith.constant 0 : index
    %0 = vector.load %arg1[%c0, %c0_0, %c0_1] : memref<1x6x384xbf16, #tpu.memory_space<vmem>>, vector<1x6x384xbf16>
    %1 = vector.shape_cast %0 : vector<1x6x384xbf16> to vector<6x384xbf16>
    %2 = vector.extract_strided_slice %1 {offsets = [0, 0], sizes = [4, 384], strides = [1, 1]} : vector<6x384xbf16> to vector<4x384xbf16>
    %c0_2 = arith.constant 0 : index
    %c0_3 = arith.constant 0 : index
    %c0_4 = arith.constant 0 : index
    %3 = vector.load %arg2[%c0_2, %c0_3, %c0_4] : memref<3x384x256xbf16, #tpu.memory_space<vmem>>, vector<1x384x256xbf16>
    %4 = vector.shape_cast %3 : vector<1x384x256xbf16> to vector<384x256xbf16>
    %cst = arith.constant dense<0.000000e+00> : vector<4x256xf32>
    %5 = tpu.matmul %2, %4, %cst {dimension_numbers = #tpu.dot_dimension_numbers<[1], [0], [0], [1], [0, 0, 1, 1], [], []>} : vector<4x384xbf16>, vector<384x256xbf16>, vector<4x256xf32> -> vector<4x256xf32>
    %6 = vector.extract_strided_slice %1 {offsets = [1, 0], sizes = [4, 384], strides = [1, 1]} : vector<6x384xbf16> to vector<4x384xbf16>
    %c1 = arith.constant 1 : index
    %c0_5 = arith.constant 0 : index
    %c0_6 = arith.constant 0 : index
    %7 = vector.load %arg2[%c1, %c0_5, %c0_6] : memref<3x384x256xbf16, #tpu.memory_space<vmem>>, vector<1x384x256xbf16>
    %8 = vector.shape_cast %7 : vector<1x384x256xbf16> to vector<384x256xbf16>
    %cst_7 = arith.constant dense<0.000000e+00> : vector<4x256xf32>
    %9 = tpu.matmul %6, %8, %cst_7 {dimension_numbers = #tpu.dot_dimension_numbers<[1], [0], [0], [1], [0, 0, 1, 1], [], []>} : vector<4x384xbf16>, vector<384x256xbf16>, vector<4x256xf32> -> vector<4x256xf32>
    %10 = arith.addf %5, %9 : vector<4x256xf32>
    %11 = vector.extract_strided_slice %1 {offsets = [2, 0], sizes = [4, 384], strides = [1, 1]} : vector<6x384xbf16> to vector<4x384xbf16>
    %c2 = arith.constant 2 : index
    %c0_8 = arith.constant 0 : index
    %c0_9 = arith.constant 0 : index
    %12 = vector.load %arg2[%c2, %c0_8, %c0_9] : memref<3x384x256xbf16, #tpu.memory_space<vmem>>, vector<1x384x256xbf16>
    %13 = vector.shape_cast %12 : vector<1x384x256xbf16> to vector<384x256xbf16>
    %cst_10 = arith.constant dense<0.000000e+00> : vector<4x256xf32>
    %14 = tpu.matmul %11, %13, %cst_10 {dimension_numbers = #tpu.dot_dimension_numbers<[1], [0], [0], [1], [0, 0, 1, 1], [], []>} : vector<4x384xbf16>, vector<384x256xbf16>, vector<4x256xf32> -> vector<4x256xf32>
    %15 = arith.addf %10, %14 : vector<4x256xf32>
    %c0_11 = arith.constant 0 : index
    %c0_12 = arith.constant 0 : index
    %16 = vector.load %arg3[%c0_11, %c0_12] : memref<1x256xf32, #tpu.memory_space<vmem>>, vector<1x256xf32>
    %17 = vector.broadcast %16 : vector<1x256xf32> to vector<4x256xf32>
    %18 = arith.addf %15, %17 : vector<4x256xf32>
    %19 = arith.truncf %18 : vector<4x256xf32> to vector<4x256xbf16>
    %c0_13 = arith.constant 0 : index
    %c0_14 = arith.constant 0 : index
    %c0_15 = arith.constant 0 : index
    %20 = vector.load %arg4[%c0_13, %c0_14, %c0_15] : memref<1x4x256xbf16, #tpu.memory_space<vmem>>, vector<1x4x256xbf16>
    %21 = vector.shape_cast %20 : vector<1x4x256xbf16> to vector<4x256xbf16>
    %22 = vector.shape_cast %19 : vector<4x256xbf16> to vector<1x4x256xbf16>
    tpu.vector_store %arg4[%c0_13, %c0_14, %c0_15], %22 {strides = array<i32>} : memref<1x4x256xbf16, #tpu.memory_space<vmem>>, vector<1x4x256xbf16>,
    return
  }
  func.func @transform_0(%arg0: i32) -> (i32, i32, i32) {
    %c0_i32 = arith.constant 0 : i32
    %c0_i32_0 = arith.constant 0 : i32
    %c0_i32_1 = arith.constant 0 : i32
    return %arg0, %c0_i32, %c0_i32_0 : i32, i32, i32
  }
  func.func @transform_1(%arg0: i32) -> (i32, i32, i32) {
    %c0_i32 = arith.constant 0 : i32
    %c0_i32_0 = arith.constant 0 : i32
    %c0_i32_1 = arith.constant 0 : i32
    %c0_i32_2 = arith.constant 0 : i32
    return %c0_i32, %c0_i32_0, %c0_i32_1 : i32, i32, i32
  }
  func.func @transform_2(%arg0: i32) -> (i32, i32) {
    %c0_i32 = arith.constant 0 : i32
    %c0_i32_0 = arith.constant 0 : i32
    %c0_i32_1 = arith.constant 0 : i32
    return %c0_i32, %c0_i32_0 : i32, i32
  }
  func.func @transform_3(%arg0: i32) -> (i32, i32, i32) {
    %c0_i32 = arith.constant 0 : i32
    %c0_i32_0 = arith.constant 0 : i32
    %c0_i32_1 = arith.constant 0 : i32
    return %arg0, %c0_i32, %c0_i32_0 : i32, i32, i32
  }
}

module attributes {stable_mosaic.version = 11 : i64} {
  func.func @_conv_rows_kernel(%arg0: i32, %arg1: memref<1x10x384xbf16, #tpu.memory_space<vmem>>, %arg2: memref<3x384x256xbf16, #tpu.memory_space<vmem>>, %arg3: memref<1x256xf32, #tpu.memory_space<vmem>>, %arg4: memref<1x8x256xbf16, #tpu.memory_space<vmem>>) attributes {dimension_semantics = [#tpu.dimension_semantics<parallel>], iteration_bounds = array<i64: 2>, scalar_prefetch = 0 : i64, scratch_operands = 0 : i64, tpu.core_type = #tpu.core_type<tc>, window_params = [{transform_indices = @transform_0, window_bounds = array<i64: 1, 10, 384>}, {pipeline_mode = #tpu.pipeline_mode<synchronous>, transform_indices = @transform_1, window_bounds = array<i64: 3, 384, 256>}, {pipeline_mode = #tpu.pipeline_mode<synchronous>, transform_indices = @transform_2, window_bounds = array<i64: 1, 256>}, {transform_indices = @transform_3, window_bounds = array<i64: 1, 8, 256>}]} {
    %c0 = arith.constant 0 : index
    %c0_0 = arith.constant 0 : index
    %c0_1 = arith.constant 0 : index
    %0 = vector.load %arg1[%c0, %c0_0, %c0_1] : memref<1x10x384xbf16, #tpu.memory_space<vmem>>, vector<1x10x384xbf16>
    %1 = vector.shape_cast %0 : vector<1x10x384xbf16> to vector<10x384xbf16>
    %2 = vector.extract_strided_slice %1 {offsets = [0, 0], sizes = [8, 384], strides = [1, 1]} : vector<10x384xbf16> to vector<8x384xbf16>
    %c0_2 = arith.constant 0 : index
    %c0_3 = arith.constant 0 : index
    %c0_4 = arith.constant 0 : index
    %3 = vector.load %arg2[%c0_2, %c0_3, %c0_4] : memref<3x384x256xbf16, #tpu.memory_space<vmem>>, vector<1x384x256xbf16>
    %4 = vector.shape_cast %3 : vector<1x384x256xbf16> to vector<384x256xbf16>
    %cst = arith.constant dense<0.000000e+00> : vector<8x256xf32>
    %5 = tpu.matmul %2, %4, %cst {dimension_numbers = #tpu.dot_dimension_numbers<[1], [0], [0], [1], [0, 0, 1, 1], [], []>} : vector<8x384xbf16>, vector<384x256xbf16>, vector<8x256xf32> -> vector<8x256xf32>
    %6 = vector.extract_strided_slice %1 {offsets = [1, 0], sizes = [8, 384], strides = [1, 1]} : vector<10x384xbf16> to vector<8x384xbf16>
    %c1 = arith.constant 1 : index
    %c0_5 = arith.constant 0 : index
    %c0_6 = arith.constant 0 : index
    %7 = vector.load %arg2[%c1, %c0_5, %c0_6] : memref<3x384x256xbf16, #tpu.memory_space<vmem>>, vector<1x384x256xbf16>
    %8 = vector.shape_cast %7 : vector<1x384x256xbf16> to vector<384x256xbf16>
    %cst_7 = arith.constant dense<0.000000e+00> : vector<8x256xf32>
    %9 = tpu.matmul %6, %8, %cst_7 {dimension_numbers = #tpu.dot_dimension_numbers<[1], [0], [0], [1], [0, 0, 1, 1], [], []>} : vector<8x384xbf16>, vector<384x256xbf16>, vector<8x256xf32> -> vector<8x256xf32>
    %10 = arith.addf %5, %9 : vector<8x256xf32>
    %11 = vector.extract_strided_slice %1 {offsets = [2, 0], sizes = [8, 384], strides = [1, 1]} : vector<10x384xbf16> to vector<8x384xbf16>
    %c2 = arith.constant 2 : index
    %c0_8 = arith.constant 0 : index
    %c0_9 = arith.constant 0 : index
    %12 = vector.load %arg2[%c2, %c0_8, %c0_9] : memref<3x384x256xbf16, #tpu.memory_space<vmem>>, vector<1x384x256xbf16>
    %13 = vector.shape_cast %12 : vector<1x384x256xbf16> to vector<384x256xbf16>
    %cst_10 = arith.constant dense<0.000000e+00> : vector<8x256xf32>
    %14 = tpu.matmul %11, %13, %cst_10 {dimension_numbers = #tpu.dot_dimension_numbers<[1], [0], [0], [1], [0, 0, 1, 1], [], []>} : vector<8x384xbf16>, vector<384x256xbf16>, vector<8x256xf32> -> vector<8x256xf32>
    %15 = arith.addf %10, %14 : vector<8x256xf32>
    %c0_11 = arith.constant 0 : index
    %c0_12 = arith.constant 0 : index
    %16 = vector.load %arg3[%c0_11, %c0_12] : memref<1x256xf32, #tpu.memory_space<vmem>>, vector<1x256xf32>
    %17 = vector.broadcast %16 : vector<1x256xf32> to vector<8x256xf32>
    %18 = arith.addf %15, %17 : vector<8x256xf32>
    %19 = arith.truncf %18 : vector<8x256xf32> to vector<8x256xbf16>
    %c0_13 = arith.constant 0 : index
    %c0_14 = arith.constant 0 : index
    %c0_15 = arith.constant 0 : index
    %20 = vector.load %arg4[%c0_13, %c0_14, %c0_15] : memref<1x8x256xbf16, #tpu.memory_space<vmem>>, vector<1x8x256xbf16>
    %21 = vector.shape_cast %20 : vector<1x8x256xbf16> to vector<8x256xbf16>
    %22 = vector.shape_cast %19 : vector<8x256xbf16> to vector<1x8x256xbf16>
    tpu.vector_store %arg4[%c0_13, %c0_14, %c0_15], %22 {strides = array<i32>} : memref<1x8x256xbf16, #tpu.memory_space<vmem>>, vector<1x8x256xbf16>,
    return
  }
  func.func @transform_0(%arg0: i32) -> (i32, i32, i32) {
    %c0_i32 = arith.constant 0 : i32
    %c0_i32_0 = arith.constant 0 : i32
    %c0_i32_1 = arith.constant 0 : i32
    return %arg0, %c0_i32, %c0_i32_0 : i32, i32, i32
  }
  func.func @transform_1(%arg0: i32) -> (i32, i32, i32) {
    %c0_i32 = arith.constant 0 : i32
    %c0_i32_0 = arith.constant 0 : i32
    %c0_i32_1 = arith.constant 0 : i32
    %c0_i32_2 = arith.constant 0 : i32
    return %c0_i32, %c0_i32_0, %c0_i32_1 : i32, i32, i32
  }
  func.func @transform_2(%arg0: i32) -> (i32, i32) {
    %c0_i32 = arith.constant 0 : i32
    %c0_i32_0 = arith.constant 0 : i32
    %c0_i32_1 = arith.constant 0 : i32
    return %c0_i32, %c0_i32_0 : i32, i32
  }
  func.func @transform_3(%arg0: i32) -> (i32, i32, i32) {
    %c0_i32 = arith.constant 0 : i32
    %c0_i32_0 = arith.constant 0 : i32
    %c0_i32_1 = arith.constant 0 : i32
    return %arg0, %c0_i32, %c0_i32_0 : i32, i32, i32
  }
}

module attributes {stable_mosaic.version = 11 : i64} {
  func.func @_conv_rows_kernel(%arg0: i32, %arg1: memref<1x18x256xbf16, #tpu.memory_space<vmem>>, %arg2: memref<3x256x128xbf16, #tpu.memory_space<vmem>>, %arg3: memref<1x128xf32, #tpu.memory_space<vmem>>, %arg4: memref<1x16x128xbf16, #tpu.memory_space<vmem>>) attributes {dimension_semantics = [#tpu.dimension_semantics<parallel>], iteration_bounds = array<i64: 2>, scalar_prefetch = 0 : i64, scratch_operands = 0 : i64, tpu.core_type = #tpu.core_type<tc>, window_params = [{transform_indices = @transform_0, window_bounds = array<i64: 1, 18, 256>}, {pipeline_mode = #tpu.pipeline_mode<synchronous>, transform_indices = @transform_1, window_bounds = array<i64: 3, 256, 128>}, {pipeline_mode = #tpu.pipeline_mode<synchronous>, transform_indices = @transform_2, window_bounds = array<i64: 1, 128>}, {transform_indices = @transform_3, window_bounds = array<i64: 1, 16, 128>}]} {
    %c0 = arith.constant 0 : index
    %c0_0 = arith.constant 0 : index
    %c0_1 = arith.constant 0 : index
    %0 = vector.load %arg1[%c0, %c0_0, %c0_1] : memref<1x18x256xbf16, #tpu.memory_space<vmem>>, vector<1x18x256xbf16>
    %1 = vector.shape_cast %0 : vector<1x18x256xbf16> to vector<18x256xbf16>
    %2 = vector.extract_strided_slice %1 {offsets = [0, 0], sizes = [16, 256], strides = [1, 1]} : vector<18x256xbf16> to vector<16x256xbf16>
    %c0_2 = arith.constant 0 : index
    %c0_3 = arith.constant 0 : index
    %c0_4 = arith.constant 0 : index
    %3 = vector.load %arg2[%c0_2, %c0_3, %c0_4] : memref<3x256x128xbf16, #tpu.memory_space<vmem>>, vector<1x256x128xbf16>
    %4 = vector.shape_cast %3 : vector<1x256x128xbf16> to vector<256x128xbf16>
    %cst = arith.constant dense<0.000000e+00> : vector<16x128xf32>
    %5 = tpu.matmul %2, %4, %cst {dimension_numbers = #tpu.dot_dimension_numbers<[1], [0], [0], [1], [0, 0, 1, 1], [], []>} : vector<16x256xbf16>, vector<256x128xbf16>, vector<16x128xf32> -> vector<16x128xf32>
    %6 = vector.extract_strided_slice %1 {offsets = [1, 0], sizes = [16, 256], strides = [1, 1]} : vector<18x256xbf16> to vector<16x256xbf16>
    %c1 = arith.constant 1 : index
    %c0_5 = arith.constant 0 : index
    %c0_6 = arith.constant 0 : index
    %7 = vector.load %arg2[%c1, %c0_5, %c0_6] : memref<3x256x128xbf16, #tpu.memory_space<vmem>>, vector<1x256x128xbf16>
    %8 = vector.shape_cast %7 : vector<1x256x128xbf16> to vector<256x128xbf16>
    %cst_7 = arith.constant dense<0.000000e+00> : vector<16x128xf32>
    %9 = tpu.matmul %6, %8, %cst_7 {dimension_numbers = #tpu.dot_dimension_numbers<[1], [0], [0], [1], [0, 0, 1, 1], [], []>} : vector<16x256xbf16>, vector<256x128xbf16>, vector<16x128xf32> -> vector<16x128xf32>
    %10 = arith.addf %5, %9 : vector<16x128xf32>
    %11 = vector.extract_strided_slice %1 {offsets = [2, 0], sizes = [16, 256], strides = [1, 1]} : vector<18x256xbf16> to vector<16x256xbf16>
    %c2 = arith.constant 2 : index
    %c0_8 = arith.constant 0 : index
    %c0_9 = arith.constant 0 : index
    %12 = vector.load %arg2[%c2, %c0_8, %c0_9] : memref<3x256x128xbf16, #tpu.memory_space<vmem>>, vector<1x256x128xbf16>
    %13 = vector.shape_cast %12 : vector<1x256x128xbf16> to vector<256x128xbf16>
    %cst_10 = arith.constant dense<0.000000e+00> : vector<16x128xf32>
    %14 = tpu.matmul %11, %13, %cst_10 {dimension_numbers = #tpu.dot_dimension_numbers<[1], [0], [0], [1], [0, 0, 1, 1], [], []>} : vector<16x256xbf16>, vector<256x128xbf16>, vector<16x128xf32> -> vector<16x128xf32>
    %15 = arith.addf %10, %14 : vector<16x128xf32>
    %c0_11 = arith.constant 0 : index
    %c0_12 = arith.constant 0 : index
    %16 = vector.load %arg3[%c0_11, %c0_12] : memref<1x128xf32, #tpu.memory_space<vmem>>, vector<1x128xf32>
    %17 = vector.broadcast %16 : vector<1x128xf32> to vector<16x128xf32>
    %18 = arith.addf %15, %17 : vector<16x128xf32>
    %19 = arith.truncf %18 : vector<16x128xf32> to vector<16x128xbf16>
    %c0_13 = arith.constant 0 : index
    %c0_14 = arith.constant 0 : index
    %c0_15 = arith.constant 0 : index
    %20 = vector.load %arg4[%c0_13, %c0_14, %c0_15] : memref<1x16x128xbf16, #tpu.memory_space<vmem>>, vector<1x16x128xbf16>
    %21 = vector.shape_cast %20 : vector<1x16x128xbf16> to vector<16x128xbf16>
    %22 = vector.shape_cast %19 : vector<16x128xbf16> to vector<1x16x128xbf16>
    tpu.vector_store %arg4[%c0_13, %c0_14, %c0_15], %22 {strides = array<i32>} : memref<1x16x128xbf16, #tpu.memory_space<vmem>>, vector<1x16x128xbf16>,
    return
  }
  func.func @transform_0(%arg0: i32) -> (i32, i32, i32) {
    %c0_i32 = arith.constant 0 : i32
    %c0_i32_0 = arith.constant 0 : i32
    %c0_i32_1 = arith.constant 0 : i32
    return %arg0, %c0_i32, %c0_i32_0 : i32, i32, i32
  }
  func.func @transform_1(%arg0: i32) -> (i32, i32, i32) {
    %c0_i32 = arith.constant 0 : i32
    %c0_i32_0 = arith.constant 0 : i32
    %c0_i32_1 = arith.constant 0 : i32
    %c0_i32_2 = arith.constant 0 : i32
    return %c0_i32, %c0_i32_0, %c0_i32_1 : i32, i32, i32
  }
  func.func @transform_2(%arg0: i32) -> (i32, i32) {
    %c0_i32 = arith.constant 0 : i32
    %c0_i32_0 = arith.constant 0 : i32
    %c0_i32_1 = arith.constant 0 : i32
    return %c0_i32, %c0_i32_0 : i32, i32
  }
  func.func @transform_3(%arg0: i32) -> (i32, i32, i32) {
    %c0_i32 = arith.constant 0 : i32
    %c0_i32_0 = arith.constant 0 : i32
    %c0_i32_1 = arith.constant 0 : i32
    return %arg0, %c0_i32, %c0_i32_0 : i32, i32, i32
  }
}

</mosaic_0001>

<bundles_post_ra>
// kernel: tile.46
= control target key start
LH: loop header
LB: loop body
LE: loop exit
PB: predicated region body
PF: predicated region fallthrough
CT: control target
= control target key end

     0   :  { %s28_s0 = inlined_call_operand.vmem [shape: f32[8], index: 0, kind: input, shape index: {}]   ;;  %s29_s1 = inlined_call_operand.vmem [shape: f32[16,8], index: 1, kind: output, shape index: {}]  }
   0x1   :  { %v4_v0 = vld [vmem:[%s28_s0] ss:$0 sm:$0xff] }
   0x2   :  { %5 = vst [vmem:[%s29_s1] sm:$0xff] %v4_v0 }
   0x3   :  { %8 = vst [vmem:[%s29_s1 + $0x8] sm:$0xff] %v4_v0 }

// kernel: unet_forward.7
= control target key start
LH: loop header
LB: loop body
LE: loop exit
PB: predicated region body
PF: predicated region fallthrough
CT: control target
= control target key end

     0   :  { %s716_s12 = smov 0   ;;  %s812_s0 = inlined_call_operand.vmem [shape: bf16[2,18,128], index: 0, kind: input, shape index: {}]   ;;  %s813_s1 = inlined_call_operand.vmem [shape: bf16[3,128,128], index: 1, kind: input, shape index: {}]   ;;  %s814_s2 = inlined_call_operand.vmem [shape: f32[1,128], index: 2, kind: input, shape index: {}]   ;;  %s815_s3 = inlined_call_operand.vmem [shape: bf16[2,16,128], index: 3, kind: output, shape index: {}]  }
   0x1 LB: > { %s505_s13 = sadd.s32 4294967295, %s694_s12   ;;  %p509_p0 = scmp.ge.s32.totalorder %s694_s12, 1  ;;  %s694_s12 = sphi %s716_s12, %s13_s12  }
   0x2   : > { %p137_p1 = scmp.lt.s32.totalorder %s694_s12, 3 }
   0x4   : > { %p138_p2 = pnand %p509_p0, %p137_p1 }
   0x5   : > { %p161_p3 = scmp.lt.s32.totalorder (!%p138_p2), %s505_s13, 1 }
   0x6   : > { %141 = sbr.rel (%p138_p2) target bundleno = 192 (0xc0), region = 32 }
   0xb   : > { %v664_v0 = vld [vmem:[%s813_s1 + $0x78] sm:$0xff]  ;;  %v663_v3 = vld [vmem:[%s813_s1 + $0x70] sm:$0xff]  ;;  %s817_s13 = smov (!%p161_p3, %s505_s13), 1  ;;  %v662_v6 = vld [vmem:[%s813_s1 + $0x68] sm:$0xff]  ;;  %vm215_vm0 = vsmask.f32 7424 }
   0xc   : > { %v656_v1 = vld [vmem:[%s813_s1 + $0x38] sm:$0xff]  ;;  %277 = vmatpush.bf16.msra.mxu0 %v664_v0  ;;  %v655_v4 = vld [vmem:[%s813_s1 + $0x30] sm:$0xff]  ;;  %s678_s26 = smul.u32 12, %s817_s13  ;;  %v654_v7 = vld [vmem:[%s813_s1 + $0x28] sm:$0xff]  ;;  %vm371_vm1 = vcmask 1046528   ;;  %s647_s18 = sshll.u32 %s817_s13, 3 }
   0xd   : > { %v672_v2 = vld [vmem:[%s813_s1 + $0xb8] sm:$0xff]  ;;  %340 = vmatpush.bf16.msra.mxu1 %v656_v1  ;;  %v671_v5 = vld [vmem:[%s813_s1 + $0xb0] sm:$0xff]  ;;  %v670_v8 = vld [vmem:[%s813_s1 + $0xa8] sm:$0xff]  ;;  %s170_s21 = scalar_lea.vmem %s815_s3, %s647_s18 }
   0xe   : > { %424 = vmatpush.bf16.msra.mxu2 %v672_v2  ;;  %s165_s8 = scalar_lea.vmem %s812_s0, %s678_s26  ;;  %v661_v9 = vld [vmem:[%s813_s1 + $0x60] sm:$0xff]  ;;  %v660_v13 = vld [vmem:[%s813_s1 + $0x58] sm:$0xff]  ;;  %v659_v18 = vld [vmem:[%s813_s1 + $0x50] sm:$0xff] }
   0xf   : > { %v653_v10 = vld [vmem:[%s813_s1 + $0x20] sm:$0xff]  ;;  %v173_v12 = vld [vmem:[%s165_s8 + $0x8] sm:$0x1]  ;;  %v652_v14 = vld [vmem:[%s813_s1 + $0x18] sm:$0xff] }
  0x10   : > { %278 = vmatpush.bf16.msra.mxu0 %v663_v3  ;;  %v669_v11 = vld [vmem:[%s813_s1 + $0xa0] sm:$0xff]  ;;  %v212_v16 = vunpack.c.l.b16 %v173_v12  ;;  %v668_v17 = vld [vmem:[%s813_s1 + $0x98] sm:$0xff]  ;;  %v651_v19 = vld [vmem:[%s813_s1 + $0x10] sm:$0xff] }
  0x11   : > { %341 = vmatpush.bf16.msra.mxu1 %v655_v4  ;;  %v648_v15 = vld [vmem:[%s165_s8] sm:$0xff]  ;;  %v667_v22 = vld [vmem:[%s813_s1 + $0x90] sm:$0xff]  ;;  %v658_v23 = vld [vmem:[%s813_s1 + $0x48] sm:$0xff] }
  0x12   : > { %425 = vmatpush.bf16.msra.mxu2 %v671_v5  ;;  %v214_v20 = vpack.c.b16 %v212_v16, %v212_v16  ;;  %v219_v21 = vshll.u32 %v648_v15, 16  ;;  %v650_v24 = vld [vmem:[%s813_s1 + $0x8] sm:$0xff]  ;;  %v217_v25 = vshrl.u32 %v648_v15, 16  ;;  %v657_v29 = vld [vmem:[%s813_s1 + $0x40] sm:$0xff]  ;;  %v372_v34 = vrot.slane %v648_v15, 1 }
  0x13   : > { %v666_v28 = vld [vmem:[%s813_s1 + $0x88] sm:$0xff]  ;;  %v649_v30 = vld [vmem:[%s813_s1] sm:$0xff] }
  0x14   : > { %279 = vmatpush.bf16.msra.mxu0 %v662_v6  ;;  %v221_v26 = vrot.slane %v219_v21, 1  ;;  %v224_v27 = vshll.u32 %v214_v20, 16  ;;  %v665_v33 = vld [vmem:[%s813_s1 + $0x80] sm:$0xff]  ;;  %v373_v35 = vrot.slane %v214_v20, 1 }
  0x15   : > { %342 = vmatpush.bf16.msra.mxu1 %v654_v7  ;;  %v687_v45 = vld [vmem:[%s814_s2] ss:$0 sm:$0xff] }
  0x16   : > { %426 = vmatpush.bf16.msra.mxu2 %v670_v8  ;;  %v222_v31 = vor.u32 %v221_v26, %v217_v25  ;;  %v226_v32 = vrot.slane %v224_v27, 1  ;;  %v374_v37 = vsel %vm371_vm1, %v372_v34, %v373_v35 }
  0x18   : > { %280 = vmatpush.bf16.msra.mxu0 %v661_v9  ;;  %v227_v36 = vsel %vm215_vm0, %v222_v31, %v226_v32 }
  0x19   : > { %343 = vmatpush.bf16.msra.mxu1 %v653_v10 }
  0x1a   : > { %427 = vmatpush.bf16.msra.mxu2 %v669_v11 }
  0x1c   : > { %281 = vmatpush.bf16.msra.mxu0 %v660_v13 }
  0x1d   : > { %344 = vmatpush.bf16.msra.mxu1 %v652_v14 }
  0x1e   : > { %428 = vmatpush.bf16.msra.mxu2 %v668_v17 }
  0x20   : > { %282 = vmatpush.bf16.msra.mxu0 %v659_v18 }
  0x21   : > { %345 = vmatpush.bf16.msra.mxu1 %v651_v19 }
  0x22   : > { %429 = vmatpush.bf16.msra.mxu2 %v667_v22 }
  0x24   : > { %283 = vmatpush.bf16.msra.mxu0 %v658_v23 }
  0x25   : > { %346 = vmatpush.bf16.msra.mxu1 %v650_v24 }
  0x26   : > { %430 = vmatpush.bf16.msra.mxu2 %v666_v28 }
  0x28   : > { %284 = vmatpush.bf16.msra.mxu0 %v657_v29 }
  0x29   : > { %347 = vmatpush.bf16.msra.mxu1 %v649_v30 }
  0x2a   : > { %431 = vmatpush.bf16.msra.mxu2 %v665_v33 }
  0x2b   : > { %285 = vmatmul.bf16.vlgmr.msra.gmra.mxu0 %v227_v36 }
  0x2c   : > { %348 = vmatmul.bf16.vlgmr.msra.gmra.mxu1 %v648_v15 }
  0x2d   : > { %432 = vmatmul.bf16.vlgmr.msra.gmra.mxu2 %v374_v37 }
  0xa8   : > { %v286_v38 = vpop.f32.mrf.mxu0 }
  0xa9   : > { %v349_v39 = vpop.f32.mrf.mxu1 }
  0xaa   : > { %v350_v41 = vadd.f32 %v349_v39, %v286_v38 }
  0xb0   : > { %v433_v40 = vpop.f32.mrf.mxu2  ;;  %v288_v42 = vpop.f32.mrf.mxu0 }
  0xb1   : > { %v351_v43 = vpop.f32.mrf.mxu1  ;;  %v438_v44 = vadd.f32 %v433_v40, %v350_v41 }
  0xb2   : > { %v352_v46 = vadd.f32 %v351_v43, %v288_v42 }
  0xb3   : > { %v444_v49 = vadd.f32 %v687_v45, %v438_v44 }
  0xb8   : > { %v435_v47 = vpop.f32.mrf.mxu2 }
  0xb9   : > { %v439_v48 = vadd.f32 %v435_v47, %v352_v46 }
  0xbb   : > { %v445_v50 = vadd.f32 %v687_v45, %v439_v48 }
  0xbd   : > { %v676_v51 = vpack.c.bf16 %v445_v50, %v444_v49 }
  0xbf   : > { %677 = vst [vmem:[%s170_s21] sm:$0xff] %v676_v51  }
  0xc0 PF: > { %s13_s12 = sadd.s32 1, %s694_s12  }
  0xc1   : > { %p10_p4 = scmp.ge.s32.totalorder %s13_s12, 4  }
  0xc3   :  { %12 = sbr.rel (!%p10_p4) target bundleno = 1 (0x1), region = 64 }

// kernel: tile.51
= control target key start
LH: loop header
LB: loop body
LE: loop exit
PB: predicated region body
PF: predicated region fallthrough
CT: control target
= control target key end

     0   :  { %s22_s0 = inlined_call_operand.vmem [shape: f32[16], index: 0, kind: input, shape index: {}]   ;;  %s23_s1 = inlined_call_operand.vmem [shape: f32[8,16], index: 1, kind: output, shape index: {}]  }
   0x1   :  { %v4_v0 = vld [vmem:[%s22_s0] ss:$0 sm:$0xff] }
   0x2   :  { %5 = vst [vmem:[%s23_s1] sm:$0xff] %v4_v0 }

// kernel: unet_forward.8
= control target key start
LH: loop header
LB: loop body
LE: loop exit
PB: predicated region body
PF: predicated region fallthrough
CT: control target
= control target key end

     0   :  { %s1074_s12 = smov 0   ;;  %s1257_s0 = inlined_call_operand.vmem [shape: bf16[2,9,384], index: 0, kind: input, shape index: {}]   ;;  %s1258_s1 = inlined_call_operand.vmem [shape: bf16[2,384,128], index: 1, kind: input, shape index: {}]   ;;  %s1259_s2 = inlined_call_operand.vmem [shape: f32[1,128], index: 2, kind: input, shape index: {}]   ;;  %s1260_s3 = inlined_call_operand.vmem [shape: bf16[2,8,128], index: 3, kind: output, shape index: {}]  }
   0x1 LB: > { %s739_s13 = sadd.s32 4294967295, %s1052_s12   ;;  %p743_p0 = scmp.ge.s32.totalorder %s1052_s12, 1  ;;  %s1052_s12 = sphi %s1074_s12, %s13_s12  }
   0x2   : > { %p137_p1 = scmp.lt.s32.totalorder %s1052_s12, 3 }
   0x4   : > { %p138_p2 = pnand %p743_p0, %p137_p1 }
   0x5   : > { %p160_p3 = scmp.lt.s32.totalorder (!%p138_p2), %s739_s13, 1 }
   0x6   : > { %141 = sbr.rel (%p138_p2) target bundleno = 210 (0xd2), region = 32 }
   0xb   : > { %v1019_v0 = vld [vmem:[%s1258_s1 + $0xf8] sm:$0xff]  ;;  %v1018_v2 = vld [vmem:[%s1258_s1 + $0xf0] sm:$0xff]  ;;  %s1262_s13 = smov (!%p160_p3, %s739_s13), 1  ;;  %v1017_v8 = vld [vmem:[%s1258_s1 + $0xe8] sm:$0xff] }
   0xc   : > { %v1027_v1 = vld [vmem:[%s1258_s1 + $0x138] sm:$0xff]  ;;  %451 = vmatpush.bf16.msra.mxu0 %v1019_v0  ;;  %v1026_v3 = vld [vmem:[%s1258_s1 + $0x130] sm:$0xff]  ;;  %s1036_s30 = smul.u32 24, %s1262_s13  ;;  %v1025_v9 = vld [vmem:[%s1258_s1 + $0x128] sm:$0xff] }
   0xd   : > { %464 = vmatpush.bf16.msra.mxu1 %v1027_v1  ;;  %v1035_v4 = vld [vmem:[%s1258_s1 + $0x178] sm:$0xff]  ;;  %v1034_v6 = vld [vmem:[%s1258_s1 + $0x170] sm:$0xff]  ;;  %v1033_v10 = vld [vmem:[%s1258_s1 + $0x168] sm:$0xff] }
   0xe   : > { %v995_v5 = vld [vmem:[%s1258_s1 + $0x38] sm:$0xff]  ;;  %477 = vmatpush.bf16.msra.mxu2 %v1035_v4  ;;  %v994_v7 = vld [vmem:[%s1258_s1 + $0x30] sm:$0xff]  ;;  %v993_v11 = vld [vmem:[%s1258_s1 + $0x28] sm:$0xff]  ;;  %s164_s16 = scalar_lea.vmem %s1257_s0, %s1036_s30 }
   0xf   : > { %640 = vmatpush.bf16.msra.mxu3 %v995_v5  ;;  %v1016_v12 = vld [vmem:[%s1258_s1 + $0xe0] sm:$0xff]  ;;  %v171_v15 = vld [vmem:[%s164_s16 + $0xc] sm:$0x11]  ;;  %v170_v22 = vld [vmem:[%s164_s16 + $0x8] sm:$0xf] }
  0x10   : > { %452 = vmatpush.bf16.msra.mxu0 %v1018_v2  ;;  %v1024_v13 = vld [vmem:[%s1258_s1 + $0x120] sm:$0xff]  ;;  %v277_v19 = vunpack.c.l.b16 %v171_v15  ;;  %v278_v21 = vunpack.c.h.b16 %v171_v15  ;;  %v172_v23 = vld [vmem:[%s164_s16 + $0x14] sm:$0x1]  ;;  %v1015_v24 = vld [vmem:[%s1258_s1 + $0xd8] sm:$0xff]  ;;  %v1152_v28 = vunpack.c.l.b16 %v170_v22 }
  0x11   : > { %465 = vmatpush.bf16.msra.mxu1 %v1026_v3  ;;  %v169_v14 = vld [vmem:[%s164_s16] sm:$0xff]  ;;  %v1023_v25 = vld [vmem:[%s1258_s1 + $0x118] sm:$0xff]  ;;  %v279_v29 = vunpack.c.l.b16 %v172_v23  ;;  %v1014_v32 = vld [vmem:[%s1258_s1 + $0xd0] sm:$0xff]  ;;  %s745_s16 = sshll.u32 %s1262_s13, 2 }
  0x12   : > { %478 = vmatpush.bf16.msra.mxu2 %v1034_v6  ;;  %v1032_v16 = vld [vmem:[%s1258_s1 + $0x160] sm:$0xff]  ;;  %v1136_v18 = vunpack.c.l.b16 %v169_v14  ;;  %v1138_v20 = vunpack.c.h.b16 %v169_v14  ;;  %v1031_v26 = vld [vmem:[%s1258_s1 + $0x158] sm:$0xff]  ;;  %v1022_v33 = vld [vmem:[%s1258_s1 + $0x110] sm:$0xff]  ;;  %s168_s19 = scalar_lea.vmem %s1260_s3, %s745_s16 }
  0x13   : > { %641 = vmatpush.bf16.msra.mxu3 %v994_v7  ;;  %v992_v17 = vld [vmem:[%s1258_s1 + $0x20] sm:$0xff]  ;;  %v991_v27 = vld [vmem:[%s1258_s1 + $0x18] sm:$0xff]  ;;  %v1030_v34 = vld [vmem:[%s1258_s1 + $0x150] sm:$0xff]  ;;  %v282_v36 = vpack.c.b16 %v279_v29, %v1152_v28 }
  0x14   : > { %453 = vmatpush.bf16.msra.mxu0 %v1017_v8  ;;  %v280_v30 = vpack.c.b16 %v277_v19, %v1136_v18  ;;  %v281_v31 = vpack.c.b16 %v278_v21, %v1138_v20  ;;  %v990_v35 = vld [vmem:[%s1258_s1 + $0x10] sm:$0xff]  ;;  %v1013_v39 = vld [vmem:[%s1258_s1 + $0xc8] sm:$0xff]  ;;  %v1012_v48 = vld [vmem:[%s1258_s1 + $0xc0] sm:$0xff]  ;;  %v490_v61 = vpack.c.b16 %v1136_v18, %v1136_v18 }
  0x15   : > { %466 = vmatpush.bf16.msra.mxu1 %v1025_v9  ;;  %v1021_v40 = vld [vmem:[%s1258_s1 + $0x108] sm:$0xff]  ;;  %v300_v43 = vshll.u32 %v282_v36, 16  ;;  %v1020_v49 = vld [vmem:[%s1258_s1 + $0x100] sm:$0xff]  ;;  %v1003_v50 = vld [vmem:[%s1258_s1 + $0x78] sm:$0xff]  ;;  %v298_v54 = vshrl.u32 %v282_v36, 16 }
  0x16   : > { %479 = vmatpush.bf16.msra.mxu2 %v1033_v10  ;;  %v286_v37 = vshll.u32 %v280_v30, 16  ;;  %v293_v38 = vshll.u32 %v281_v31, 16  ;;  %v1029_v41 = vld [vmem:[%s1258_s1 + $0x148] sm:$0xff]  ;;  %v284_v44 = vshrl.u32 %v280_v30, 16  ;;  %v291_v46 = vshrl.u32 %v281_v31, 16  ;;  %v1011_v51 = vld [vmem:[%s1258_s1 + $0xb8] sm:$0xff] }
  0x17   : > { %642 = vmatpush.bf16.msra.mxu3 %v993_v11  ;;  %v989_v42 = vld [vmem:[%s1258_s1 + $0x8] sm:$0xff]  ;;  %v1028_v52 = vld [vmem:[%s1258_s1 + $0x140] sm:$0xff]  ;;  %v302_v55 = vrot.slane %v300_v43, 1  ;;  %v1002_v58 = vld [vmem:[%s1258_s1 + $0x70] sm:$0xff]  ;;  %v491_v10 = vpack.c.b16 %v1138_v20, %v1138_v20  ;;  %v492_v11 = vpack.c.b16 %v1152_v28, %v1152_v28 }
  0x18   : > { %454 = vmatpush.bf16.msra.mxu0 %v1016_v12  ;;  %v288_v45 = vrot.slane %v286_v37, 1  ;;  %v295_v47 = vrot.slane %v293_v38, 1  ;;  %v988_v53 = vld [vmem:[%s1258_s1] sm:$0xff]  ;;  %v1010_v59 = vld [vmem:[%s1258_s1 + $0xb0] sm:$0xff]  ;;  %v1001_v62 = vld [vmem:[%s1258_s1 + $0x68] sm:$0xff] }
  0x19   : > { %467 = vmatpush.bf16.msra.mxu1 %v1024_v13  ;;  %v303_v60 = vor.u32 %v302_v55, %v298_v54  ;;  %v1009_v63 = vld [vmem:[%s1258_s1 + $0xa8] sm:$0xff]  ;;  %v1000_v0 = vld [vmem:[%s1258_s1 + $0x60] sm:$0xff]  ;;  %v999_v2 = vld [vmem:[%s1258_s1 + $0x58] sm:$0xff] }
  0x1a   : > { %480 = vmatpush.bf16.msra.mxu2 %v1032_v16  ;;  %v289_v56 = vor.u32 %v288_v45, %v284_v44  ;;  %v296_v57 = vor.u32 %v295_v47, %v291_v46  ;;  %v1008_v1 = vld [vmem:[%s1258_s1 + $0xa0] sm:$0xff]  ;;  %v1007_v3 = vld [vmem:[%s1258_s1 + $0x98] sm:$0xff]  ;;  %v998_v4 = vld [vmem:[%s1258_s1 + $0x50] sm:$0xff] }
  0x1b   : > { %643 = vmatpush.bf16.msra.mxu3 %v992_v17  ;;  %v1006_v5 = vld [vmem:[%s1258_s1 + $0x90] sm:$0xff]  ;;  %v997_v6 = vld [vmem:[%s1258_s1 + $0x48] sm:$0xff]  ;;  %v996_v8 = vld [vmem:[%s1258_s1 + $0x40] sm:$0xff] }
  0x1c   : > { %455 = vmatpush.bf16.msra.mxu0 %v1015_v24  ;;  %v1005_v7 = vld [vmem:[%s1258_s1 + $0x88] sm:$0xff]  ;;  %v1004_v9 = vld [vmem:[%s1258_s1 + $0x80] sm:$0xff] }
  0x1d   : > { %468 = vmatpush.bf16.msra.mxu1 %v1023_v25 }
  0x1e   : > { %481 = vmatpush.bf16.msra.mxu2 %v1031_v26  ;;  %v1045_v26 = vld [vmem:[%s1259_s2] ss:$0 sm:$0xff] }
  0x1f   : > { %644 = vmatpush.bf16.msra.mxu3 %v991_v27 }
  0x20   : > { %456 = vmatpush.bf16.msra.mxu0 %v1014_v32 }
  0x21   : > { %469 = vmatpush.bf16.msra.mxu1 %v1022_v33 }
  0x22   : > { %482 = vmatpush.bf16.msra.mxu2 %v1030_v34 }
  0x23   : > { %645 = vmatpush.bf16.msra.mxu3 %v990_v35 }
  0x24   : > { %457 = vmatpush.bf16.msra.mxu0 %v1013_v39 }
  0x25   : > { %470 = vmatpush.bf16.msra.mxu1 %v1021_v40 }
  0x26   : > { %483 = vmatpush.bf16.msra.mxu2 %v1029_v41 }
  0x27   : > { %646 = vmatpush.bf16.msra.mxu3 %v989_v42 }
  0x28   : > { %458 = vmatpush.bf16.msra.mxu0 %v1012_v48 }
  0x29   : > { %471 = vmatpush.bf16.msra.mxu1 %v1020_v49 }
  0x2a   : > { %484 = vmatpush.bf16.msra.mxu2 %v1028_v52 }
  0x2b   : > { %647 = vmatpush.bf16.msra.mxu3 %v988_v53  ;;  %459 = vmatmul.bf16.vlgmr.msra.gmra.mxu0 %v289_v56 }
  0x2c   : > { %653 = vmatpush.bf16.msrb.mxu0 %v1003_v50  ;;  %472 = vmatmul.bf16.vlgmr.msra.gmra.mxu1 %v296_v57 }
  0x2d   : > { %666 = vmatpush.bf16.msrb.mxu1 %v1011_v51  ;;  %485 = vmatmul.bf16.vlgmr.msra.gmra.mxu2 %v303_v60 }
  0x2e   : > { %648 = vmatmul.bf16.vlgmr.msra.gmra.mxu3 %v490_v61 }
  0x30   : > { %654 = vmatpush.bf16.msrb.mxu0 %v1002_v58 }
  0x31   : > { %667 = vmatpush.bf16.msrb.mxu1 %v1010_v59 }
  0x34   : > { %655 = vmatpush.bf16.msrb.mxu0 %v1001_v62 }
  0x35   : > { %668 = vmatpush.bf16.msrb.mxu1 %v1009_v63 }
  0x38   : > { %656 = vmatpush.bf16.msrb.mxu0 %v1000_v0 }
  0x39   : > { %669 = vmatpush.bf16.msrb.mxu1 %v1008_v1 }
  0x3c   : > { %657 = vmatpush.bf16.msrb.mxu0 %v999_v2 }
  0x3d   : > { %670 = vmatpush.bf16.msrb.mxu1 %v1007_v3 }
  0x40   : > { %658 = vmatpush.bf16.msrb.mxu0 %v998_v4 }
  0x41   : > { %671 = vmatpush.bf16.msrb.mxu1 %v1006_v5 }
  0x44   : > { %659 = vmatpush.bf16.msrb.mxu0 %v997_v6 }
  0x45   : > { %672 = vmatpush.bf16.msrb.mxu1 %v1005_v7 }
  0x48   : > { %660 = vmatpush.bf16.msrb.mxu0 %v996_v8 }
  0x49   : > { %673 = vmatpush.bf16.msrb.mxu1 %v1004_v9 }
  0x4b   : > { %661 = vmatmul.bf16.vlgmr.msrb.gmra.mxu0 %v491_v10 }
  0x4c   : > { %674 = vmatmul.bf16.vlgmr.msrb.gmra.mxu1 %v492_v11 }
  0xa8   : > { %v460_v12 = vpop.f32.mrf.mxu0 }
  0xa9   : > { %v473_v13 = vpop.f32.mrf.mxu1 }
  0xaa   : > { %v474_v21 = vadd.f32 %v473_v13, %v460_v12 }
  0xb0   : > { %v462_v14 = vpop.f32.mrf.mxu0  ;;  %v486_v16 = vpop.f32.mrf.mxu2 }
  0xb1   : > { %v475_v15 = vpop.f32.mrf.mxu1  ;;  %v649_v17 = vpop.f32.mrf.mxu3  ;;  %v487_v22 = vadd.f32 %v486_v16, %v474_v21 }
  0xb3   : > { %v650_v23 = vadd.f32 %v649_v17, %v487_v22 }
  0xb8   : > { %v488_v18 = vpop.f32.mrf.mxu2 }
  0xb9   : > { %v651_v19 = vpop.f32.mrf.mxu3 }
  0xc8   : > { %v662_v20 = vpop.f32.mrf.mxu0 }
  0xc9   : > { %v675_v24 = vpop.f32.mrf.mxu1  ;;  %v663_v25 = vadd.f32 %v662_v20, %v650_v23 }
  0xcb   : > { %v676_v27 = vadd.f32 %v675_v24, %v663_v25 }
  0xcd   : > { %v683_v28 = vadd.f32 %v1045_v26, %v676_v27 }
  0xcf   : > { %v684_v29 = vpack.c.bf16 %v683_v28, %v683_v28 }
  0xd0   : > { %v664_v30 = vpop.f32.mrf.mxu0 }
  0xd1   : > { %v677_v31 = vpop.f32.mrf.mxu1  ;;  %685 = vst [vmem:[%s168_s19] sm:$0xf] %v684_v29 }
  0xd2 PF: > { %s13_s12 = sadd.s32 1, %s1052_s12  }
  0xd3   : > { %p10_p4 = scmp.ge.s32.totalorder %s13_s12, 4  }
  0xd5   :  { %12 = sbr.rel (!%p10_p4) target bundleno = 1 (0x1), region = 63 }

// kernel: tile.56
= control target key start
LH: loop header
LB: loop body
LE: loop exit
PB: predicated region body
PF: predicated region fallthrough
CT: control target
= control target key end

     0   :  { %s22_s0 = inlined_call_operand.vmem [shape: f32[32], index: 0, kind: input, shape index: {}]   ;;  %s23_s1 = inlined_call_operand.vmem [shape: f32[4,32], index: 1, kind: output, shape index: {}]  }
   0x1   :  { %v4_v0 = vld [vmem:[%s22_s0] ss:$0 sm:$0xff] }
   0x2   :  { %5 = vst [vmem:[%s23_s1] sm:$0xf] %v4_v0 }

// kernel: unet_forward.9
= control target key start
LH: loop header
LB: loop body
LE: loop exit
PB: predicated region body
PF: predicated region fallthrough
CT: control target
= control target key end

     0   :  { %s1064_s12 = smov 0   ;;  %s1242_s0 = inlined_call_operand.vmem [shape: bf16[2,5,384], index: 0, kind: input, shape index: {}]   ;;  %s1243_s1 = inlined_call_operand.vmem [shape: bf16[2,384,128], index: 1, kind: input, shape index: {}]   ;;  %s1244_s2 = inlined_call_operand.vmem [shape: f32[1,128], index: 2, kind: input, shape index: {}]   ;;  %s1245_s3 = inlined_call_operand.vmem [shape: bf16[2,4,128], index: 3, kind: output, shape index: {}]  }
   0x1 LB: > { %s729_s13 = sadd.s32 4294967295, %s1042_s12   ;;  %p733_p0 = scmp.ge.s32.totalorder %s1042_s12, 1  ;;  %s1042_s12 = sphi %s1064_s12, %s13_s12  }
   0x2   : > { %p137_p1 = scmp.lt.s32.totalorder %s1042_s12, 3 }
   0x4   : > { %p138_p2 = pnand %p733_p0, %p137_p1 }
   0x5   : > { %p160_p3 = scmp.lt.s32.totalorder (!%p138_p2), %s729_s13, 1 }
   0x6   : > { %141 = sbr.rel (%p138_p2) target bundleno = 210 (0xd2), region = 32 }
   0xb   : > { %v1009_v0 = vld [vmem:[%s1243_s1 + $0xf8] sm:$0xff]  ;;  %v1008_v2 = vld [vmem:[%s1243_s1 + $0xf0] sm:$0xff]  ;;  %s1247_s13 = smov (!%p160_p3, %s729_s13), 1  ;;  %v1007_v8 = vld [vmem:[%s1243_s1 + $0xe8] sm:$0xff] }
   0xc   : > { %v1017_v1 = vld [vmem:[%s1243_s1 + $0x138] sm:$0xff]  ;;  %444 = vmatpush.bf16.msra.mxu0 %v1009_v0  ;;  %v1016_v3 = vld [vmem:[%s1243_s1 + $0x130] sm:$0xff]  ;;  %s1026_s30 = smul.u32 12, %s1247_s13  ;;  %v1015_v9 = vld [vmem:[%s1243_s1 + $0x128] sm:$0xff] }
   0xd   : > { %457 = vmatpush.bf16.msra.mxu1 %v1017_v1  ;;  %v1025_v4 = vld [vmem:[%s1243_s1 + $0x178] sm:$0xff]  ;;  %v1024_v6 = vld [vmem:[%s1243_s1 + $0x170] sm:$0xff]  ;;  %v1023_v10 = vld [vmem:[%s1243_s1 + $0x168] sm:$0xff] }
   0xe   : > { %v985_v5 = vld [vmem:[%s1243_s1 + $0x38] sm:$0xff]  ;;  %470 = vmatpush.bf16.msra.mxu2 %v1025_v4  ;;  %v984_v7 = vld [vmem:[%s1243_s1 + $0x30] sm:$0xff]  ;;  %v983_v11 = vld [vmem:[%s1243_s1 + $0x28] sm:$0xff]  ;;  %s164_s16 = scalar_lea.vmem %s1242_s0, %s1026_s30 }
   0xf   : > { %630 = vmatpush.bf16.msra.mxu3 %v985_v5  ;;  %v1006_v12 = vld [vmem:[%s1243_s1 + $0xe0] sm:$0xff]  ;;  %v170_v19 = vld [vmem:[%s164_s16 + $0x8] sm:$0x7]  ;;  %v1005_v20 = vld [vmem:[%s1243_s1 + $0xd8] sm:$0xff] }
  0x10   : > { %445 = vmatpush.bf16.msra.mxu0 %v1008_v2  ;;  %v1014_v13 = vld [vmem:[%s1243_s1 + $0x120] sm:$0xff]  ;;  %v1013_v21 = vld [vmem:[%s1243_s1 + $0x118] sm:$0xff]  ;;  %v272_v24 = vunpack.c.l.b16 %v170_v19  ;;  %v1004_v27 = vld [vmem:[%s1243_s1 + $0xd0] sm:$0xff] }
  0x11   : > { %458 = vmatpush.bf16.msra.mxu1 %v1016_v3  ;;  %v169_v14 = vld [vmem:[%s164_s16] sm:$0x77]  ;;  %v1021_v22 = vld [vmem:[%s1243_s1 + $0x158] sm:$0xff]  ;;  %v1012_v28 = vld [vmem:[%s1243_s1 + $0x110] sm:$0xff]  ;;  %s735_s16 = sshll.u32 %s1247_s13, 1 }
  0x12   : > { %471 = vmatpush.bf16.msra.mxu2 %v1024_v6  ;;  %v1022_v15 = vld [vmem:[%s1243_s1 + $0x160] sm:$0xff]  ;;  %v270_v17 = vunpack.c.l.b16 %v169_v14  ;;  %v271_v18 = vunpack.c.h.b16 %v169_v14  ;;  %v981_v23 = vld [vmem:[%s1243_s1 + $0x18] sm:$0xff]  ;;  %v1020_v29 = vld [vmem:[%s1243_s1 + $0x150] sm:$0xff]  ;;  %v1152_v31 = vpack.c.b16 %v272_v24, %v272_v24  ;;  %s168_s19 = scalar_lea.vmem %s1245_s3, %s735_s16 }
  0x13   : > { %631 = vmatpush.bf16.msra.mxu3 %v984_v7  ;;  %v982_v16 = vld [vmem:[%s1243_s1 + $0x20] sm:$0xff]  ;;  %v980_v30 = vld [vmem:[%s1243_s1 + $0x10] sm:$0xff]  ;;  %v1003_v34 = vld [vmem:[%s1243_s1 + $0xc8] sm:$0xff] }
  0x14   : > { %446 = vmatpush.bf16.msra.mxu0 %v1007_v8  ;;  %v273_v25 = vpack.c.b16 %v270_v17, %v270_v17  ;;  %v1138_v26 = vpack.c.b16 %v271_v18, %v271_v18  ;;  %v1011_v35 = vld [vmem:[%s1243_s1 + $0x108] sm:$0xff]  ;;  %v293_v38 = vshll.u32 %v1152_v31, 16  ;;  %v1002_v43 = vld [vmem:[%s1243_s1 + $0xc0] sm:$0xff]  ;;  %v993_v45 = vld [vmem:[%s1243_s1 + $0x78] sm:$0xff]  ;;  %v291_v49 = vshrl.u32 %v1152_v31, 16 }
  0x15   : > { %459 = vmatpush.bf16.msra.mxu1 %v1015_v9  ;;  %v1019_v36 = vld [vmem:[%s1243_s1 + $0x148] sm:$0xff]  ;;  %v1010_v44 = vld [vmem:[%s1243_s1 + $0x100] sm:$0xff]  ;;  %v1001_v46 = vld [vmem:[%s1243_s1 + $0xb8] sm:$0xff] }
  0x16   : > { %472 = vmatpush.bf16.msra.mxu2 %v1023_v10  ;;  %v279_v32 = vshll.u32 %v273_v25, 16  ;;  %v286_v33 = vshll.u32 %v1138_v26, 16  ;;  %v979_v37 = vld [vmem:[%s1243_s1 + $0x8] sm:$0xff]  ;;  %v277_v39 = vshrl.u32 %v273_v25, 16  ;;  %v284_v41 = vshrl.u32 %v1138_v26, 16  ;;  %v1018_v47 = vld [vmem:[%s1243_s1 + $0x140] sm:$0xff] }
  0x17   : > { %632 = vmatpush.bf16.msra.mxu3 %v983_v11  ;;  %v978_v48 = vld [vmem:[%s1243_s1] sm:$0xff]  ;;  %v295_v50 = vrot.slane %v293_v38, 1  ;;  %v992_v53 = vld [vmem:[%s1243_s1 + $0x70] sm:$0xff]  ;;  %v991_v56 = vld [vmem:[%s1243_s1 + $0x68] sm:$0xff] }
  0x18   : > { %447 = vmatpush.bf16.msra.mxu0 %v1006_v12  ;;  %v281_v40 = vrot.slane %v279_v32, 1  ;;  %v288_v42 = vrot.slane %v286_v33, 1  ;;  %v1000_v54 = vld [vmem:[%s1243_s1 + $0xb0] sm:$0xff]  ;;  %v999_v57 = vld [vmem:[%s1243_s1 + $0xa8] sm:$0xff]  ;;  %v990_v58 = vld [vmem:[%s1243_s1 + $0x60] sm:$0xff] }
  0x19   : > { %460 = vmatpush.bf16.msra.mxu1 %v1014_v13  ;;  %v296_v55 = vor.u32 %v295_v50, %v291_v49  ;;  %v998_v59 = vld [vmem:[%s1243_s1 + $0xa0] sm:$0xff]  ;;  %v989_v60 = vld [vmem:[%s1243_s1 + $0x58] sm:$0xff]  ;;  %v988_v62 = vld [vmem:[%s1243_s1 + $0x50] sm:$0xff] }
  0x1a   : > { %473 = vmatpush.bf16.msra.mxu2 %v1022_v15  ;;  %v282_v51 = vor.u32 %v281_v40, %v277_v39  ;;  %v289_v52 = vor.u32 %v288_v42, %v284_v41  ;;  %v997_v61 = vld [vmem:[%s1243_s1 + $0x98] sm:$0xff]  ;;  %v996_v63 = vld [vmem:[%s1243_s1 + $0x90] sm:$0xff]  ;;  %v987_v0 = vld [vmem:[%s1243_s1 + $0x48] sm:$0xff] }
  0x1b   : > { %633 = vmatpush.bf16.msra.mxu3 %v982_v16  ;;  %v995_v1 = vld [vmem:[%s1243_s1 + $0x88] sm:$0xff]  ;;  %v986_v2 = vld [vmem:[%s1243_s1 + $0x40] sm:$0xff] }
  0x1c   : > { %448 = vmatpush.bf16.msra.mxu0 %v1005_v20  ;;  %v994_v3 = vld [vmem:[%s1243_s1 + $0x80] sm:$0xff] }
  0x1d   : > { %461 = vmatpush.bf16.msra.mxu1 %v1013_v21  ;;  %v1035_v18 = vld [vmem:[%s1244_s2] ss:$0 sm:$0xff] }
  0x1e   : > { %474 = vmatpush.bf16.msra.mxu2 %v1021_v22 }
  0x1f   : > { %634 = vmatpush.bf16.msra.mxu3 %v981_v23 }
  0x20   : > { %449 = vmatpush.bf16.msra.mxu0 %v1004_v27 }
  0x21   : > { %462 = vmatpush.bf16.msra.mxu1 %v1012_v28 }
  0x22   : > { %475 = vmatpush.bf16.msra.mxu2 %v1020_v29 }
  0x23   : > { %635 = vmatpush.bf16.msra.mxu3 %v980_v30 }
  0x24   : > { %450 = vmatpush.bf16.msra.mxu0 %v1003_v34 }
  0x25   : > { %463 = vmatpush.bf16.msra.mxu1 %v1011_v35 }
  0x26   : > { %476 = vmatpush.bf16.msra.mxu2 %v1019_v36 }
  0x27   : > { %636 = vmatpush.bf16.msra.mxu3 %v979_v37 }
  0x28   : > { %451 = vmatpush.bf16.msra.mxu0 %v1002_v43 }
  0x29   : > { %464 = vmatpush.bf16.msra.mxu1 %v1010_v44 }
  0x2a   : > { %477 = vmatpush.bf16.msra.mxu2 %v1018_v47 }
  0x2b   : > { %637 = vmatpush.bf16.msra.mxu3 %v978_v48  ;;  %452 = vmatmul.bf16.vlgmr.msra.gmra.mxu0 %v282_v51 }
  0x2c   : > { %643 = vmatpush.bf16.msrb.mxu0 %v993_v45  ;;  %465 = vmatmul.bf16.vlgmr.msra.gmra.mxu1 %v289_v52 }
  0x2d   : > { %656 = vmatpush.bf16.msrb.mxu1 %v1001_v46  ;;  %478 = vmatmul.bf16.vlgmr.msra.gmra.mxu2 %v296_v55 }
  0x2e   : > { %638 = vmatmul.bf16.vlgmr.msra.gmra.mxu3 %v273_v25 }
  0x30   : > { %644 = vmatpush.bf16.msrb.mxu0 %v992_v53 }
  0x31   : > { %657 = vmatpush.bf16.msrb.mxu1 %v1000_v54 }
  0x34   : > { %645 = vmatpush.bf16.msrb.mxu0 %v991_v56 }
  0x35   : > { %658 = vmatpush.bf16.msrb.mxu1 %v999_v57 }
  0x38   : > { %646 = vmatpush.bf16.msrb.mxu0 %v990_v58 }
  0x39   : > { %659 = vmatpush.bf16.msrb.mxu1 %v998_v59 }
  0x3c   : > { %647 = vmatpush.bf16.msrb.mxu0 %v989_v60 }
  0x3d   : > { %660 = vmatpush.bf16.msrb.mxu1 %v997_v61 }
  0x40   : > { %648 = vmatpush.bf16.msrb.mxu0 %v988_v62 }
  0x41   : > { %661 = vmatpush.bf16.msrb.mxu1 %v996_v63 }
  0x44   : > { %649 = vmatpush.bf16.msrb.mxu0 %v987_v0 }
  0x45   : > { %662 = vmatpush.bf16.msrb.mxu1 %v995_v1 }
  0x48   : > { %650 = vmatpush.bf16.msrb.mxu0 %v986_v2 }
  0x49   : > { %663 = vmatpush.bf16.msrb.mxu1 %v994_v3 }
  0x4b   : > { %651 = vmatmul.bf16.vlgmr.msrb.gmra.mxu0 %v1138_v26 }
  0x4c   : > { %664 = vmatmul.bf16.vlgmr.msrb.gmra.mxu1 %v1152_v31 }
  0xa8   : > { %v453_v4 = vpop.f32.mrf.mxu0 }
  0xa9   : > { %v466_v5 = vpop.f32.mrf.mxu1 }
  0xaa   : > { %v467_v12 = vadd.f32 %v466_v5, %v453_v4 }
  0xb0   : > { %v455_v6 = vpop.f32.mrf.mxu0  ;;  %v479_v8 = vpop.f32.mrf.mxu2 }
  0xb1   : > { %v468_v7 = vpop.f32.mrf.mxu1  ;;  %v639_v9 = vpop.f32.mrf.mxu3  ;;  %v480_v13 = vadd.f32 %v479_v8, %v467_v12 }
  0xb3   : > { %v640_v14 = vadd.f32 %v639_v9, %v480_v13 }
  0xb8   : > { %v481_v10 = vpop.f32.mrf.mxu2 }
  0xb9   : > { %v641_v11 = vpop.f32.mrf.mxu3 }
  0xc8   : > { %v652_v15 = vpop.f32.mrf.mxu0 }
  0xc9   : > { %v665_v16 = vpop.f32.mrf.mxu1  ;;  %v653_v17 = vadd.f32 %v652_v15, %v640_v14 }
  0xcb   : > { %v666_v19 = vadd.f32 %v665_v16, %v653_v17 }
  0xcd   : > { %v673_v20 = vadd.f32 %v1035_v18, %v666_v19 }
  0xcf   : > { %v674_v21 = vpack.c.bf16 %v673_v20, %v673_v20 }
  0xd0   : > { %v654_v22 = vpop.f32.mrf.mxu0 }
  0xd1   : > { %v667_v23 = vpop.f32.mrf.mxu1  ;;  %675 = vst [vmem:[%s168_s19] sm:$0x3] %v674_v21 }
  0xd2 PF: > { %s13_s12 = sadd.s32 1, %s1042_s12  }
  0xd3   : > { %p10_p4 = scmp.ge.s32.totalorder %s13_s12, 4  }
  0xd5   :  { %12 = sbr.rel (!%p10_p4) target bundleno = 1 (0x1), region = 63 }

// kernel: unet_forward.10
= control target key start
LH: loop header
LB: loop body
LE: loop exit
PB: predicated region body
PF: predicated region fallthrough
CT: control target
= control target key end

     0   :  { %s1074_s12 = smov 0   ;;  %s1254_s0 = inlined_call_operand.vmem [shape: bf16[2,6,256], index: 0, kind: input, shape index: {}]   ;;  %s1255_s1 = inlined_call_operand.vmem [shape: bf16[3,256,128], index: 1, kind: input, shape index: {}]   ;;  %s1256_s2 = inlined_call_operand.vmem [shape: f32[1,128], index: 2, kind: input, shape index: {}]   ;;  %s1257_s3 = inlined_call_operand.vmem [shape: bf16[2,4,128], index: 3, kind: output, shape index: {}]  }
   0x1 LB: > { %s722_s13 = sadd.s32 4294967295, %s1052_s12   ;;  %p726_p0 = scmp.ge.s32.totalorder %s1052_s12, 1  ;;  %s1052_s12 = sphi %s1074_s12, %s13_s12  }
   0x2   : > { %p137_p1 = scmp.lt.s32.totalorder %s1052_s12, 3 }
   0x4   : > { %p138_p2 = pnand %p726_p0, %p137_p1 }
   0x5   : > { %p160_p3 = scmp.lt.s32.totalorder (!%p138_p2), %s722_s13, 1 }
   0x6   : > { %141 = sbr.rel (%p138_p2) target bundleno = 211 (0xd3), region = 32 }
   0xb   : > { %v1012_v0 = vld [vmem:[%s1255_s1 + $0xb8] sm:$0xff]  ;;  %v1011_v2 = vld [vmem:[%s1255_s1 + $0xb0] sm:$0xff]  ;;  %s1259_s13 = smov (!%p160_p3, %s722_s13), 1  ;;  %v1010_v8 = vld [vmem:[%s1255_s1 + $0xa8] sm:$0xff] }
   0xc   : > { %v1020_v1 = vld [vmem:[%s1255_s1 + $0xf8] sm:$0xff]  ;;  %352 = vmatpush.bf16.msra.mxu0 %v1012_v0  ;;  %v1019_v3 = vld [vmem:[%s1255_s1 + $0xf0] sm:$0xff]  ;;  %s988_s30 = sshll.u32 %s1259_s13, 3  ;;  %v1018_v9 = vld [vmem:[%s1255_s1 + $0xe8] sm:$0xff] }
   0xd   : > { %365 = vmatpush.bf16.msra.mxu1 %v1020_v1  ;;  %v996_v4 = vld [vmem:[%s1255_s1 + $0x38] sm:$0xff]  ;;  %v995_v6 = vld [vmem:[%s1255_s1 + $0x30] sm:$0xff]  ;;  %v994_v10 = vld [vmem:[%s1255_s1 + $0x28] sm:$0xff]  ;;  %s164_s16 = scalar_lea.vmem %s1254_s0, %s988_s30 }
   0xe   : > { %v1004_v5 = vld [vmem:[%s1255_s1 + $0x78] sm:$0xff]  ;;  %476 = vmatpush.bf16.msra.mxu2 %v996_v4  ;;  %v1003_v7 = vld [vmem:[%s1255_s1 + $0x70] sm:$0xff]  ;;  %v1002_v11 = vld [vmem:[%s1255_s1 + $0x68] sm:$0xff] }
   0xf   : > { %489 = vmatpush.bf16.msra.mxu3 %v1004_v5  ;;  %v1009_v12 = vld [vmem:[%s1255_s1 + $0xa0] sm:$0xff]  ;;  %v1008_v19 = vld [vmem:[%s1255_s1 + $0x98] sm:$0xff]  ;;  %v1007_v25 = vld [vmem:[%s1255_s1 + $0x90] sm:$0xff] }
  0x10   : > { %353 = vmatpush.bf16.msra.mxu0 %v1011_v2  ;;  %v1017_v13 = vld [vmem:[%s1255_s1 + $0xe0] sm:$0xff]  ;;  %v1016_v20 = vld [vmem:[%s1255_s1 + $0xd8] sm:$0xff]  ;;  %v1015_v26 = vld [vmem:[%s1255_s1 + $0xd0] sm:$0xff] }
  0x11   : > { %366 = vmatpush.bf16.msra.mxu1 %v1019_v3  ;;  %v169_v14 = vld [vmem:[%s164_s16] sm:$0x77]  ;;  %v992_v21 = vld [vmem:[%s1255_s1 + $0x18] sm:$0xff]  ;;  %v991_v27 = vld [vmem:[%s1255_s1 + $0x10] sm:$0xff]  ;;  %s729_s16 = sshll.u32 %s1259_s13, 1 }
  0x12   : > { %477 = vmatpush.bf16.msra.mxu2 %v995_v6  ;;  %v993_v15 = vld [vmem:[%s1255_s1 + $0x20] sm:$0xff]  ;;  %v236_v17 = vunpack.c.l.b16 %v169_v14  ;;  %v237_v18 = vunpack.c.h.b16 %v169_v14  ;;  %v1000_v22 = vld [vmem:[%s1255_s1 + $0x58] sm:$0xff]  ;;  %v999_v28 = vld [vmem:[%s1255_s1 + $0x50] sm:$0xff]  ;;  %s168_s19 = scalar_lea.vmem %s1257_s3, %s729_s16 }
  0x13   : > { %490 = vmatpush.bf16.msra.mxu3 %v1003_v7  ;;  %v1001_v16 = vld [vmem:[%s1255_s1 + $0x60] sm:$0xff]  ;;  %v1006_v31 = vld [vmem:[%s1255_s1 + $0x88] sm:$0xff]  ;;  %v1028_v41 = vld [vmem:[%s1255_s1 + $0x138] sm:$0xff] }
  0x14   : > { %354 = vmatpush.bf16.msra.mxu0 %v1010_v8  ;;  %v1148_v23 = vpack.c.b16 %v236_v17, %v236_v17  ;;  %v1150_v24 = vpack.c.b16 %v237_v18, %v237_v18  ;;  %v1014_v32 = vld [vmem:[%s1255_s1 + $0xc8] sm:$0xff]  ;;  %v1005_v39 = vld [vmem:[%s1255_s1 + $0x80] sm:$0xff]  ;;  %v1036_v42 = vld [vmem:[%s1255_s1 + $0x178] sm:$0xff] }
  0x15   : > { %367 = vmatpush.bf16.msra.mxu1 %v1018_v9  ;;  %v990_v33 = vld [vmem:[%s1255_s1 + $0x8] sm:$0xff]  ;;  %v1013_v40 = vld [vmem:[%s1255_s1 + $0xc0] sm:$0xff]  ;;  %v1027_v47 = vld [vmem:[%s1255_s1 + $0x130] sm:$0xff] }
  0x16   : > { %478 = vmatpush.bf16.msra.mxu2 %v994_v10  ;;  %v243_v29 = vshll.u32 %v1148_v23, 16  ;;  %v250_v30 = vshll.u32 %v1150_v24, 16  ;;  %v998_v34 = vld [vmem:[%s1255_s1 + $0x48] sm:$0xff]  ;;  %v241_v35 = vshrl.u32 %v1148_v23, 16  ;;  %v248_v37 = vshrl.u32 %v1150_v24, 16  ;;  %v989_v43 = vld [vmem:[%s1255_s1] sm:$0xff] }
  0x17   : > { %491 = vmatpush.bf16.msra.mxu3 %v1002_v11  ;;  %v997_v44 = vld [vmem:[%s1255_s1 + $0x40] sm:$0xff]  ;;  %v1035_v48 = vld [vmem:[%s1255_s1 + $0x170] sm:$0xff]  ;;  %v1026_v49 = vld [vmem:[%s1255_s1 + $0x128] sm:$0xff]  ;;  %v535_v61 = vrot.slane %v1148_v23, 1  ;;  %v536_v62 = vrot.slane %v1150_v24, 1 }
  0x18   : > { %355 = vmatpush.bf16.msra.mxu0 %v1009_v12  ;;  %v245_v36 = vrot.slane %v243_v29, 1  ;;  %v252_v38 = vrot.slane %v250_v30, 1  ;;  %v1034_v50 = vld [vmem:[%s1255_s1 + $0x168] sm:$0xff]  ;;  %v1025_v51 = vld [vmem:[%s1255_s1 + $0x120] sm:$0xff]  ;;  %v1024_v53 = vld [vmem:[%s1255_s1 + $0x118] sm:$0xff] }
  0x19   : > { %368 = vmatpush.bf16.msra.mxu1 %v1017_v13  ;;  %v1033_v52 = vld [vmem:[%s1255_s1 + $0x160] sm:$0xff]  ;;  %v1032_v54 = vld [vmem:[%s1255_s1 + $0x158] sm:$0xff]  ;;  %v1023_v55 = vld [vmem:[%s1255_s1 + $0x110] sm:$0xff] }
  0x1a   : > { %479 = vmatpush.bf16.msra.mxu2 %v993_v15  ;;  %v246_v45 = vor.u32 %v245_v36, %v241_v35  ;;  %v253_v46 = vor.u32 %v252_v38, %v248_v37  ;;  %v1031_v56 = vld [vmem:[%s1255_s1 + $0x150] sm:$0xff]  ;;  %v1022_v57 = vld [vmem:[%s1255_s1 + $0x108] sm:$0xff]  ;;  %v1021_v59 = vld [vmem:[%s1255_s1 + $0x100] sm:$0xff] }
  0x1b   : > { %492 = vmatpush.bf16.msra.mxu3 %v1001_v16  ;;  %v1030_v58 = vld [vmem:[%s1255_s1 + $0x148] sm:$0xff]  ;;  %v1029_v60 = vld [vmem:[%s1255_s1 + $0x140] sm:$0xff] }
  0x1c   : > { %356 = vmatpush.bf16.msra.mxu0 %v1008_v19  ;;  %v1045_v13 = vld [vmem:[%s1256_s2] ss:$0 sm:$0xff] }
  0x1d   : > { %369 = vmatpush.bf16.msra.mxu1 %v1016_v20 }
  0x1e   : > { %480 = vmatpush.bf16.msra.mxu2 %v992_v21 }
  0x1f   : > { %493 = vmatpush.bf16.msra.mxu3 %v1000_v22 }
  0x20   : > { %357 = vmatpush.bf16.msra.mxu0 %v1007_v25 }
  0x21   : > { %370 = vmatpush.bf16.msra.mxu1 %v1015_v26 }
  0x22   : > { %481 = vmatpush.bf16.msra.mxu2 %v991_v27 }
  0x23   : > { %494 = vmatpush.bf16.msra.mxu3 %v999_v28 }
  0x24   : > { %358 = vmatpush.bf16.msra.mxu0 %v1006_v31 }
  0x25   : > { %371 = vmatpush.bf16.msra.mxu1 %v1014_v32 }
  0x26   : > { %482 = vmatpush.bf16.msra.mxu2 %v990_v33 }
  0x27   : > { %495 = vmatpush.bf16.msra.mxu3 %v998_v34 }
  0x28   : > { %359 = vmatpush.bf16.msra.mxu0 %v1005_v39 }
  0x29   : > { %372 = vmatpush.bf16.msra.mxu1 %v1013_v40 }
  0x2a   : > { %483 = vmatpush.bf16.msra.mxu2 %v989_v43 }
  0x2b   : > { %496 = vmatpush.bf16.msra.mxu3 %v997_v44  ;;  %360 = vmatmul.bf16.vlgmr.msra.gmra.mxu0 %v246_v45 }
  0x2c   : > { %635 = vmatpush.bf16.msrb.mxu0 %v1028_v41  ;;  %373 = vmatmul.bf16.vlgmr.msra.gmra.mxu1 %v253_v46 }
  0x2d   : > { %648 = vmatpush.bf16.msrb.mxu1 %v1036_v42  ;;  %484 = vmatmul.bf16.vlgmr.msra.gmra.mxu2 %v1148_v23 }
  0x2e   : > { %497 = vmatmul.bf16.vlgmr.msra.gmra.mxu3 %v1150_v24 }
  0x30   : > { %636 = vmatpush.bf16.msrb.mxu0 %v1027_v47 }
  0x31   : > { %649 = vmatpush.bf16.msrb.mxu1 %v1035_v48 }
  0x34   : > { %637 = vmatpush.bf16.msrb.mxu0 %v1026_v49 }
  0x35   : > { %650 = vmatpush.bf16.msrb.mxu1 %v1034_v50 }
  0x38   : > { %638 = vmatpush.bf16.msrb.mxu0 %v1025_v51 }
  0x39   : > { %651 = vmatpush.bf16.msrb.mxu1 %v1033_v52 }
  0x3c   : > { %639 = vmatpush.bf16.msrb.mxu0 %v1024_v53 }
  0x3d   : > { %652 = vmatpush.bf16.msrb.mxu1 %v1032_v54 }
  0x40   : > { %640 = vmatpush.bf16.msrb.mxu0 %v1023_v55 }
  0x41   : > { %653 = vmatpush.bf16.msrb.mxu1 %v1031_v56 }
  0x44   : > { %641 = vmatpush.bf16.msrb.mxu0 %v1022_v57 }
  0x45   : > { %654 = vmatpush.bf16.msrb.mxu1 %v1030_v58 }
  0x48   : > { %642 = vmatpush.bf16.msrb.mxu0 %v1021_v59 }
  0x49   : > { %655 = vmatpush.bf16.msrb.mxu1 %v1029_v60 }
  0x4b   : > { %643 = vmatmul.bf16.vlgmr.msrb.gmra.mxu0 %v535_v61 }
  0x4c   : > { %656 = vmatmul.bf16.vlgmr.msrb.gmra.mxu1 %v536_v62 }
  0xa8   : > { %v361_v63 = vpop.f32.mrf.mxu0 }
  0xa9   : > { %v374_v0 = vpop.f32.mrf.mxu1 }
  0xaa   : > { %v375_v7 = vadd.f32 %v374_v0, %v361_v63 }
  0xb0   : > { %v363_v1 = vpop.f32.mrf.mxu0  ;;  %v485_v3 = vpop.f32.mrf.mxu2 }
  0xb1   : > { %v376_v2 = vpop.f32.mrf.mxu1  ;;  %v498_v4 = vpop.f32.mrf.mxu3  ;;  %v486_v8 = vadd.f32 %v485_v3, %v375_v7 }
  0xb3   : > { %v499_v11 = vadd.f32 %v498_v4, %v486_v8 }
  0xb8   : > { %v487_v5 = vpop.f32.mrf.mxu2 }
  0xb9   : > { %v500_v6 = vpop.f32.mrf.mxu3 }
  0xc8   : > { %v644_v9 = vpop.f32.mrf.mxu0 }
  0xc9   : > { %v657_v10 = vpop.f32.mrf.mxu1 }
  0xca   : > { %v658_v12 = vadd.f32 %v657_v10, %v644_v9 }
  0xcc   : > { %v661_v14 = vadd.f32 %v658_v12, %v499_v11 }
  0xce   : > { %v666_v15 = vadd.f32 %v1045_v13, %v661_v14 }
  0xd0   : > { %v667_v16 = vpack.c.bf16 %v666_v15, %v666_v15  ;;  %v646_v17 = vpop.f32.mrf.mxu0 }
  0xd1   : > { %v659_v18 = vpop.f32.mrf.mxu1 }
  0xd2   : > { %668 = vst [vmem:[%s168_s19] sm:$0x3] %v667_v16 }
  0xd3 PF: > { %s13_s12 = sadd.s32 1, %s1052_s12  }
  0xd4   : > { %p10_p4 = scmp.ge.s32.totalorder %s13_s12, 4  }
  0xd6   :  { %12 = sbr.rel (!%p10_p4) target bundleno = 1 (0x1), region = 64 }

// kernel: tile.66
= control target key start
LH: loop header
LB: loop body
LE: loop exit
PB: predicated region body
PF: predicated region fallthrough
CT: control target
= control target key end

     0   :  { %s22_s0 = inlined_call_operand.vmem [shape: f32[16], index: 0, kind: input, shape index: {}]   ;;  %s23_s1 = inlined_call_operand.vmem [shape: f32[4,16], index: 1, kind: output, shape index: {}]  }
   0x1   :  { %v4_v0 = vld [vmem:[%s22_s0] ss:$0 sm:$0xff] }
   0x2   :  { %5 = vst [vmem:[%s23_s1] sm:$0xf] %v4_v0 }

// kernel: tile.69
= control target key start
LH: loop header
LB: loop body
LE: loop exit
PB: predicated region body
PF: predicated region fallthrough
CT: control target
= control target key end

     0   :  { %s37_s8 = smov 16   ;;  %s38_s9 = smov 32   ;;  %vm7_vm0 = vcmask 130048   ;;  %vm13_vm1 = vcmask 523648   ;;  %vm19_vm2 = vcmask 392448   ;;  %vm25_vm3 = vcmask 261248   ;;  %s55_s0 = inlined_call_operand.vmem [shape: f32[4,16], index: 0, kind: input, shape index: {}]   ;;  %s56_s1 = inlined_call_operand.vmem [shape: f32[64], index: 1, kind: output, shape index: {}]  }
   0x1   :  { %v4_v0 = vld [vmem:[%s55_s0] sm:$0xf]  ;;  %s36_s0 = smov 48  }
   0x2   :  { %5 = vst [vmem:[#allocation1] sm:$0xf] %v4_v0 }
   0x9   :  { %v10_v1 = vld [vmem:[#allocation1 + $0x3] sm:$0x1]   ;;  %v22_v2 = vld [vmem:[#allocation1 + $0x1] sm:$0x1]   ;;  %v16_v3 = vld [vmem:[#allocation1 + $0x2] sm:$0x1]  }
   0xa   :  { %11 = vrot.lane.b32.xlu0 %v10_v1, %s36_s0  ;;  %23 = vrot.lane.b32.xlu1 %v22_v2, %s37_s8  ;;  %v6_v4 = vld [vmem:[#allocation1] sm:$0x1]  }
   0xb   :  { %8 = vst.msk [vmem:[#allocation0] sm:$0x1] %vm7_vm0, %v6_v4  }
  0x12   :  { %17 = vrot.lane.b32.xlu0 %v16_v3, %s38_s9 }
  0x7c   :  { %v12_v5 = vpop.permute.xlu0 %11   ;;  %v24_v6 = vpop.permute.xlu1 %23  }
  0x7d   :  { %14 = vst.msk [vmem:[#allocation0] sm:$0x1] %vm13_vm1, %v12_v5  }
  0x84   :  { %v18_v7 = vpop.permute.xlu0 %17  }
  0x85   :  { %20 = vst.msk [vmem:[#allocation0] sm:$0x1] %vm19_vm2, %v18_v7  }
  0x86   :  { %26 = vst.msk [vmem:[#allocation0] sm:$0x1] %vm25_vm3, %v24_v6  }
  0x8d   :  { %v29_v8 = vld [vmem:[#allocation0] sm:$0x1] }
  0x8e   :  { %32 = vst [vmem:[%s56_s1] sm:$0x1] %v29_v8 }

// kernel: tile.70
= control target key start
LH: loop header
LB: loop body
LE: loop exit
PB: predicated region body
PF: predicated region fallthrough
CT: control target
= control target key end

     0   :  { %s22_s0 = inlined_call_operand.vmem [shape: f32[64], index: 0, kind: input, shape index: {}]   ;;  %s23_s1 = inlined_call_operand.vmem [shape: f32[4,64], index: 1, kind: output, shape index: {}]  }
   0x1   :  { %v4_v0 = vld [vmem:[%s22_s0] ss:$0 sm:$0xff] }
   0x2   :  { %5 = vst [vmem:[%s23_s1] sm:$0xf] %v4_v0 }

// kernel: unet_forward.11
= control target key start
LH: loop header
LB: loop body
LE: loop exit
PB: predicated region body
PF: predicated region fallthrough
CT: control target
= control target key end

     0   :  { %s2252_s12 = smov 0   ;;  %s3177_s0 = inlined_call_operand.vmem [shape: bf16[2,6,384], index: 0, kind: input, shape index: {}]   ;;  %s3178_s1 = inlined_call_operand.vmem [shape: bf16[3,384,256], index: 1, kind: input, shape index: {}]   ;;  %s3179_s2 = inlined_call_operand.vmem [shape: f32[1,256], index: 2, kind: input, shape index: {}]   ;;  %s3180_s3 = inlined_call_operand.vmem [shape: bf16[2,4,256], index: 3, kind: output, shape index: {}]  }
   0x1 LB: > { %s1388_s13 = sadd.s32 4294967295, %s2230_s12   ;;  %p1392_p0 = scmp.ge.s32.totalorder %s2230_s12, 1  ;;  %s2230_s12 = sphi %s2252_s12, %s13_s12  }
   0x2   : > { %p137_p1 = scmp.lt.s32.totalorder %s2230_s12, 3 }
   0x4   : > { %p138_p2 = pnand %p1392_p0, %p137_p1 }
   0x5   : > { %p161_p3 = scmp.lt.s32.totalorder (!%p138_p2), %s1388_s13, 1 }
   0x6   : > { %141 = sbr.rel (%p138_p2) target bundleno = 313 (0x139), region = 32 }
   0xb   : > { %v1502_v0 = vld [vmem:[%s3178_s1 + $0x1f0] sm:$0xf]  ;;  %v2134_v1 = vld [vmem:[%s3178_s1 + $0x1f4] sm:$0xf0]  ;;  %v2133_v9 = vld [vmem:[%s3178_s1 + $0x1f4] sm:$0xf] }
   0xc   : > { %v1566_v2 = vld [vmem:[%s3178_s1 + $0x270] sm:$0xf]  ;;  %v1503_v3 = vor.u32 %v2134_v1, %v1502_v0  ;;  %v2150_v4 = vld [vmem:[%s3178_s1 + $0x274] sm:$0xf0]  ;;  %v1504_v10 = vld [vmem:[%s3178_s1 + $0x1f8] sm:$0xf0] }
   0xd   : > { %v1630_v5 = vld [vmem:[%s3178_s1 + $0x2f0] sm:$0xf]  ;;  %v2166_v6 = vld [vmem:[%s3178_s1 + $0x2f4] sm:$0xf0]  ;;  %v1567_v7 = vor.u32 %v2150_v4, %v1566_v2  ;;  %v1494_v11 = vld [vmem:[%s3178_s1 + $0x1e0] sm:$0xf]  ;;  %v1507_v12 = vor.u32 %v2133_v9, %v1504_v10 }
   0xe   : > { %v1631_v8 = vor.u32 %v2166_v6, %v1630_v5  ;;  %542 = vmatpush.bf16.msra.mxu0 %v1503_v3  ;;  %v2132_v13 = vld [vmem:[%s3178_s1 + $0x1e4] sm:$0xf0]  ;;  %v1558_v14 = vld [vmem:[%s3178_s1 + $0x260] sm:$0xf]  ;;  %v2131_v20 = vld [vmem:[%s3178_s1 + $0x1e4] sm:$0xf] }
   0xf   : > { %v2148_v15 = vld [vmem:[%s3178_s1 + $0x264] sm:$0xf0]  ;;  %555 = vmatpush.bf16.msra.mxu1 %v1567_v7  ;;  %v1495_v16 = vor.u32 %v2132_v13, %v1494_v11  ;;  %v1622_v18 = vld [vmem:[%s3178_s1 + $0x2e0] sm:$0xf]  ;;  %581 = vmatpush.bf16.msra.mxu3 %v1507_v12  ;;  %v1496_v22 = vld [vmem:[%s3178_s1 + $0x1e8] sm:$0xf0] }
  0x10   : > { %568 = vmatpush.bf16.msra.mxu2 %v1631_v8  ;;  %v1559_v17 = vor.u32 %v2148_v15, %v1558_v14  ;;  %v2164_v19 = vld [vmem:[%s3178_s1 + $0x2e4] sm:$0xf0]  ;;  %v1486_v23 = vld [vmem:[%s3178_s1 + $0x1d0] sm:$0xf]  ;;  %v2130_v24 = vld [vmem:[%s3178_s1 + $0x1d4] sm:$0xf0]  ;;  %v1499_v25 = vor.u32 %v2131_v20, %v1496_v22 }
  0x11   : > { %v1623_v21 = vor.u32 %v2164_v19, %v1622_v18  ;;  %v1550_v26 = vld [vmem:[%s3178_s1 + $0x250] sm:$0xf]  ;;  %v2146_v27 = vld [vmem:[%s3178_s1 + $0x254] sm:$0xf0]  ;;  %v1487_v29 = vor.u32 %v2130_v24, %v1486_v23  ;;  %v2129_v31 = vld [vmem:[%s3178_s1 + $0x1d4] sm:$0xf] }
  0x12   : > { %v1614_v28 = vld [vmem:[%s3178_s1 + $0x2d0] sm:$0xf]  ;;  %543 = vmatpush.bf16.msra.mxu0 %v1495_v16  ;;  %v2162_v30 = vld [vmem:[%s3178_s1 + $0x2d4] sm:$0xf0]  ;;  %v1488_v32 = vld [vmem:[%s3178_s1 + $0x1d8] sm:$0xf0]  ;;  %v1551_v33 = vor.u32 %v2146_v27, %v1550_v26 }
  0x13   : > { %556 = vmatpush.bf16.msra.mxu1 %v1559_v17  ;;  %v1615_v34 = vor.u32 %v2162_v30, %v1614_v28  ;;  %v1478_v35 = vld [vmem:[%s3178_s1 + $0x1c0] sm:$0xf]  ;;  %v2128_v36 = vld [vmem:[%s3178_s1 + $0x1c4] sm:$0xf0]  ;;  %582 = vmatpush.bf16.msra.mxu3 %v1499_v25  ;;  %v1491_v38 = vor.u32 %v2129_v31, %v1488_v32  ;;  %v2127_v42 = vld [vmem:[%s3178_s1 + $0x1c4] sm:$0xf] }
  0x14   : > { %569 = vmatpush.bf16.msra.mxu2 %v1623_v21  ;;  %v1542_v37 = vld [vmem:[%s3178_s1 + $0x240] sm:$0xf]  ;;  %v2144_v39 = vld [vmem:[%s3178_s1 + $0x244] sm:$0xf0]  ;;  %v1480_v43 = vld [vmem:[%s3178_s1 + $0x1c8] sm:$0xf0]  ;;  %v1479_v44 = vor.u32 %v2128_v36, %v1478_v35 }
  0x15   : > { %v1606_v40 = vld [vmem:[%s3178_s1 + $0x2c0] sm:$0xf]  ;;  %v2160_v41 = vld [vmem:[%s3178_s1 + $0x2c4] sm:$0xf0]  ;;  %v1543_v45 = vor.u32 %v2144_v39, %v1542_v37  ;;  %v1470_v47 = vld [vmem:[%s3178_s1 + $0x1b0] sm:$0xf]  ;;  %v1483_v50 = vor.u32 %v2127_v42, %v1480_v43 }
  0x16   : > { %544 = vmatpush.bf16.msra.mxu0 %v1487_v29  ;;  %v1607_v46 = vor.u32 %v2160_v41, %v1606_v40  ;;  %v2126_v48 = vld [vmem:[%s3178_s1 + $0x1b4] sm:$0xf0]  ;;  %v1534_v49 = vld [vmem:[%s3178_s1 + $0x230] sm:$0xf]  ;;  %v2125_v54 = vld [vmem:[%s3178_s1 + $0x1b4] sm:$0xf] }
  0x17   : > { %557 = vmatpush.bf16.msra.mxu1 %v1551_v33  ;;  %583 = vmatpush.bf16.msra.mxu3 %v1491_v38  ;;  %v2142_v51 = vld [vmem:[%s3178_s1 + $0x234] sm:$0xf0]  ;;  %v1598_v52 = vld [vmem:[%s3178_s1 + $0x2b0] sm:$0xf]  ;;  %v1472_v55 = vld [vmem:[%s3178_s1 + $0x1b8] sm:$0xf0]  ;;  %v1471_v56 = vor.u32 %v2126_v48, %v1470_v47 }
  0x18   : > { %570 = vmatpush.bf16.msra.mxu2 %v1615_v34  ;;  %v2158_v53 = vld [vmem:[%s3178_s1 + $0x2b4] sm:$0xf0]  ;;  %v1535_v57 = vor.u32 %v2142_v51, %v1534_v49  ;;  %v1462_v59 = vld [vmem:[%s3178_s1 + $0x1a0] sm:$0xf]  ;;  %v2124_v60 = vld [vmem:[%s3178_s1 + $0x1a4] sm:$0xf0]  ;;  %v1475_v62 = vor.u32 %v2125_v54, %v1472_v55 }
  0x19   : > { %v1599_v58 = vor.u32 %v2158_v53, %v1598_v52  ;;  %v1526_v61 = vld [vmem:[%s3178_s1 + $0x220] sm:$0xf]  ;;  %v2140_v63 = vld [vmem:[%s3178_s1 + $0x224] sm:$0xf0]  ;;  %v2123_v2 = vld [vmem:[%s3178_s1 + $0x1a4] sm:$0xf]  ;;  %v1463_v4 = vor.u32 %v2124_v60, %v1462_v59 }
  0x1a   : > { %545 = vmatpush.bf16.msra.mxu0 %v1479_v44  ;;  %v1590_v0 = vld [vmem:[%s3178_s1 + $0x2a0] sm:$0xf]  ;;  %v2156_v1 = vld [vmem:[%s3178_s1 + $0x2a4] sm:$0xf0]  ;;  %v1464_v3 = vld [vmem:[%s3178_s1 + $0x1a8] sm:$0xf0]  ;;  %v1527_v5 = vor.u32 %v2140_v63, %v1526_v61 }
  0x1b   : > { %558 = vmatpush.bf16.msra.mxu1 %v1543_v45  ;;  %584 = vmatpush.bf16.msra.mxu3 %v1483_v50  ;;  %v1591_v6 = vor.u32 %v2156_v1, %v1590_v0  ;;  %v1454_v7 = vld [vmem:[%s3178_s1 + $0x190] sm:$0xf]  ;;  %v2122_v8 = vld [vmem:[%s3178_s1 + $0x194] sm:$0xf0]  ;;  %v1467_v10 = vor.u32 %v2123_v2, %v1464_v3  ;;  %v2121_v14 = vld [vmem:[%s3178_s1 + $0x194] sm:$0xf] }
  0x1c   : > { %571 = vmatpush.bf16.msra.mxu2 %v1607_v46  ;;  %v1518_v9 = vld [vmem:[%s3178_s1 + $0x210] sm:$0xf]  ;;  %v2138_v11 = vld [vmem:[%s3178_s1 + $0x214] sm:$0xf0]  ;;  %v1456_v15 = vld [vmem:[%s3178_s1 + $0x198] sm:$0xf0]  ;;  %v1455_v16 = vor.u32 %v2122_v8, %v1454_v7 }
  0x1d   : > { %v1582_v12 = vld [vmem:[%s3178_s1 + $0x290] sm:$0xf]  ;;  %v2154_v13 = vld [vmem:[%s3178_s1 + $0x294] sm:$0xf0]  ;;  %v1446_v17 = vld [vmem:[%s3178_s1 + $0x180] sm:$0xf]  ;;  %v1519_v19 = vor.u32 %v2138_v11, %v1518_v9  ;;  %v1459_v24 = vor.u32 %v2121_v14, %v1456_v15 }
  0x1e   : > { %546 = vmatpush.bf16.msra.mxu0 %v1471_v56  ;;  %v2120_v18 = vld [vmem:[%s3178_s1 + $0x184] sm:$0xf0]  ;;  %v1583_v20 = vor.u32 %v2154_v13, %v1582_v12  ;;  %v1510_v21 = vld [vmem:[%s3178_s1 + $0x200] sm:$0xf]  ;;  %v2149_v26 = vld [vmem:[%s3178_s1 + $0x274] sm:$0xf] }
  0x1f   : > { %559 = vmatpush.bf16.msra.mxu1 %v1535_v57  ;;  %585 = vmatpush.bf16.msra.mxu3 %v1475_v62  ;;  %v2136_v22 = vld [vmem:[%s3178_s1 + $0x204] sm:$0xf0]  ;;  %v1574_v23 = vld [vmem:[%s3178_s1 + $0x280] sm:$0xf]  ;;  %v1568_v27 = vld [vmem:[%s3178_s1 + $0x278] sm:$0xf0]  ;;  %v1447_v31 = vor.u32 %v2120_v18, %v1446_v17 }
  0x20   : > { %572 = vmatpush.bf16.msra.mxu2 %v1599_v58  ;;  %v2152_v25 = vld [vmem:[%s3178_s1 + $0x284] sm:$0xf0]  ;;  %v2165_v28 = vld [vmem:[%s3178_s1 + $0x2f4] sm:$0xf]  ;;  %v1632_v29 = vld [vmem:[%s3178_s1 + $0x2f8] sm:$0xf0]  ;;  %v1511_v35 = vor.u32 %v2136_v22, %v1510_v21  ;;  %v1571_v39 = vor.u32 %v2149_v26, %v1568_v27 }
  0x21   : > { %v1694_v30 = vld [vmem:[%s3178_s1 + $0x70] sm:$0xf]  ;;  %v2086_v32 = vld [vmem:[%s3178_s1 + $0x74] sm:$0xf0]  ;;  %v2119_v33 = vld [vmem:[%s3178_s1 + $0x184] sm:$0xf]  ;;  %v1575_v36 = vor.u32 %v2152_v25, %v1574_v23  ;;  %v1635_v40 = vor.u32 %v2165_v28, %v1632_v29 }
  0x22   : > { %547 = vmatpush.bf16.msra.mxu0 %v1463_v4  ;;  %v1448_v34 = vld [vmem:[%s3178_s1 + $0x188] sm:$0xf0]  ;;  %v1758_v37 = vld [vmem:[%s3178_s1 + $0xf0] sm:$0xf]  ;;  %v2102_v38 = vld [vmem:[%s3178_s1 + $0xf4] sm:$0xf0]  ;;  %v1695_v42 = vor.u32 %v2086_v32, %v1694_v30 }
  0x23   : > { %560 = vmatpush.bf16.msra.mxu1 %v1527_v5  ;;  %586 = vmatpush.bf16.msra.mxu3 %v1467_v10  ;;  %v2147_v41 = vld [vmem:[%s3178_s1 + $0x264] sm:$0xf]  ;;  %v1451_v43 = vor.u32 %v2119_v33, %v1448_v34  ;;  %v1560_v44 = vld [vmem:[%s3178_s1 + $0x268] sm:$0xf0]  ;;  %v1759_v47 = vor.u32 %v2102_v38, %v1758_v37  ;;  %v1686_v48 = vld [vmem:[%s3178_s1 + $0x60] sm:$0xf] }
  0x24   : > { %573 = vmatpush.bf16.msra.mxu2 %v1591_v6  ;;  %v2163_v45 = vld [vmem:[%s3178_s1 + $0x2e4] sm:$0xf]  ;;  %v1624_v46 = vld [vmem:[%s3178_s1 + $0x2e8] sm:$0xf0]  ;;  %v2084_v49 = vld [vmem:[%s3178_s1 + $0x64] sm:$0xf0]  ;;  %v1563_v52 = vor.u32 %v2147_v41, %v1560_v44 }
  0x25   : > { %v1750_v50 = vld [vmem:[%s3178_s1 + $0xe0] sm:$0xf]  ;;  %v2100_v51 = vld [vmem:[%s3178_s1 + $0xe4] sm:$0xf0]  ;;  %v1627_v53 = vor.u32 %v2163_v45, %v1624_v46  ;;  %v2145_v54 = vld [vmem:[%s3178_s1 + $0x254] sm:$0xf]  ;;  %v1687_v56 = vor.u32 %v2084_v49, %v1686_v48 }
  0x26   : > { %548 = vmatpush.bf16.msra.mxu0 %v1455_v16  ;;  %v1552_v55 = vld [vmem:[%s3178_s1 + $0x258] sm:$0xf0]  ;;  %v2161_v57 = vld [vmem:[%s3178_s1 + $0x2d4] sm:$0xf]  ;;  %s3182_s13 = smov (!%p161_p3, %s1388_s13), 1  ;;  %v1751_v59 = vor.u32 %v2100_v51, %v1750_v50  ;;  %vm1327_vm0 = vcmask 1041408  }
  0x27   : > { %561 = vmatpush.bf16.msra.mxu1 %v1519_v19  ;;  %587 = vmatpush.bf16.msra.mxu3 %v1459_v24  ;;  %v1616_v58 = vld [vmem:[%s3178_s1 + $0x2d8] sm:$0xf0]  ;;  %v1678_v60 = vld [vmem:[%s3178_s1 + $0x50] sm:$0xf]  ;;  %v2082_v61 = vld [vmem:[%s3178_s1 + $0x54] sm:$0xf0]  ;;  %v1555_v0 = vor.u32 %v2145_v54, %v1552_v55 }
  0x28   : > { %574 = vmatpush.bf16.msra.mxu2 %v1583_v20  ;;  %v1742_v62 = vld [vmem:[%s3178_s1 + $0xd0] sm:$0xf]  ;;  %v2098_v63 = vld [vmem:[%s3178_s1 + $0xd4] sm:$0xf0]  ;;  %s2215_s15 = smul.u32 12, %s3182_s13  ;;  %v1619_v1 = vor.u32 %v2161_v57, %v1616_v58  ;;  %v1679_v4 = vor.u32 %v2082_v61, %v1678_v60  ;;  %s2070_s21 = sshll.u32 %s3182_s13, 2 }
  0x29   : > { %v2143_v2 = vld [vmem:[%s3178_s1 + $0x244] sm:$0xf]  ;;  %v1544_v3 = vld [vmem:[%s3178_s1 + $0x248] sm:$0xf0]  ;;  %v1670_v7 = vld [vmem:[%s3178_s1 + $0x40] sm:$0xf]  ;;  %v1743_v8 = vor.u32 %v2098_v63, %v1742_v62  ;;  %s170_s24 = scalar_lea.vmem %s3180_s3, %s2070_s21 }
  0x2a   : > { %549 = vmatpush.bf16.msra.mxu0 %v1447_v31  ;;  %v2159_v5 = vld [vmem:[%s3178_s1 + $0x2c4] sm:$0xf]  ;;  %v1608_v6 = vld [vmem:[%s3178_s1 + $0x2c8] sm:$0xf0]  ;;  %s165_s28 = scalar_lea.vmem %s3177_s0, %s2215_s15  ;;  %v2080_v9 = vld [vmem:[%s3178_s1 + $0x44] sm:$0xf0]  ;;  %v1547_v17 = vor.u32 %v2143_v2, %v1544_v3 }
  0x2b   : > { %562 = vmatpush.bf16.msra.mxu1 %v1511_v35  ;;  %588 = vmatpush.bf16.msra.mxu3 %v1451_v43  ;;  %v172_v10 = vld [vmem:[%s165_s28 + $0x8] sm:$0x7]  ;;  %v171_v11 = vld [vmem:[%s165_s28] sm:$0x77]  ;;  %v1611_v18 = vor.u32 %v2159_v5, %v1608_v6  ;;  %v2141_v19 = vld [vmem:[%s3178_s1 + $0x234] sm:$0xf]  ;;  %v1671_v20 = vor.u32 %v2080_v9, %v1670_v7 }
  0x2c   : > { %575 = vmatpush.bf16.msra.mxu2 %v1575_v36  ;;  %v1734_v12 = vld [vmem:[%s3178_s1 + $0xc0] sm:$0xf]  ;;  %v2096_v13 = vld [vmem:[%s3178_s1 + $0xc4] sm:$0xf0]  ;;  %v274_v14 = vunpack.c.l.b16 %v172_v10  ;;  %v272_v15 = vunpack.c.l.b16 %v171_v11  ;;  %v273_v16 = vunpack.c.h.b16 %v171_v11  ;;  %v1536_v22 = vld [vmem:[%s3178_s1 + $0x238] sm:$0xf0] }
  0x2d   : > { %v2157_v23 = vld [vmem:[%s3178_s1 + $0x2b4] sm:$0xf]  ;;  %v1600_v24 = vld [vmem:[%s3178_s1 + $0x2b8] sm:$0xf0]  ;;  %v1735_v27 = vor.u32 %v2096_v13, %v1734_v12  ;;  %v1662_v28 = vld [vmem:[%s3178_s1 + $0x30] sm:$0xf]  ;;  %v1539_v36 = vor.u32 %v2141_v19, %v1536_v22 }
  0x2e   : > { %594 = vmatpush.bf16.msrb.mxu0 %v1571_v39  ;;  %v2561_v21 = vpack.c.b16 %v274_v14, %v274_v14  ;;  %v2572_v25 = vpack.c.b16 %v272_v15, %v272_v15  ;;  %v2574_v26 = vpack.c.b16 %v273_v16, %v273_v16  ;;  %v2078_v29 = vld [vmem:[%s3178_s1 + $0x34] sm:$0xf0]  ;;  %v1726_v30 = vld [vmem:[%s3178_s1 + $0xb0] sm:$0xf]  ;;  %v1603_v37 = vor.u32 %v2157_v23, %v1600_v24  ;;  %v2139_v38 = vld [vmem:[%s3178_s1 + $0x224] sm:$0xf] }
  0x2f   : > { %607 = vmatpush.bf16.msrb.mxu1 %v1635_v40  ;;  %876 = vmatpush.bf16.msrb.mxu3 %v1759_v47  ;;  %v2094_v35 = vld [vmem:[%s3178_s1 + $0xb4] sm:$0xf0]  ;;  %v1528_v39 = vld [vmem:[%s3178_s1 + $0x228] sm:$0xf0]  ;;  %v2155_v44 = vld [vmem:[%s3178_s1 + $0x2a4] sm:$0xf]  ;;  %v1663_v46 = vor.u32 %v2078_v29, %v1662_v28 }
  0x30   : > { %863 = vmatpush.bf16.msrb.mxu2 %v1695_v42  ;;  %v293_v31 = vshrl.u32 %v2561_v21, 16  ;;  %v295_v32 = vshll.u32 %v2561_v21, 16  ;;  %v279_v33 = vshrl.u32 %v2572_v25, 16  ;;  %v281_v34 = vshll.u32 %v2572_v25, 16  ;;  %v1592_v45 = vld [vmem:[%s3178_s1 + $0x2a8] sm:$0xf0] }
  0x31   : > { %v286_v40 = vshrl.u32 %v2574_v26, 16  ;;  %v288_v41 = vshll.u32 %v2574_v26, 16  ;;  %v1727_v47 = vor.u32 %v2094_v35, %v1726_v30  ;;  %v1654_v48 = vld [vmem:[%s3178_s1 + $0x20] sm:$0xf]  ;;  %v2092_v54 = vld [vmem:[%s3178_s1 + $0xa4] sm:$0xf0]  ;;  %v1531_v55 = vor.u32 %v2139_v38, %v1528_v39 }
  0x32   : > { %595 = vmatpush.bf16.msrb.mxu0 %v1563_v52  ;;  %v297_v42 = vrot.slane %v295_v32, 1  ;;  %v283_v43 = vrot.slane %v281_v34, 1  ;;  %v2076_v52 = vld [vmem:[%s3178_s1 + $0x24] sm:$0xf0]  ;;  %v2137_v58 = vld [vmem:[%s3178_s1 + $0x214] sm:$0xf] }
  0x33   : > { %608 = vmatpush.bf16.msrb.mxu1 %v1627_v53  ;;  %877 = vmatpush.bf16.msrb.mxu3 %v1751_v59  ;;  %v290_v49 = vrot.slane %v288_v41, 1  ;;  %v1718_v53 = vld [vmem:[%s3178_s1 + $0xa0] sm:$0xf]  ;;  %v1520_v59 = vld [vmem:[%s3178_s1 + $0x218] sm:$0xf0]  ;;  %v1655_v62 = vor.u32 %v2076_v52, %v1654_v48 }
  0x34   : > { %864 = vmatpush.bf16.msrb.mxu2 %v1687_v56  ;;  %v2609_v50 = vor.u32 %v297_v42, %v293_v31  ;;  %v284_v51 = vor.u32 %v283_v43, %v279_v33  ;;  %v1595_v56 = vor.u32 %v2155_v44, %v1592_v45  ;;  %v2153_v60 = vld [vmem:[%s3178_s1 + $0x294] sm:$0xf]  ;;  %v1584_v61 = vld [vmem:[%s3178_s1 + $0x298] sm:$0xf0]  ;;  %v1719_v63 = vor.u32 %v2092_v54, %v1718_v53  ;;  %v1710_v2 = vld [vmem:[%s3178_s1 + $0x90] sm:$0xf] }
  0x35   : > { %v2620_v57 = vor.u32 %v290_v49, %v286_v40  ;;  %v2090_v3 = vld [vmem:[%s3178_s1 + $0x94] sm:$0xf0]  ;;  %v1523_v5 = vor.u32 %v2137_v58, %v1520_v59  ;;  %v1587_v6 = vor.u32 %v2153_v60, %v1584_v61  ;;  %v1512_v7 = vld [vmem:[%s3178_s1 + $0x208] sm:$0xf0]  ;;  %v1638_v10 = vld [vmem:[%s3178_s1] sm:$0xf] }
  0x36   : > { %596 = vmatpush.bf16.msrb.mxu0 %v1555_v0  ;;  %576 = vmatmul.bf16.vlgmr.msra.gmra.mxu2 %v2609_v50  ;;  %v1646_v0 = vld [vmem:[%s3178_s1 + $0x10] sm:$0xf]  ;;  %v1576_v9 = vld [vmem:[%s3178_s1 + $0x288] sm:$0xf0]  ;;  %v2072_v11 = vld [vmem:[%s3178_s1 + $0x4] sm:$0xf0]  ;;  %v1711_v14 = vor.u32 %v2090_v3, %v1710_v2 }
  0x37   : > { %609 = vmatpush.bf16.msrb.mxu1 %v1619_v1  ;;  %878 = vmatpush.bf16.msrb.mxu3 %v1743_v8  ;;  %v2074_v1 = vld [vmem:[%s3178_s1 + $0x14] sm:$0xf0]  ;;  %v2151_v8 = vld [vmem:[%s3178_s1 + $0x284] sm:$0xf]  ;;  %v1822_v12 = vld [vmem:[%s3178_s1 + $0x170] sm:$0xf]  ;;  %v1639_v31 = vor.u32 %v2072_v11, %v1638_v10 }
  0x38   : > { %865 = vmatpush.bf16.msrb.mxu2 %v1679_v4  ;;  %589 = vmatmul.bf16.vlgmr.msra.gmra.mxu3 %v284_v51  ;;  %v2135_v4 = vld [vmem:[%s3178_s1 + $0x204] sm:$0xf]  ;;  %v1647_v13 = vor.u32 %v2074_v1, %v1646_v0  ;;  %v2118_v15 = vld [vmem:[%s3178_s1 + $0x174] sm:$0xf0]  ;;  %v2085_v16 = vld [vmem:[%s3178_s1 + $0x74] sm:$0xf]  ;;  %v1579_v23 = vor.u32 %v2151_v8, %v1576_v9 }
  0x39   : > { %550 = vmatmul.bf16.vlgmr.msra.gmra.mxu0 %v284_v51  ;;  %563 = vmatmul.bf16.vlgmr.msra.gmra.mxu1 %v2620_v57  ;;  %v1702_v19 = vld [vmem:[%s3178_s1 + $0x80] sm:$0xf]  ;;  %v1515_v22 = vor.u32 %v2135_v4, %v1512_v7  ;;  %v1760_v24 = vld [vmem:[%s3178_s1 + $0xf8] sm:$0xf0]  ;;  %v1823_v29 = vor.u32 %v2118_v15, %v1822_v12  ;;  %v2116_v34 = vld [vmem:[%s3178_s1 + $0x164] sm:$0xf0] }
  0x3a   : > { %597 = vmatpush.bf16.msrb.mxu0 %v1547_v17  ;;  %v1696_v17 = vld [vmem:[%s3178_s1 + $0x78] sm:$0xf0]  ;;  %v1814_v33 = vld [vmem:[%s3178_s1 + $0x160] sm:$0xf]  ;;  %v1688_v38 = vld [vmem:[%s3178_s1 + $0x68] sm:$0xf0] }
  0x3b   : > { %610 = vmatpush.bf16.msrb.mxu1 %v1611_v18  ;;  %879 = vmatpush.bf16.msrb.mxu3 %v1735_v27  ;;  %v2101_v18 = vld [vmem:[%s3178_s1 + $0xf4] sm:$0xf]  ;;  %v1824_v28 = vld [vmem:[%s3178_s1 + $0x178] sm:$0xf0]  ;;  %v1699_v30 = vor.u32 %v2085_v16, %v1696_v17  ;;  %v2099_v39 = vld [vmem:[%s3178_s1 + $0xe4] sm:$0xf]  ;;  %v1815_v43 = vor.u32 %v2116_v34, %v1814_v33 }
  0x3c   : > { %866 = vmatpush.bf16.msrb.mxu2 %v1671_v20  ;;  %v2088_v20 = vld [vmem:[%s3178_s1 + $0x84] sm:$0xf0]  ;;  %v2117_v27 = vld [vmem:[%s3178_s1 + $0x174] sm:$0xf]  ;;  %v1763_v35 = vor.u32 %v2101_v18, %v1760_v24  ;;  %v1752_v40 = vld [vmem:[%s3178_s1 + $0xe8] sm:$0xf0] }
  0x3d   : > { %v1703_v32 = vor.u32 %v2088_v20, %v1702_v19  ;;  %v2115_v41 = vld [vmem:[%s3178_s1 + $0x164] sm:$0xf]  ;;  %v1816_v42 = vld [vmem:[%s3178_s1 + $0x168] sm:$0xf0]  ;;  %v1806_v45 = vld [vmem:[%s3178_s1 + $0x150] sm:$0xf] }
  0x3e   : > { %598 = vmatpush.bf16.msrb.mxu0 %v1539_v36  ;;  %v1827_v36 = vor.u32 %v2117_v27, %v1824_v28  ;;  %v1819_v48 = vor.u32 %v2115_v41, %v1816_v42  ;;  %v2081_v49 = vld [vmem:[%s3178_s1 + $0x54] sm:$0xf]  ;;  %v1680_v51 = vld [vmem:[%s3178_s1 + $0x58] sm:$0xf0]  ;;  %v1798_v59 = vld [vmem:[%s3178_s1 + $0x140] sm:$0xf] }
  0x3f   : > { %611 = vmatpush.bf16.msrb.mxu1 %v1603_v37  ;;  %880 = vmatpush.bf16.msrb.mxu3 %v1727_v47  ;;  %v2083_v37 = vld [vmem:[%s3178_s1 + $0x64] sm:$0xf]  ;;  %v1755_v47 = vor.u32 %v2099_v39, %v1752_v40  ;;  %v2097_v52 = vld [vmem:[%s3178_s1 + $0xd4] sm:$0xf]  ;;  %v1744_v53 = vld [vmem:[%s3178_s1 + $0xd8] sm:$0xf0]  ;;  %v1683_v58 = vor.u32 %v2081_v49, %v1680_v51 }
  0x40   : > { %867 = vmatpush.bf16.msrb.mxu2 %v1663_v46  ;;  %v1691_v44 = vor.u32 %v2083_v37, %v1688_v38  ;;  %v2114_v46 = vld [vmem:[%s3178_s1 + $0x154] sm:$0xf0]  ;;  %v2113_v54 = vld [vmem:[%s3178_s1 + $0x154] sm:$0xf]  ;;  %v2112_v60 = vld [vmem:[%s3178_s1 + $0x144] sm:$0xf0]  ;;  %v1747_v61 = vor.u32 %v2097_v52, %v1744_v53 }
  0x41   : > { %v1672_v0 = vld [vmem:[%s3178_s1 + $0x48] sm:$0xf0]  ;;  %v2095_v1 = vld [vmem:[%s3178_s1 + $0xc4] sm:$0xf]  ;;  %v1790_v7 = vld [vmem:[%s3178_s1 + $0x130] sm:$0xf] }
  0x42   : > { %599 = vmatpush.bf16.msrb.mxu0 %v1531_v55  ;;  %v1808_v55 = vld [vmem:[%s3178_s1 + $0x158] sm:$0xf0]  ;;  %v1736_v2 = vld [vmem:[%s3178_s1 + $0xc8] sm:$0xf0]  ;;  %v2111_v3 = vld [vmem:[%s3178_s1 + $0x144] sm:$0xf] }
  0x43   : > { %612 = vmatpush.bf16.msrb.mxu1 %v1595_v56  ;;  %881 = vmatpush.bf16.msrb.mxu3 %v1719_v63  ;;  %v1807_v56 = vor.u32 %v2114_v46, %v1806_v45  ;;  %v2079_v63 = vld [vmem:[%s3178_s1 + $0x44] sm:$0xf]  ;;  %v1800_v4 = vld [vmem:[%s3178_s1 + $0x148] sm:$0xf0]  ;;  %v2110_v8 = vld [vmem:[%s3178_s1 + $0x134] sm:$0xf0]  ;;  %v1739_v9 = vor.u32 %v2095_v1, %v1736_v2 }
  0x44   : > { %868 = vmatpush.bf16.msrb.mxu2 %v1655_v62  ;;  %v1811_v62 = vor.u32 %v2113_v54, %v1808_v55  ;;  %v1803_v10 = vor.u32 %v2111_v3, %v1800_v4  ;;  %v2093_v11 = vld [vmem:[%s3178_s1 + $0xb4] sm:$0xf]  ;;  %v1728_v12 = vld [vmem:[%s3178_s1 + $0xb8] sm:$0xf0]  ;;  %v1791_v15 = vor.u32 %v2110_v8, %v1790_v7  ;;  %v1782_v17 = vld [vmem:[%s3178_s1 + $0x120] sm:$0xf] }
  0x45   : > { %v2108_v18 = vld [vmem:[%s3178_s1 + $0x124] sm:$0xf0]  ;;  %v1731_v19 = vor.u32 %v2093_v11, %v1728_v12  ;;  %v2091_v24 = vld [vmem:[%s3178_s1 + $0xa4] sm:$0xf]  ;;  %v1720_v27 = vld [vmem:[%s3178_s1 + $0xa8] sm:$0xf0] }
  0x46   : > { %600 = vmatpush.bf16.msrb.mxu0 %v1523_v5  ;;  %v1799_v5 = vor.u32 %v2112_v60, %v1798_v59  ;;  %v2107_v28 = vld [vmem:[%s3178_s1 + $0x124] sm:$0xf]  ;;  %v2106_v33 = vld [vmem:[%s3178_s1 + $0x114] sm:$0xf0]  ;;  %v1723_v34 = vor.u32 %v2091_v24, %v1720_v27  ;;  %v1648_v37 = vld [vmem:[%s3178_s1 + $0x18] sm:$0xf0] }
  0x47   : > { %613 = vmatpush.bf16.msrb.mxu1 %v1587_v6  ;;  %882 = vmatpush.bf16.msrb.mxu3 %v1711_v14  ;;  %v1675_v6 = vor.u32 %v2079_v63, %v1672_v0  ;;  %v1792_v14 = vld [vmem:[%s3178_s1 + $0x138] sm:$0xf0]  ;;  %v2089_v38 = vld [vmem:[%s3178_s1 + $0x94] sm:$0xf]  ;;  %v2104_v45 = vld [vmem:[%s3178_s1 + $0x104] sm:$0xf0] }
  0x48   : > { %869 = vmatpush.bf16.msrb.mxu2 %v1647_v13  ;;  %v2109_v13 = vld [vmem:[%s3178_s1 + $0x134] sm:$0xf]  ;;  %v1712_v39 = vld [vmem:[%s3178_s1 + $0x98] sm:$0xf0]  ;;  %v2071_v46 = vld [vmem:[%s3178_s1 + $0x4] sm:$0xf] }
  0x49   : > { %v1795_v20 = vor.u32 %v2109_v13, %v1792_v14  ;;  %v2105_v40 = vld [vmem:[%s3178_s1 + $0x114] sm:$0xf]  ;;  %v1776_v41 = vld [vmem:[%s3178_s1 + $0x118] sm:$0xf0]  ;;  %v1640_v49 = vld [vmem:[%s3178_s1 + $0x8] sm:$0xf0] }
  0x4a   : > { %601 = vmatpush.bf16.msrb.mxu0 %v1515_v22  ;;  %v2075_v22 = vld [vmem:[%s3178_s1 + $0x24] sm:$0xf]  ;;  %v1704_v52 = vld [vmem:[%s3178_s1 + $0x88] sm:$0xf0]  ;;  %v1934_v53 = vld [vmem:[%s3178_s1 + $0x370] sm:$0xf] }
  0x4b   : > { %614 = vmatpush.bf16.msrb.mxu1 %v1579_v23  ;;  %883 = vmatpush.bf16.msrb.mxu3 %v1703_v32  ;;  %v1656_v23 = vld [vmem:[%s3178_s1 + $0x28] sm:$0xf0]  ;;  %v1774_v32 = vld [vmem:[%s3178_s1 + $0x110] sm:$0xf]  ;;  %v2087_v51 = vld [vmem:[%s3178_s1 + $0x84] sm:$0xf] }
  0x4c   : > { %870 = vmatpush.bf16.msrb.mxu2 %v1639_v31  ;;  %v1659_v31 = vor.u32 %v2075_v22, %v1656_v23  ;;  %v1775_v42 = vor.u32 %v2106_v33, %v1774_v32  ;;  %v2182_v54 = vld [vmem:[%s3178_s1 + $0x374] sm:$0xf0]  ;;  %v1998_v55 = vld [vmem:[%s3178_s1 + $0x3f0] sm:$0xf]  ;;  %v1768_v63 = vld [vmem:[%s3178_s1 + $0x108] sm:$0xf0]  ;;  %v1707_v0 = vor.u32 %v2087_v51, %v1704_v52 }
  0x4d   : > { %602 = vmatmul.bf16.vlgmr.msrb.gmra.mxu0 %v2620_v57  ;;  %v1664_v57 = vld [vmem:[%s3178_s1 + $0x38] sm:$0xf0]  ;;  %v2214_v59 = vld [vmem:[%s3178_s1 + $0x474] sm:$0xf0]  ;;  %v1935_v1 = vor.u32 %v2182_v54, %v1934_v53  ;;  %v1926_v2 = vld [vmem:[%s3178_s1 + $0x360] sm:$0xf] }
  0x4e   : > { %889 = vmatpush.bf16.msra.mxu0 %v1823_v29  ;;  %884 = vmatmul.bf16.vlgmr.msrb.gmra.mxu3 %v2574_v26  ;;  %v1784_v29 = vld [vmem:[%s3178_s1 + $0x128] sm:$0xf0]  ;;  %v1936_v7 = vld [vmem:[%s3178_s1 + $0x378] sm:$0xf0]  ;;  %v1918_v12 = vld [vmem:[%s3178_s1 + $0x350] sm:$0xf] }
  0x4f   : > { %902 = vmatpush.bf16.msra.mxu1 %v1699_v30  ;;  %928 = vmatpush.bf16.msra.mxu3 %v1827_v36  ;;  %v1783_v30 = vor.u32 %v2108_v18, %v1782_v17  ;;  %v2073_v36 = vld [vmem:[%s3178_s1 + $0x14] sm:$0xf]  ;;  %v1928_v17 = vld [vmem:[%s3178_s1 + $0x368] sm:$0xf0]  ;;  %v2046_v22 = vld [vmem:[%s3178_s1 + $0x450] sm:$0xf] }
  0x50   : > { %915 = vmatpush.bf16.msra.mxu2 %v1763_v35  ;;  %615 = vmatmul.bf16.vlgmr.msrb.gmra.mxu1 %v2609_v50  ;;  %v2077_v50 = vld [vmem:[%s3178_s1 + $0x34] sm:$0xf]  ;;  %v1787_v35 = vor.u32 %v2107_v28, %v1784_v29  ;;  %v2210_v23 = vld [vmem:[%s3178_s1 + $0x454] sm:$0xf0]  ;;  %v1910_v27 = vld [vmem:[%s3178_s1 + $0x340] sm:$0xf] }
  0x51   : > { %871 = vmatmul.bf16.vlgmr.msrb.gmra.mxu2 %v2572_v25  ;;  %v1667_v16 = vor.u32 %v2077_v50, %v1664_v57  ;;  %v2054_v50 = vld [vmem:[%s3178_s1 + $0x460] sm:$0xf]  ;;  %v2212_v57 = vld [vmem:[%s3178_s1 + $0x464] sm:$0xf0]  ;;  %v1920_v32 = vld [vmem:[%s3178_s1 + $0x358] sm:$0xf0]  ;;  %v2047_v33 = vor.u32 %v2210_v23, %v2046_v22 }
  0x52   : > { %890 = vmatpush.bf16.msra.mxu0 %v1815_v43  ;;  %v1651_v43 = vor.u32 %v2073_v36, %v1648_v37  ;;  %v2055_v18 = vor.u32 %v2212_v57, %v2054_v50  ;;  %v2038_v36 = vld [vmem:[%s3178_s1 + $0x440] sm:$0xf]  ;;  %v2208_v37 = vld [vmem:[%s3178_s1 + $0x444] sm:$0xf0]  ;;  %v2202_v50 = vld [vmem:[%s3178_s1 + $0x414] sm:$0xf0] }
  0x53   : > { %903 = vmatpush.bf16.msra.mxu1 %v1691_v44  ;;  %929 = vmatpush.bf16.msra.mxu3 %v1819_v48  ;;  %v1766_v44 = vld [vmem:[%s3178_s1 + $0x100] sm:$0xf]  ;;  %v1779_v48 = vor.u32 %v2105_v40, %v1776_v41  ;;  %v2197_v22 = vld [vmem:[%s3178_s1 + $0x3f4] sm:$0xf]  ;;  %v2000_v23 = vld [vmem:[%s3178_s1 + $0x3f8] sm:$0xf0] }
  0x54   : > { %916 = vmatpush.bf16.msra.mxu2 %v1755_v47  ;;  %v1715_v47 = vor.u32 %v2089_v38, %v1712_v39  ;;  %v1767_v60 = vor.u32 %v2104_v45, %v1766_v44  ;;  %v1902_v39 = vld [vmem:[%s3178_s1 + $0x330] sm:$0xf]  ;;  %v1912_v44 = vld [vmem:[%s3178_s1 + $0x348] sm:$0xf0]  ;;  %v2039_v45 = vor.u32 %v2208_v37, %v2038_v36  ;;  %v1894_v52 = vld [vmem:[%s3178_s1 + $0x320] sm:$0xf] }
  0x55   : > { %v2195_v37 = vld [vmem:[%s3178_s1 + $0x3e4] sm:$0xf] }
  0x56   : > { %891 = vmatpush.bf16.msra.mxu0 %v1807_v56  ;;  %v2198_v56 = vld [vmem:[%s3178_s1 + $0x3f4] sm:$0xf0] }
  0x57   : > { %904 = vmatpush.bf16.msra.mxu1 %v1683_v58  ;;  %930 = vmatpush.bf16.msra.mxu3 %v1811_v62  ;;  %v2062_v58 = vld [vmem:[%s3178_s1 + $0x470] sm:$0xf]  ;;  %v2103_v62 = vld [vmem:[%s3178_s1 + $0x104] sm:$0xf]  ;;  %v1999_v3 = vor.u32 %v2198_v56, %v1998_v55  ;;  %v2172_v55 = vld [vmem:[%s3178_s1 + $0x324] sm:$0xf0] }
  0x58   : > { %917 = vmatpush.bf16.msra.mxu2 %v1747_v61  ;;  %v1643_v61 = vor.u32 %v2071_v46, %v1640_v49  ;;  %v2063_v4 = vor.u32 %v2214_v59, %v2062_v58  ;;  %v1771_v8 = vor.u32 %v2103_v62, %v1768_v63  ;;  %v1966_v46 = vld [vmem:[%s3178_s1 + $0x3b0] sm:$0xf]  ;;  %v2206_v49 = vld [vmem:[%s3178_s1 + $0x434] sm:$0xf0]  ;;  %v2173_v56 = vld [vmem:[%s3178_s1 + $0x334] sm:$0xf] }
  0x59   : > { %v1904_v58 = vld [vmem:[%s3178_s1 + $0x338] sm:$0xf0]  ;;  %v2022_v62 = vld [vmem:[%s3178_s1 + $0x420] sm:$0xf]  ;;  %v2204_v63 = vld [vmem:[%s3178_s1 + $0x424] sm:$0xf0] }
  0x5a   : > { %892 = vmatpush.bf16.msra.mxu0 %v1799_v5  ;;  %v2180_v5 = vld [vmem:[%s3178_s1 + $0x364] sm:$0xf0] }
  0x5b   : > { %905 = vmatpush.bf16.msra.mxu1 %v1675_v6  ;;  %931 = vmatpush.bf16.msra.mxu3 %v1803_v10  ;;  %v2181_v6 = vld [vmem:[%s3178_s1 + $0x374] sm:$0xf]  ;;  %v2196_v10 = vld [vmem:[%s3178_s1 + $0x3e4] sm:$0xf0]  ;;  %v1927_v11 = vor.u32 %v2180_v5, %v1926_v2  ;;  %v1907_v2 = vor.u32 %v2173_v56, %v1904_v58  ;;  %v2171_v5 = vld [vmem:[%s3178_s1 + $0x324] sm:$0xf] }
  0x5c   : > { %918 = vmatpush.bf16.msra.mxu2 %v1739_v9  ;;  %v1990_v9 = vld [vmem:[%s3178_s1 + $0x3e0] sm:$0xf]  ;;  %v1939_v13 = vor.u32 %v2181_v6, %v1936_v7  ;;  %v1896_v6 = vld [vmem:[%s3178_s1 + $0x328] sm:$0xf0]  ;;  %v2023_v7 = vor.u32 %v2204_v63, %v2022_v62  ;;  %v2032_v62 = vld [vmem:[%s3178_s1 + $0x438] sm:$0xf0] }
  0x5d   : > { %v1991_v14 = vor.u32 %v2196_v10, %v1990_v9  ;;  %v2186_v9 = vld [vmem:[%s3178_s1 + $0x394] sm:$0xf0]  ;;  %v2014_v10 = vld [vmem:[%s3178_s1 + $0x410] sm:$0xf] }
  0x5e   : > { %893 = vmatpush.bf16.msra.mxu0 %v1791_v15  ;;  %v2178_v15 = vld [vmem:[%s3178_s1 + $0x354] sm:$0xf0] }
  0x5f   : > { %906 = vmatpush.bf16.msra.mxu1 %v1667_v16  ;;  %932 = vmatpush.bf16.msra.mxu3 %v1795_v20  ;;  %v2179_v16 = vld [vmem:[%s3178_s1 + $0x364] sm:$0xf]  ;;  %v2194_v20 = vld [vmem:[%s3178_s1 + $0x3d4] sm:$0xf0]  ;;  %v1919_v24 = vor.u32 %v2178_v15, %v1918_v12  ;;  %v2168_v12 = vld [vmem:[%s3178_s1 + $0x304] sm:$0xf0] }
  0x60   : > { %919 = vmatpush.bf16.msra.mxu2 %v1731_v19  ;;  %v1982_v19 = vld [vmem:[%s3178_s1 + $0x3d0] sm:$0xf]  ;;  %v1931_v28 = vor.u32 %v2179_v16, %v1928_v17  ;;  %v2184_v16 = vld [vmem:[%s3178_s1 + $0x384] sm:$0xf0]  ;;  %v2169_v17 = vld [vmem:[%s3178_s1 + $0x314] sm:$0xf] }
  0x61   : > { %v1983_v29 = vor.u32 %v2194_v20, %v1982_v19  ;;  %v2015_v19 = vor.u32 %v2202_v50, %v2014_v10  ;;  %v2006_v20 = vld [vmem:[%s3178_s1 + $0x400] sm:$0xf]  ;;  %v2016_v10 = vld [vmem:[%s3178_s1 + $0x418] sm:$0xf0] }
  0x62   : > { %894 = vmatpush.bf16.msra.mxu0 %v1783_v30  ;;  %v2176_v30 = vld [vmem:[%s3178_s1 + $0x344] sm:$0xf0] }
  0x63   : > { %907 = vmatpush.bf16.msra.mxu1 %v1659_v31  ;;  %933 = vmatpush.bf16.msra.mxu3 %v1787_v35  ;;  %v2177_v31 = vld [vmem:[%s3178_s1 + $0x354] sm:$0xf]  ;;  %v2192_v35 = vld [vmem:[%s3178_s1 + $0x3c4] sm:$0xf0]  ;;  %v1911_v38 = vor.u32 %v2176_v30, %v1910_v27 }
  0x64   : > { %920 = vmatpush.bf16.msra.mxu2 %v1723_v34  ;;  %v1974_v34 = vld [vmem:[%s3178_s1 + $0x3c0] sm:$0xf]  ;;  %v1923_v40 = vor.u32 %v2177_v31, %v1920_v32  ;;  %v2213_v27 = vld [vmem:[%s3178_s1 + $0x474] sm:$0xf]  ;;  %v2003_v32 = vor.u32 %v2197_v22, %v2000_v23 }
  0x65   : > { %v1975_v41 = vor.u32 %v2192_v35, %v1974_v34  ;;  %v1880_v34 = vld [vmem:[%s3178_s1 + $0x308] sm:$0xf0] }
  0x66   : > { %895 = vmatpush.bf16.msra.mxu0 %v1775_v42  ;;  %v2174_v42 = vld [vmem:[%s3178_s1 + $0x334] sm:$0xf0] }
  0x67   : > { %908 = vmatpush.bf16.msra.mxu1 %v1651_v43  ;;  %934 = vmatpush.bf16.msra.mxu3 %v1779_v48  ;;  %v2175_v43 = vld [vmem:[%s3178_s1 + $0x344] sm:$0xf]  ;;  %v2030_v48 = vld [vmem:[%s3178_s1 + $0x430] sm:$0xf]  ;;  %v1903_v51 = vor.u32 %v2174_v42, %v1902_v39  ;;  %v991_v42 = vrot.slane %v2574_v26, 1 }
  0x68   : > { %921 = vmatpush.bf16.msra.mxu2 %v1715_v47  ;;  %v2190_v47 = vld [vmem:[%s3178_s1 + $0x3b4] sm:$0xf0]  ;;  %v1915_v53 = vor.u32 %v2175_v43, %v1912_v44  ;;  %v2031_v59 = vor.u32 %v2206_v49, %v2030_v48  ;;  %v2211_v39 = vld [vmem:[%s3178_s1 + $0x464] sm:$0xf]  ;;  %v992_v44 = vrot.slane %v2561_v21, 1 }
  0x69   : > { %v1967_v54 = vor.u32 %v2190_v47, %v1966_v46  ;;  %v2193_v47 = vld [vmem:[%s3178_s1 + $0x3d4] sm:$0xf] }
  0x6a   : > { %896 = vmatpush.bf16.msra.mxu0 %v1767_v60  ;;  %v1958_v60 = vld [vmem:[%s3178_s1 + $0x3a0] sm:$0xf]  ;;  %v2209_v48 = vld [vmem:[%s3178_s1 + $0x454] sm:$0xf] }
  0x6b   : > { %909 = vmatpush.bf16.msra.mxu1 %v1643_v61  ;;  %935 = vmatpush.bf16.msra.mxu3 %v1771_v8  ;;  %v2188_v61 = vld [vmem:[%s3178_s1 + $0x3a4] sm:$0xf0]  ;;  %v1950_v8 = vld [vmem:[%s3178_s1 + $0x390] sm:$0xf] }
  0x6c   : > { %922 = vmatpush.bf16.msra.mxu2 %v1707_v0  ;;  %v1895_v0 = vor.u32 %v2172_v55, %v1894_v52  ;;  %v1951_v15 = vor.u32 %v2186_v9, %v1950_v8  ;;  %v2191_v52 = vld [vmem:[%s3178_s1 + $0x3c4] sm:$0xf]  ;;  %v2040_v55 = vld [vmem:[%s3178_s1 + $0x448] sm:$0xf0]  ;;  %v1952_v8 = vld [vmem:[%s3178_s1 + $0x398] sm:$0xf0] }
  0x6d   : > { %897 = vmatmul.bf16.vlgmr.msra.gmra.mxu0 %v2561_v21  ;;  %v2201_v9 = vld [vmem:[%s3178_s1 + $0x414] sm:$0xf] }
  0x6e   : > { %1236 = vmatpush.bf16.msrb.mxu0 %v1935_v1  ;;  %910 = vmatmul.bf16.vlgmr.msra.gmra.mxu1 %v2572_v25  ;;  %v1886_v1 = vld [vmem:[%s3178_s1 + $0x310] sm:$0xf] }
  0x6f   : > { %1249 = vmatpush.bf16.msrb.mxu1 %v1999_v3  ;;  %923 = vmatmul.bf16.vlgmr.msra.gmra.mxu2 %v2574_v26  ;;  %v1959_v3 = vor.u32 %v2188_v61, %v1958_v60  ;;  %v1968_v60 = vld [vmem:[%s3178_s1 + $0x3b8] sm:$0xf0]  ;;  %v2205_v61 = vld [vmem:[%s3178_s1 + $0x434] sm:$0xf] }
  0x70   : > { %1262 = vmatpush.bf16.msrb.mxu2 %v2063_v4  ;;  %1275 = vmatpush.bf16.msrb.mxu3 %v1939_v13  ;;  %v2170_v4 = vld [vmem:[%s3178_s1 + $0x314] sm:$0xf0]  ;;  %v1942_v13 = vld [vmem:[%s3178_s1 + $0x380] sm:$0xf] }
  0x71   : > { %936 = vmatmul.bf16.vlgmr.msra.gmra.mxu3 %v2561_v21  ;;  %v1887_v57 = vor.u32 %v2170_v4, %v1886_v1  ;;  %v1943_v31 = vor.u32 %v2184_v16, %v1942_v13  ;;  %v2048_v21 = vld [vmem:[%s3178_s1 + $0x458] sm:$0xf0]  ;;  %v2187_v1 = vld [vmem:[%s3178_s1 + $0x3a4] sm:$0xf]  ;;  %v2024_v4 = vld [vmem:[%s3178_s1 + $0x428] sm:$0xf0] }
  0x72   : > { %1237 = vmatpush.bf16.msrb.mxu0 %v1927_v11  ;;  %v1878_v11 = vld [vmem:[%s3178_s1 + $0x300] sm:$0xf]  ;;  %v2199_v13 = vld [vmem:[%s3178_s1 + $0x404] sm:$0xf] }
  0x73   : > { %1250 = vmatpush.bf16.msrb.mxu1 %v1991_v14  ;;  %v1899_v14 = vor.u32 %v2171_v5, %v1896_v6 }
  0x74   : > { %1263 = vmatpush.bf16.msrb.mxu2 %v2055_v18  ;;  %1276 = vmatpush.bf16.msrb.mxu3 %v1931_v28  ;;  %v1888_v18 = vld [vmem:[%s3178_s1 + $0x318] sm:$0xf0] }
  0x75   : > { %v2064_v28 = vld [vmem:[%s3178_s1 + $0x478] sm:$0xf0]  ;;  %v1891_v30 = vor.u32 %v2169_v17, %v1888_v18 }
  0x76   : > { %1238 = vmatpush.bf16.msrb.mxu0 %v1919_v24  ;;  %v2200_v24 = vld [vmem:[%s3178_s1 + $0x404] sm:$0xf0]  ;;  %v2067_v36 = vor.u32 %v2213_v27, %v2064_v28 }
  0x77   : > { %1251 = vmatpush.bf16.msrb.mxu1 %v1983_v29  ;;  %v1879_v29 = vor.u32 %v2168_v12, %v1878_v11  ;;  %v2007_v35 = vor.u32 %v2200_v24, %v2006_v20  ;;  %v2183_v11 = vld [vmem:[%s3178_s1 + $0x384] sm:$0xf]  ;;  %v1944_v12 = vld [vmem:[%s3178_s1 + $0x388] sm:$0xf0] }
  0x78   : > { %1264 = vmatpush.bf16.msrb.mxu2 %v2047_v33  ;;  %1277 = vmatpush.bf16.msrb.mxu3 %v1923_v40  ;;  %v2167_v33 = vld [vmem:[%s3178_s1 + $0x304] sm:$0xf]  ;;  %v2056_v40 = vld [vmem:[%s3178_s1 + $0x468] sm:$0xf0] }
  0x79   : > { %v1883_v43 = vor.u32 %v2167_v33, %v1880_v34  ;;  %v2059_v46 = vor.u32 %v2211_v39, %v2056_v40 }
  0x7a   : > { %1239 = vmatpush.bf16.msrb.mxu0 %v1911_v38  ;;  %v1992_v38 = vld [vmem:[%s3178_s1 + $0x3e8] sm:$0xf0] }
  0x7b   : > { %1252 = vmatpush.bf16.msrb.mxu1 %v1975_v41  ;;  %v990_v41 = vrot.slane %v2572_v25, 1  ;;  %v1984_v25 = vld [vmem:[%s3178_s1 + $0x3d8] sm:$0xf0] }
  0x7c   : > { %1265 = vmatpush.bf16.msrb.mxu2 %v2039_v45  ;;  %1278 = vmatpush.bf16.msrb.mxu3 %v1915_v53  ;;  %v1995_v45 = vor.u32 %v2195_v37, %v1992_v38  ;;  %v1987_v49 = vor.u32 %v2193_v47, %v1984_v25  ;;  %v1976_v53 = vld [vmem:[%s3178_s1 + $0x3c8] sm:$0xf0] }
  0x7d   : > { %v1979_v56 = vor.u32 %v2191_v52, %v1976_v53 }
  0x7e   : > { %1240 = vmatpush.bf16.msrb.mxu0 %v1903_v51  ;;  %v2051_v51 = vor.u32 %v2209_v48, %v2048_v21 }
  0x7f   : > { %1253 = vmatpush.bf16.msrb.mxu1 %v1967_v54  ;;  %v2207_v54 = vld [vmem:[%s3178_s1 + $0x444] sm:$0xf] }
  0x80   : > { %1266 = vmatpush.bf16.msrb.mxu2 %v2031_v59  ;;  %1279 = vmatpush.bf16.msrb.mxu3 %v1907_v2  ;;  %v2043_v58 = vor.u32 %v2207_v54, %v2040_v55  ;;  %v2189_v59 = vld [vmem:[%s3178_s1 + $0x3b4] sm:$0xf]  ;;  %v1960_v2 = vld [vmem:[%s3178_s1 + $0x3a8] sm:$0xf0] }
  0x81   : > { %v1971_v63 = vor.u32 %v2189_v59, %v1968_v60  ;;  %v1963_v5 = vor.u32 %v2187_v1, %v1960_v2 }
  0x82   : > { %1241 = vmatpush.bf16.msrb.mxu0 %v1895_v0  ;;  %v2035_v0 = vor.u32 %v2205_v61, %v2032_v62  ;;  %v1316_v61 = vld [vmem:[%s3179_s2] sm:$0x3] }
  0x83   : > { %1254 = vmatpush.bf16.msrb.mxu1 %v1959_v3  ;;  %v2203_v3 = vld [vmem:[%s3178_s1 + $0x424] sm:$0xf]  ;;  %v1318_v2 = vperm.slane %v1316_v61, 0 }
  0x84   : > { %1267 = vmatpush.bf16.msrb.mxu2 %v2023_v7  ;;  %1280 = vmatpush.bf16.msrb.mxu3 %v1899_v14  ;;  %v2027_v6 = vor.u32 %v2203_v3, %v2024_v4  ;;  %v2185_v7 = vld [vmem:[%s3178_s1 + $0x394] sm:$0xf]  ;;  %v2008_v14 = vld [vmem:[%s3178_s1 + $0x408] sm:$0xf0] }
  0x85   : > { %v1955_v50 = vor.u32 %v2185_v7, %v1952_v8  ;;  %v2011_v16 = vor.u32 %v2199_v13, %v2008_v14 }
  0x86   : > { %1242 = vmatpush.bf16.msrb.mxu0 %v1887_v57  ;;  %v2019_v57 = vor.u32 %v2201_v9, %v2016_v10 }
  0x87   : > { %1255 = vmatpush.bf16.msrb.mxu1 %v1951_v15  ;;  %v1947_v15 = vor.u32 %v2183_v11, %v1944_v12 }
  0x88   : > { %1268 = vmatpush.bf16.msrb.mxu2 %v2015_v19  ;;  %1281 = vmatpush.bf16.msrb.mxu3 %v1891_v30 }
  0x8a   : > { %1243 = vmatpush.bf16.msrb.mxu0 %v1879_v29 }
  0x8b   : > { %1256 = vmatpush.bf16.msrb.mxu1 %v1943_v31 }
  0x8c   : > { %1269 = vmatpush.bf16.msrb.mxu2 %v2007_v35  ;;  %1282 = vmatpush.bf16.msrb.mxu3 %v1883_v43 }
  0x8d   : > { %1244 = vmatmul.bf16.vlgmr.msrb.gmra.mxu0 %v990_v41 }
  0x8e   : > { %1288 = vmatpush.bf16.msra.mxu0 %v2003_v32  ;;  %1257 = vmatmul.bf16.vlgmr.msrb.gmra.mxu1 %v991_v42 }
  0x8f   : > { %1301 = vmatpush.bf16.msra.mxu1 %v2067_v36  ;;  %1270 = vmatmul.bf16.vlgmr.msrb.gmra.mxu2 %v992_v44 }
  0x90   : > { %1283 = vmatmul.bf16.vlgmr.msrb.gmra.mxu3 %v990_v41 }
  0x92   : > { %1289 = vmatpush.bf16.msra.mxu0 %v1995_v45 }
  0x93   : > { %1302 = vmatpush.bf16.msra.mxu1 %v2059_v46 }
  0x96   : > { %1290 = vmatpush.bf16.msra.mxu0 %v1987_v49 }
  0x97   : > { %1303 = vmatpush.bf16.msra.mxu1 %v2051_v51 }
  0x9a   : > { %1291 = vmatpush.bf16.msra.mxu0 %v1979_v56 }
  0x9b   : > { %1304 = vmatpush.bf16.msra.mxu1 %v2043_v58 }
  0x9e   : > { %1292 = vmatpush.bf16.msra.mxu0 %v1971_v63 }
  0x9f   : > { %1305 = vmatpush.bf16.msra.mxu1 %v2035_v0 }
  0xa2   : > { %1293 = vmatpush.bf16.msra.mxu0 %v1963_v5 }
  0xa3   : > { %1306 = vmatpush.bf16.msra.mxu1 %v2027_v6  ;;  %v1319_v6 = vperm.slane %v1316_v61, 1 }
  0xa6   : > { %1294 = vmatpush.bf16.msra.mxu0 %v1955_v50 }
  0xa7   : > { %1307 = vmatpush.bf16.msra.mxu1 %v2019_v57 }
  0xaa   : > { %1295 = vmatpush.bf16.msra.mxu0 %v1947_v15 }
  0xab   : > { %1308 = vmatpush.bf16.msra.mxu1 %v2011_v16 }
  0xad   : > { %1296 = vmatmul.bf16.vlgmr.msra.gmra.mxu0 %v991_v42 }
  0xae   : > { %1309 = vmatmul.bf16.vlgmr.msra.gmra.mxu1 %v992_v44 }
  0xb6   : > { %v551_v17 = vpop.f32.mrf.mxu0  ;;  %v564_v18 = vpop.f32.mrf.mxu1 }
  0xb7   : > { %v565_v19 = vadd.f32 %v564_v18, %v551_v17 }
  0xb9   : > { %v577_v20 = vpop.f32.mrf.mxu2 }
  0xba   : > { %v578_v23 = vadd.f32 %v577_v20, %v565_v19 }
  0xbb   : > { %v590_v22 = vpop.f32.mrf.mxu3 }
  0xbe   : > { %v553_v24 = vpop.f32.mrf.mxu0  ;;  %v566_v27 = vpop.f32.mrf.mxu1 }
  0xc1   : > { %v579_v28 = vpop.f32.mrf.mxu2 }
  0xc3   : > { %v592_v29 = vpop.f32.mrf.mxu3 }
  0xca   : > { %v603_v30 = vpop.f32.mrf.mxu0 }
  0xcb   : > { %v604_v32 = vadd.f32 %v603_v30, %v590_v22 }
  0xcd   : > { %v616_v31 = vpop.f32.mrf.mxu1 }
  0xce   : > { %v617_v35 = vadd.f32 %v616_v31, %v604_v32 }
  0xd1   : > { %v885_v34 = vpop.f32.mrf.mxu3 }
  0xd2   : > { %v605_v37 = vpop.f32.mrf.mxu0 }
  0xd4   : > { %v872_v33 = vpop.f32.mrf.mxu2 }
  0xd5   : > { %v873_v36 = vadd.f32 %v872_v33, %v578_v23  ;;  %v618_v38 = vpop.f32.mrf.mxu1 }
  0xd7   : > { %v886_v26 = vadd.f32 %v885_v34, %v873_v36 }
  0xd9   : > { %v887_v40 = vpop.f32.mrf.mxu3 }
  0xdc   : > { %v874_v39 = vpop.f32.mrf.mxu2 }
  0xea   : > { %v898_v41 = vpop.f32.mrf.mxu0 }
  0xeb   : > { %v911_v42 = vpop.f32.mrf.mxu1  ;;  %v899_v63 = vadd.f32 %v898_v41, %v886_v26 }
  0xec   : > { %v912_v58 = vadd.f32 %v911_v42, %v617_v35 }
  0xf2   : > { %v924_v43 = vpop.f32.mrf.mxu2  ;;  %v900_v44 = vpop.f32.mrf.mxu0 }
  0xf3   : > { %v913_v46 = vpop.f32.mrf.mxu1  ;;  %v925_v59 = vadd.f32 %v924_v43, %v912_v58 }
  0xf4   : > { %v937_v45 = vpop.f32.mrf.mxu3 }
  0xf5   : > { %v938_v3 = vadd.f32 %v937_v45, %v925_v59 }
  0xfa   : > { %v926_v47 = vpop.f32.mrf.mxu2 }
  0xfc   : > { %v939_v25 = vpop.f32.mrf.mxu3 }
 0x10a   : > { %v1245_v48 = vpop.f32.mrf.mxu0 }
 0x10b   : > { %v1258_v21 = vpop.f32.mrf.mxu1 }
 0x10c   : > { %v1259_v56 = vadd.f32 %v1258_v21, %v1245_v48 }
 0x112   : > { %v1271_v49 = vpop.f32.mrf.mxu2  ;;  %v1247_v51 = vpop.f32.mrf.mxu0 }
 0x113   : > { %v1260_v52 = vpop.f32.mrf.mxu1  ;;  %v1284_v53 = vpop.f32.mrf.mxu3  ;;  %v1272_v60 = vadd.f32 %v1271_v49, %v1259_v56 }
 0x115   : > { %v1314_v4 = vadd.f32 %v1272_v60, %v899_v63 }
 0x117   : > { %v1322_v8 = vadd.f32 %v1318_v2, %v1314_v4 }
 0x11a   : > { %v1273_v54 = vpop.f32.mrf.mxu2 }
 0x11b   : > { %v1286_v55 = vpop.f32.mrf.mxu3 }
 0x12a   : > { %v1297_v62 = vpop.f32.mrf.mxu0 }
 0x12b   : > { %v1298_v0 = vadd.f32 %v1297_v62, %v1284_v53  ;;  %v1310_v1 = vpop.f32.mrf.mxu1 }
 0x12d   : > { %v1311_v5 = vadd.f32 %v1310_v1, %v1298_v0 }
 0x12f   : > { %v1315_v7 = vadd.f32 %v1311_v5, %v938_v3 }
 0x131   : > { %v1323_v9 = vadd.f32 %v1319_v6, %v1315_v7 }
 0x132   : > { %v1299_v10 = vpop.f32.mrf.mxu0 }
 0x133   : > { %v1324_v50 = vpack.c.bf16 %v1323_v9, %v1322_v8  ;;  %v1312_v57 = vpop.f32.mrf.mxu1 }
 0x135   : > { %v1326_v11 = vrot.slane %v1324_v50, 2 }
 0x137   : > { %v1330_v12 = vsel %vm1327_vm0, %v1324_v50, %v1326_v11 }
 0x138   : > { %1332 = vst [vmem:[%s170_s24] sm:$0xf] %v1330_v12 }
 0x139 PF: > { %s13_s12 = sadd.s32 1, %s2230_s12  }
 0x13a   : > { %p10_p4 = scmp.ge.s32.totalorder %s13_s12, 4  }
 0x13c   :  { %12 = sbr.rel (!%p10_p4) target bundleno = 1 (0x1), region = 64 }

// kernel: tile.75
= control target key start
LH: loop header
LB: loop body
LE: loop exit
PB: predicated region body
PF: predicated region fallthrough
CT: control target
= control target key end

     0   :  { %s22_s0 = inlined_call_operand.vmem [shape: f32[8], index: 0, kind: input, shape index: {}]   ;;  %s23_s1 = inlined_call_operand.vmem [shape: f32[4,8], index: 1, kind: output, shape index: {}]  }
   0x1   :  { %v4_v0 = vld [vmem:[%s22_s0] ss:$0 sm:$0xff] }
   0x2   :  { %5 = vst [vmem:[%s23_s1] sm:$0xf] %v4_v0 }

// kernel: tile.78
= control target key start
LH: loop header
LB: loop body
LE: loop exit
PB: predicated region body
PF: predicated region fallthrough
CT: control target
= control target key end

     0   :  { %s37_s8 = smov 8   ;;  %s38_s9 = smov 16   ;;  %vm7_vm0 = vcmask 64512   ;;  %vm13_vm1 = vcmask 261312   ;;  %vm19_vm2 = vcmask 195712   ;;  %vm25_vm3 = vcmask 130112   ;;  %s55_s0 = inlined_call_operand.vmem [shape: f32[4,8], index: 0, kind: input, shape index: {}]   ;;  %s56_s1 = inlined_call_operand.vmem [shape: f32[32], index: 1, kind: output, shape index: {}]  }
   0x1   :  { %v4_v0 = vld [vmem:[%s55_s0] sm:$0xf]  ;;  %s36_s0 = smov 24  }
   0x2   :  { %5 = vst [vmem:[#allocation1] sm:$0xf] %v4_v0 }
   0x9   :  { %v10_v1 = vld [vmem:[#allocation1 + $0x3] sm:$0x1]   ;;  %v22_v2 = vld [vmem:[#allocation1 + $0x1] sm:$0x1]   ;;  %v16_v3 = vld [vmem:[#allocation1 + $0x2] sm:$0x1]  }
   0xa   :  { %11 = vrot.lane.b32.xlu0 %v10_v1, %s36_s0  ;;  %23 = vrot.lane.b32.xlu1 %v22_v2, %s37_s8  ;;  %v6_v4 = vld [vmem:[#allocation1] sm:$0x1]  }
   0xb   :  { %8 = vst.msk [vmem:[#allocation0] sm:$0x1] %vm7_vm0, %v6_v4  }
  0x12   :  { %17 = vrot.lane.b32.xlu0 %v16_v3, %s38_s9 }
  0x7c   :  { %v12_v5 = vpop.permute.xlu0 %11   ;;  %v24_v6 = vpop.permute.xlu1 %23  }
  0x7d   :  { %14 = vst.msk [vmem:[#allocation0] sm:$0x1] %vm13_vm1, %v12_v5  }
  0x84   :  { %v18_v7 = vpop.permute.xlu0 %17  }
  0x85   :  { %20 = vst.msk [vmem:[#allocation0] sm:$0x1] %vm19_vm2, %v18_v7  }
  0x86   :  { %26 = vst.msk [vmem:[#allocation0] sm:$0x1] %vm25_vm3, %v24_v6  }
  0x8d   :  { %v29_v8 = vld [vmem:[#allocation0] sm:$0x1] }
  0x8e   :  { %32 = vst [vmem:[%s56_s1] sm:$0x1] %v29_v8 }

// kernel: tile.79
= control target key start
LH: loop header
LB: loop body
LE: loop exit
PB: predicated region body
PF: predicated region fallthrough
CT: control target
= control target key end

     0   :  { %s22_s0 = inlined_call_operand.vmem [shape: f32[32], index: 0, kind: input, shape index: {}]   ;;  %s23_s1 = inlined_call_operand.vmem [shape: f32[8,32], index: 1, kind: output, shape index: {}]  }
   0x1   :  { %v4_v0 = vld [vmem:[%s22_s0] ss:$0 sm:$0xff] }
   0x2   :  { %5 = vst [vmem:[%s23_s1] sm:$0xff] %v4_v0 }

// kernel: unet_forward.12
= control target key start
LH: loop header
LB: loop body
LE: loop exit
PB: predicated region body
PF: predicated region fallthrough
CT: control target
= control target key end

     0   :  { %s2255_s12 = smov 0   ;;  %s3197_s0 = inlined_call_operand.vmem [shape: bf16[2,10,384], index: 0, kind: input, shape index: {}]   ;;  %s3198_s1 = inlined_call_operand.vmem [shape: bf16[3,384,256], index: 1, kind: input, shape index: {}]   ;;  %s3199_s2 = inlined_call_operand.vmem [shape: f32[1,256], index: 2, kind: input, shape index: {}]   ;;  %s3200_s3 = inlined_call_operand.vmem [shape: bf16[2,8,256], index: 3, kind: output, shape index: {}]  }
   0x1 LB: > { %s1391_s13 = sadd.s32 4294967295, %s2233_s12   ;;  %p1395_p0 = scmp.ge.s32.totalorder %s2233_s12, 1  ;;  %s2233_s12 = sphi %s2255_s12, %s13_s12  }
   0x2   : > { %p137_p1 = scmp.lt.s32.totalorder %s2233_s12, 3 }
   0x4   : > { %p138_p2 = pnand %p1395_p0, %p137_p1 }
   0x5   : > { %p161_p3 = scmp.lt.s32.totalorder (!%p138_p2), %s1391_s13, 1 }
   0x6   : > { %141 = sbr.rel (%p138_p2) target bundleno = 310 (0x136), region = 32 }
   0xb   : > { %v1505_v0 = vld [vmem:[%s3198_s1 + $0x1f0] sm:$0xf]  ;;  %v2137_v1 = vld [vmem:[%s3198_s1 + $0x1f4] sm:$0xf0]  ;;  %v2136_v9 = vld [vmem:[%s3198_s1 + $0x1f4] sm:$0xf] }
   0xc   : > { %v1569_v2 = vld [vmem:[%s3198_s1 + $0x270] sm:$0xf]  ;;  %v1506_v3 = vor.u32 %v2137_v1, %v1505_v0  ;;  %v2153_v4 = vld [vmem:[%s3198_s1 + $0x274] sm:$0xf0]  ;;  %v1507_v10 = vld [vmem:[%s3198_s1 + $0x1f8] sm:$0xf0] }
   0xd   : > { %v1633_v5 = vld [vmem:[%s3198_s1 + $0x2f0] sm:$0xf]  ;;  %v2169_v6 = vld [vmem:[%s3198_s1 + $0x2f4] sm:$0xf0]  ;;  %v1570_v7 = vor.u32 %v2153_v4, %v1569_v2  ;;  %v1497_v11 = vld [vmem:[%s3198_s1 + $0x1e0] sm:$0xf]  ;;  %v1510_v12 = vor.u32 %v2136_v9, %v1507_v10 }
   0xe   : > { %v1634_v8 = vor.u32 %v2169_v6, %v1633_v5  ;;  %549 = vmatpush.bf16.msra.mxu0 %v1506_v3  ;;  %v2135_v13 = vld [vmem:[%s3198_s1 + $0x1e4] sm:$0xf0]  ;;  %v1561_v14 = vld [vmem:[%s3198_s1 + $0x260] sm:$0xf]  ;;  %v2134_v20 = vld [vmem:[%s3198_s1 + $0x1e4] sm:$0xf] }
   0xf   : > { %v2151_v15 = vld [vmem:[%s3198_s1 + $0x264] sm:$0xf0]  ;;  %562 = vmatpush.bf16.msra.mxu1 %v1570_v7  ;;  %v1498_v16 = vor.u32 %v2135_v13, %v1497_v11  ;;  %v1625_v18 = vld [vmem:[%s3198_s1 + $0x2e0] sm:$0xf]  ;;  %588 = vmatpush.bf16.msra.mxu3 %v1510_v12  ;;  %v1499_v22 = vld [vmem:[%s3198_s1 + $0x1e8] sm:$0xf0] }
  0x10   : > { %575 = vmatpush.bf16.msra.mxu2 %v1634_v8  ;;  %v1562_v17 = vor.u32 %v2151_v15, %v1561_v14  ;;  %v2167_v19 = vld [vmem:[%s3198_s1 + $0x2e4] sm:$0xf0]  ;;  %v1489_v23 = vld [vmem:[%s3198_s1 + $0x1d0] sm:$0xf]  ;;  %v2133_v24 = vld [vmem:[%s3198_s1 + $0x1d4] sm:$0xf0]  ;;  %v1502_v25 = vor.u32 %v2134_v20, %v1499_v22 }
  0x11   : > { %v1626_v21 = vor.u32 %v2167_v19, %v1625_v18  ;;  %v1553_v26 = vld [vmem:[%s3198_s1 + $0x250] sm:$0xf]  ;;  %v2149_v27 = vld [vmem:[%s3198_s1 + $0x254] sm:$0xf0]  ;;  %v1490_v29 = vor.u32 %v2133_v24, %v1489_v23  ;;  %v2132_v31 = vld [vmem:[%s3198_s1 + $0x1d4] sm:$0xf] }
  0x12   : > { %v1617_v28 = vld [vmem:[%s3198_s1 + $0x2d0] sm:$0xf]  ;;  %550 = vmatpush.bf16.msra.mxu0 %v1498_v16  ;;  %v2165_v30 = vld [vmem:[%s3198_s1 + $0x2d4] sm:$0xf0]  ;;  %v1491_v32 = vld [vmem:[%s3198_s1 + $0x1d8] sm:$0xf0]  ;;  %v1554_v33 = vor.u32 %v2149_v27, %v1553_v26 }
  0x13   : > { %563 = vmatpush.bf16.msra.mxu1 %v1562_v17  ;;  %v1618_v34 = vor.u32 %v2165_v30, %v1617_v28  ;;  %v1481_v35 = vld [vmem:[%s3198_s1 + $0x1c0] sm:$0xf]  ;;  %v2131_v36 = vld [vmem:[%s3198_s1 + $0x1c4] sm:$0xf0]  ;;  %589 = vmatpush.bf16.msra.mxu3 %v1502_v25  ;;  %v1494_v38 = vor.u32 %v2132_v31, %v1491_v32  ;;  %v2130_v42 = vld [vmem:[%s3198_s1 + $0x1c4] sm:$0xf] }
  0x14   : > { %576 = vmatpush.bf16.msra.mxu2 %v1626_v21  ;;  %v1545_v37 = vld [vmem:[%s3198_s1 + $0x240] sm:$0xf]  ;;  %v2147_v39 = vld [vmem:[%s3198_s1 + $0x244] sm:$0xf0]  ;;  %v1483_v43 = vld [vmem:[%s3198_s1 + $0x1c8] sm:$0xf0]  ;;  %v1482_v44 = vor.u32 %v2131_v36, %v1481_v35 }
  0x15   : > { %v1609_v40 = vld [vmem:[%s3198_s1 + $0x2c0] sm:$0xf]  ;;  %v2163_v41 = vld [vmem:[%s3198_s1 + $0x2c4] sm:$0xf0]  ;;  %v1546_v45 = vor.u32 %v2147_v39, %v1545_v37  ;;  %v1473_v47 = vld [vmem:[%s3198_s1 + $0x1b0] sm:$0xf]  ;;  %v1486_v50 = vor.u32 %v2130_v42, %v1483_v43 }
  0x16   : > { %551 = vmatpush.bf16.msra.mxu0 %v1490_v29  ;;  %v1610_v46 = vor.u32 %v2163_v41, %v1609_v40  ;;  %v2129_v48 = vld [vmem:[%s3198_s1 + $0x1b4] sm:$0xf0]  ;;  %v1537_v49 = vld [vmem:[%s3198_s1 + $0x230] sm:$0xf]  ;;  %v2128_v54 = vld [vmem:[%s3198_s1 + $0x1b4] sm:$0xf] }
  0x17   : > { %564 = vmatpush.bf16.msra.mxu1 %v1554_v33  ;;  %590 = vmatpush.bf16.msra.mxu3 %v1494_v38  ;;  %v2145_v51 = vld [vmem:[%s3198_s1 + $0x234] sm:$0xf0]  ;;  %v1601_v52 = vld [vmem:[%s3198_s1 + $0x2b0] sm:$0xf]  ;;  %v1475_v55 = vld [vmem:[%s3198_s1 + $0x1b8] sm:$0xf0]  ;;  %v1474_v56 = vor.u32 %v2129_v48, %v1473_v47 }
  0x18   : > { %577 = vmatpush.bf16.msra.mxu2 %v1618_v34  ;;  %v2161_v53 = vld [vmem:[%s3198_s1 + $0x2b4] sm:$0xf0]  ;;  %v1538_v57 = vor.u32 %v2145_v51, %v1537_v49  ;;  %v1465_v59 = vld [vmem:[%s3198_s1 + $0x1a0] sm:$0xf]  ;;  %v2127_v60 = vld [vmem:[%s3198_s1 + $0x1a4] sm:$0xf0]  ;;  %v1478_v62 = vor.u32 %v2128_v54, %v1475_v55 }
  0x19   : > { %v1602_v58 = vor.u32 %v2161_v53, %v1601_v52  ;;  %v1529_v61 = vld [vmem:[%s3198_s1 + $0x220] sm:$0xf]  ;;  %v2143_v63 = vld [vmem:[%s3198_s1 + $0x224] sm:$0xf0]  ;;  %v2126_v2 = vld [vmem:[%s3198_s1 + $0x1a4] sm:$0xf]  ;;  %v1466_v4 = vor.u32 %v2127_v60, %v1465_v59 }
  0x1a   : > { %552 = vmatpush.bf16.msra.mxu0 %v1482_v44  ;;  %v1593_v0 = vld [vmem:[%s3198_s1 + $0x2a0] sm:$0xf]  ;;  %v2159_v1 = vld [vmem:[%s3198_s1 + $0x2a4] sm:$0xf0]  ;;  %v1467_v3 = vld [vmem:[%s3198_s1 + $0x1a8] sm:$0xf0]  ;;  %v1530_v5 = vor.u32 %v2143_v63, %v1529_v61 }
  0x1b   : > { %565 = vmatpush.bf16.msra.mxu1 %v1546_v45  ;;  %591 = vmatpush.bf16.msra.mxu3 %v1486_v50  ;;  %v1594_v6 = vor.u32 %v2159_v1, %v1593_v0  ;;  %v1457_v7 = vld [vmem:[%s3198_s1 + $0x190] sm:$0xf]  ;;  %v2125_v8 = vld [vmem:[%s3198_s1 + $0x194] sm:$0xf0]  ;;  %v1470_v10 = vor.u32 %v2126_v2, %v1467_v3  ;;  %v2124_v14 = vld [vmem:[%s3198_s1 + $0x194] sm:$0xf] }
  0x1c   : > { %578 = vmatpush.bf16.msra.mxu2 %v1610_v46  ;;  %v1521_v9 = vld [vmem:[%s3198_s1 + $0x210] sm:$0xf]  ;;  %v2141_v11 = vld [vmem:[%s3198_s1 + $0x214] sm:$0xf0]  ;;  %v1459_v15 = vld [vmem:[%s3198_s1 + $0x198] sm:$0xf0]  ;;  %v1458_v16 = vor.u32 %v2125_v8, %v1457_v7 }
  0x1d   : > { %v1585_v12 = vld [vmem:[%s3198_s1 + $0x290] sm:$0xf]  ;;  %v2157_v13 = vld [vmem:[%s3198_s1 + $0x294] sm:$0xf0]  ;;  %v1449_v17 = vld [vmem:[%s3198_s1 + $0x180] sm:$0xf]  ;;  %v1522_v19 = vor.u32 %v2141_v11, %v1521_v9  ;;  %v1462_v24 = vor.u32 %v2124_v14, %v1459_v15 }
  0x1e   : > { %553 = vmatpush.bf16.msra.mxu0 %v1474_v56  ;;  %v2123_v18 = vld [vmem:[%s3198_s1 + $0x184] sm:$0xf0]  ;;  %v1586_v20 = vor.u32 %v2157_v13, %v1585_v12  ;;  %v1513_v21 = vld [vmem:[%s3198_s1 + $0x200] sm:$0xf]  ;;  %v2152_v26 = vld [vmem:[%s3198_s1 + $0x274] sm:$0xf] }
  0x1f   : > { %566 = vmatpush.bf16.msra.mxu1 %v1538_v57  ;;  %592 = vmatpush.bf16.msra.mxu3 %v1478_v62  ;;  %v2139_v22 = vld [vmem:[%s3198_s1 + $0x204] sm:$0xf0]  ;;  %v1577_v23 = vld [vmem:[%s3198_s1 + $0x280] sm:$0xf]  ;;  %v1571_v27 = vld [vmem:[%s3198_s1 + $0x278] sm:$0xf0]  ;;  %v1450_v31 = vor.u32 %v2123_v18, %v1449_v17 }
  0x20   : > { %579 = vmatpush.bf16.msra.mxu2 %v1602_v58  ;;  %v2155_v25 = vld [vmem:[%s3198_s1 + $0x284] sm:$0xf0]  ;;  %v2168_v28 = vld [vmem:[%s3198_s1 + $0x2f4] sm:$0xf]  ;;  %v1635_v29 = vld [vmem:[%s3198_s1 + $0x2f8] sm:$0xf0]  ;;  %v1514_v35 = vor.u32 %v2139_v22, %v1513_v21  ;;  %v1574_v39 = vor.u32 %v2152_v26, %v1571_v27 }
  0x21   : > { %v1697_v30 = vld [vmem:[%s3198_s1 + $0x70] sm:$0xf]  ;;  %v2089_v32 = vld [vmem:[%s3198_s1 + $0x74] sm:$0xf0]  ;;  %v2122_v33 = vld [vmem:[%s3198_s1 + $0x184] sm:$0xf]  ;;  %v1578_v36 = vor.u32 %v2155_v25, %v1577_v23  ;;  %v1638_v40 = vor.u32 %v2168_v28, %v1635_v29 }
  0x22   : > { %554 = vmatpush.bf16.msra.mxu0 %v1466_v4  ;;  %v1451_v34 = vld [vmem:[%s3198_s1 + $0x188] sm:$0xf0]  ;;  %v1761_v37 = vld [vmem:[%s3198_s1 + $0xf0] sm:$0xf]  ;;  %v2105_v38 = vld [vmem:[%s3198_s1 + $0xf4] sm:$0xf0]  ;;  %v1698_v42 = vor.u32 %v2089_v32, %v1697_v30 }
  0x23   : > { %567 = vmatpush.bf16.msra.mxu1 %v1530_v5  ;;  %593 = vmatpush.bf16.msra.mxu3 %v1470_v10  ;;  %v2150_v41 = vld [vmem:[%s3198_s1 + $0x264] sm:$0xf]  ;;  %v1454_v43 = vor.u32 %v2122_v33, %v1451_v34  ;;  %v1563_v44 = vld [vmem:[%s3198_s1 + $0x268] sm:$0xf0]  ;;  %v1762_v47 = vor.u32 %v2105_v38, %v1761_v37  ;;  %v1689_v48 = vld [vmem:[%s3198_s1 + $0x60] sm:$0xf] }
  0x24   : > { %580 = vmatpush.bf16.msra.mxu2 %v1594_v6  ;;  %v2166_v45 = vld [vmem:[%s3198_s1 + $0x2e4] sm:$0xf]  ;;  %v1627_v46 = vld [vmem:[%s3198_s1 + $0x2e8] sm:$0xf0]  ;;  %v2087_v49 = vld [vmem:[%s3198_s1 + $0x64] sm:$0xf0]  ;;  %v1566_v52 = vor.u32 %v2150_v41, %v1563_v44 }
  0x25   : > { %v1753_v50 = vld [vmem:[%s3198_s1 + $0xe0] sm:$0xf]  ;;  %v2103_v51 = vld [vmem:[%s3198_s1 + $0xe4] sm:$0xf0]  ;;  %v1630_v53 = vor.u32 %v2166_v45, %v1627_v46  ;;  %v2148_v54 = vld [vmem:[%s3198_s1 + $0x254] sm:$0xf]  ;;  %v1690_v56 = vor.u32 %v2087_v49, %v1689_v48 }
  0x26   : > { %555 = vmatpush.bf16.msra.mxu0 %v1458_v16  ;;  %v1555_v55 = vld [vmem:[%s3198_s1 + $0x258] sm:$0xf0]  ;;  %v2164_v57 = vld [vmem:[%s3198_s1 + $0x2d4] sm:$0xf]  ;;  %s3202_s13 = smov (!%p161_p3, %s1391_s13), 1  ;;  %v1754_v59 = vor.u32 %v2103_v51, %v1753_v50 }
  0x27   : > { %568 = vmatpush.bf16.msra.mxu1 %v1522_v19  ;;  %594 = vmatpush.bf16.msra.mxu3 %v1462_v24  ;;  %v1619_v58 = vld [vmem:[%s3198_s1 + $0x2d8] sm:$0xf0]  ;;  %v1681_v60 = vld [vmem:[%s3198_s1 + $0x50] sm:$0xf]  ;;  %v2085_v61 = vld [vmem:[%s3198_s1 + $0x54] sm:$0xf0]  ;;  %v1558_v0 = vor.u32 %v2148_v54, %v1555_v55 }
  0x28   : > { %581 = vmatpush.bf16.msra.mxu2 %v1586_v20  ;;  %v1745_v62 = vld [vmem:[%s3198_s1 + $0xd0] sm:$0xf]  ;;  %v2101_v63 = vld [vmem:[%s3198_s1 + $0xd4] sm:$0xf0]  ;;  %s2218_s15 = smul.u32 24, %s3202_s13  ;;  %v1622_v1 = vor.u32 %v2164_v57, %v1619_v58  ;;  %v1682_v5 = vor.u32 %v2085_v61, %v1681_v60  ;;  %s2073_s21 = sshll.u32 %s3202_s13, 3 }
  0x29   : > { %v2146_v2 = vld [vmem:[%s3198_s1 + $0x244] sm:$0xf]  ;;  %v1547_v3 = vld [vmem:[%s3198_s1 + $0x248] sm:$0xf0]  ;;  %v1673_v7 = vld [vmem:[%s3198_s1 + $0x40] sm:$0xf]  ;;  %v1746_v9 = vor.u32 %v2101_v63, %v1745_v62  ;;  %s170_s24 = scalar_lea.vmem %s3200_s3, %s2073_s21 }
  0x2a   : > { %556 = vmatpush.bf16.msra.mxu0 %v1450_v31  ;;  %v2162_v4 = vld [vmem:[%s3198_s1 + $0x2c4] sm:$0xf]  ;;  %v1611_v6 = vld [vmem:[%s3198_s1 + $0x2c8] sm:$0xf0]  ;;  %v2083_v8 = vld [vmem:[%s3198_s1 + $0x44] sm:$0xf0]  ;;  %s165_s30 = scalar_lea.vmem %s3197_s0, %s2218_s15  ;;  %v1550_v20 = vor.u32 %v2146_v2, %v1547_v3 }
  0x2b   : > { %569 = vmatpush.bf16.msra.mxu1 %v1514_v35  ;;  %595 = vmatpush.bf16.msra.mxu3 %v1454_v43  ;;  %v172_v10 = vld [vmem:[%s165_s30 + $0x8] sm:$0xf]  ;;  %v174_v11 = vld [vmem:[%s165_s30 + $0x14] sm:$0x1]  ;;  %v171_v12 = vld [vmem:[%s165_s30] sm:$0xff]  ;;  %v1614_v21 = vor.u32 %v2162_v4, %v1611_v6  ;;  %v1674_v26 = vor.u32 %v2083_v8, %v1673_v7 }
  0x2c   : > { %582 = vmatpush.bf16.msra.mxu2 %v1578_v36  ;;  %v1737_v13 = vld [vmem:[%s3198_s1 + $0xc0] sm:$0xf]  ;;  %v2099_v14 = vld [vmem:[%s3198_s1 + $0xc4] sm:$0xf0]  ;;  %v2561_v15 = vunpack.c.l.b16 %v172_v10  ;;  %v281_v16 = vunpack.c.l.b16 %v174_v11  ;;  %v173_v17 = vld [vmem:[%s165_s30 + $0xc] sm:$0x11]  ;;  %v2563_v18 = vunpack.c.l.b16 %v171_v12  ;;  %v2565_v19 = vunpack.c.h.b16 %v171_v12 }
  0x2d   : > { %v2144_v22 = vld [vmem:[%s3198_s1 + $0x234] sm:$0xf]  ;;  %v1539_v23 = vld [vmem:[%s3198_s1 + $0x238] sm:$0xf0]  ;;  %v279_v24 = vunpack.c.l.b16 %v173_v17  ;;  %v280_v25 = vunpack.c.h.b16 %v173_v17  ;;  %v1738_v30 = vor.u32 %v2099_v14, %v1737_v13  ;;  %v1665_v31 = vld [vmem:[%s3198_s1 + $0x30] sm:$0xf] }
  0x2e   : > { %601 = vmatpush.bf16.msrb.mxu0 %v1574_v39  ;;  %v2574_v27 = vpack.c.b16 %v281_v16, %v2561_v15  ;;  %v2160_v28 = vld [vmem:[%s3198_s1 + $0x2b4] sm:$0xf]  ;;  %v1603_v29 = vld [vmem:[%s3198_s1 + $0x2b8] sm:$0xf0]  ;;  %v2081_v32 = vld [vmem:[%s3198_s1 + $0x34] sm:$0xf0]  ;;  %v1542_v38 = vor.u32 %v2144_v22, %v1539_v23 }
  0x2f   : > { %614 = vmatpush.bf16.msrb.mxu1 %v1638_v40  ;;  %886 = vmatpush.bf16.msrb.mxu3 %v1762_v47  ;;  %v2589_v33 = vpack.c.b16 %v279_v24, %v2563_v18  ;;  %v1729_v34 = vld [vmem:[%s3198_s1 + $0xb0] sm:$0xf]  ;;  %v2595_v35 = vpack.c.b16 %v280_v25, %v2565_v19  ;;  %v2097_v39 = vld [vmem:[%s3198_s1 + $0xb4] sm:$0xf0]  ;;  %v2142_v40 = vld [vmem:[%s3198_s1 + $0x224] sm:$0xf]  ;;  %v1606_v41 = vor.u32 %v2160_v28, %v1603_v29 }
  0x30   : > { %873 = vmatpush.bf16.msrb.mxu2 %v1698_v42  ;;  %v300_v36 = vshrl.u32 %v2574_v27, 16  ;;  %v302_v37 = vshll.u32 %v2574_v27, 16  ;;  %v1531_v44 = vld [vmem:[%s3198_s1 + $0x228] sm:$0xf0]  ;;  %v2158_v47 = vld [vmem:[%s3198_s1 + $0x2a4] sm:$0xf]  ;;  %v1666_v50 = vor.u32 %v2081_v32, %v1665_v31  ;;  %v1730_v54 = vor.u32 %v2097_v39, %v1729_v34 }
  0x31   : > { %v286_v42 = vshrl.u32 %v2589_v33, 16  ;;  %v288_v43 = vshll.u32 %v2589_v33, 16  ;;  %v295_v45 = vshll.u32 %v2595_v35, 16  ;;  %v1595_v48 = vld [vmem:[%s3198_s1 + $0x2a8] sm:$0xf0]  ;;  %v293_v49 = vshrl.u32 %v2595_v35, 16 }
  0x32   : > { %602 = vmatpush.bf16.msrb.mxu0 %v1566_v52  ;;  %v304_v46 = vrot.slane %v302_v37, 1  ;;  %v1657_v55 = vld [vmem:[%s3198_s1 + $0x20] sm:$0xf]  ;;  %v1534_v58 = vor.u32 %v2142_v40, %v1531_v44  ;;  %v2095_v61 = vld [vmem:[%s3198_s1 + $0xa4] sm:$0xf0] }
  0x33   : > { %615 = vmatpush.bf16.msrb.mxu1 %v1630_v53  ;;  %887 = vmatpush.bf16.msrb.mxu3 %v1754_v59  ;;  %v290_v51 = vrot.slane %v288_v43, 1  ;;  %v297_v52 = vrot.slane %v295_v45, 1  ;;  %v1598_v59 = vor.u32 %v2158_v47, %v1595_v48  ;;  %v1721_v60 = vld [vmem:[%s3198_s1 + $0xa0] sm:$0xf]  ;;  %v2140_v62 = vld [vmem:[%s3198_s1 + $0x214] sm:$0xf] }
  0x34   : > { %874 = vmatpush.bf16.msrb.mxu2 %v1690_v56  ;;  %v2618_v53 = vor.u32 %v304_v46, %v300_v36  ;;  %v2079_v56 = vld [vmem:[%s3198_s1 + $0x24] sm:$0xf0]  ;;  %v1587_v2 = vld [vmem:[%s3198_s1 + $0x298] sm:$0xf0]  ;;  %v1722_v4 = vor.u32 %v2095_v61, %v1721_v60  ;;  %v2077_v6 = vld [vmem:[%s3198_s1 + $0x14] sm:$0xf0] }
  0x35   : > { %v291_v57 = vor.u32 %v290_v51, %v286_v42  ;;  %v2636_v63 = vor.u32 %v297_v52, %v293_v49  ;;  %v1658_v3 = vor.u32 %v2079_v56, %v1657_v55  ;;  %v1713_v7 = vld [vmem:[%s3198_s1 + $0x90] sm:$0xf]  ;;  %v2093_v10 = vld [vmem:[%s3198_s1 + $0x94] sm:$0xf0]  ;;  %v2138_v11 = vld [vmem:[%s3198_s1 + $0x204] sm:$0xf]  ;;  %v2728_v49 = vpack.c.b16 %v2563_v18, %v2563_v18 }
  0x36   : > { %603 = vmatpush.bf16.msrb.mxu0 %v1558_v0  ;;  %583 = vmatmul.bf16.vlgmr.msra.gmra.mxu2 %v2618_v53  ;;  %v1523_v0 = vld [vmem:[%s3198_s1 + $0x218] sm:$0xf0]  ;;  %v1515_v12 = vld [vmem:[%s3198_s1 + $0x208] sm:$0xf0]  ;;  %v2154_v13 = vld [vmem:[%s3198_s1 + $0x284] sm:$0xf]  ;;  %v1714_v23 = vor.u32 %v2093_v10, %v1713_v7 }
  0x37   : > { %616 = vmatpush.bf16.msrb.mxu1 %v1622_v1  ;;  %888 = vmatpush.bf16.msrb.mxu3 %v1746_v9  ;;  %v2156_v1 = vld [vmem:[%s3198_s1 + $0x294] sm:$0xf]  ;;  %v1526_v8 = vor.u32 %v2140_v62, %v1523_v0  ;;  %v1579_v14 = vld [vmem:[%s3198_s1 + $0x288] sm:$0xf0]  ;;  %v1825_v16 = vld [vmem:[%s3198_s1 + $0x170] sm:$0xf]  ;;  %v1518_v28 = vor.u32 %v2138_v11, %v1515_v12 }
  0x38   : > { %875 = vmatpush.bf16.msrb.mxu2 %v1682_v5  ;;  %596 = vmatmul.bf16.vlgmr.msra.gmra.mxu3 %v291_v57  ;;  %v1649_v5 = vld [vmem:[%s3198_s1 + $0x10] sm:$0xf]  ;;  %v1590_v9 = vor.u32 %v2156_v1, %v1587_v2  ;;  %v1699_v22 = vld [vmem:[%s3198_s1 + $0x78] sm:$0xf0]  ;;  %v1641_v24 = vld [vmem:[%s3198_s1] sm:$0xf]  ;;  %v1582_v29 = vor.u32 %v2154_v13, %v1579_v14 }
  0x39   : > { %557 = vmatmul.bf16.vlgmr.msra.gmra.mxu0 %v291_v57  ;;  %570 = vmatmul.bf16.vlgmr.msra.gmra.mxu1 %v2636_v63  ;;  %v1650_v17 = vor.u32 %v2077_v6, %v1649_v5  ;;  %v2075_v25 = vld [vmem:[%s3198_s1 + $0x4] sm:$0xf0]  ;;  %v1705_v31 = vld [vmem:[%s3198_s1 + $0x80] sm:$0xf]  ;;  %v2120_v37 = vld [vmem:[%s3198_s1 + $0x174] sm:$0xf] }
  0x3a   : > { %604 = vmatpush.bf16.msrb.mxu0 %v1550_v20  ;;  %v2121_v20 = vld [vmem:[%s3198_s1 + $0x174] sm:$0xf0]  ;;  %v2091_v32 = vld [vmem:[%s3198_s1 + $0x84] sm:$0xf0]  ;;  %v1642_v39 = vor.u32 %v2075_v25, %v1641_v24  ;;  %v1817_v40 = vld [vmem:[%s3198_s1 + $0x160] sm:$0xf] }
  0x3b   : > { %617 = vmatpush.bf16.msrb.mxu1 %v1614_v21  ;;  %889 = vmatpush.bf16.msrb.mxu3 %v1738_v30  ;;  %v2088_v21 = vld [vmem:[%s3198_s1 + $0x74] sm:$0xf]  ;;  %v1763_v30 = vld [vmem:[%s3198_s1 + $0xf8] sm:$0xf0]  ;;  %v1826_v34 = vor.u32 %v2121_v20, %v1825_v16  ;;  %v1706_v43 = vor.u32 %v2091_v32, %v1705_v31  ;;  %v2086_v44 = vld [vmem:[%s3198_s1 + $0x64] sm:$0xf] }
  0x3c   : > { %876 = vmatpush.bf16.msrb.mxu2 %v1674_v26  ;;  %v2104_v26 = vld [vmem:[%s3198_s1 + $0xf4] sm:$0xf]  ;;  %v1702_v36 = vor.u32 %v2088_v21, %v1699_v22  ;;  %v1691_v45 = vld [vmem:[%s3198_s1 + $0x68] sm:$0xf0]  ;;  %v2102_v47 = vld [vmem:[%s3198_s1 + $0xe4] sm:$0xf] }
  0x3d   : > { %v1766_v42 = vor.u32 %v2104_v26, %v1763_v30  ;;  %v1755_v48 = vld [vmem:[%s3198_s1 + $0xe8] sm:$0xf0]  ;;  %v2118_v51 = vld [vmem:[%s3198_s1 + $0x164] sm:$0xf]  ;;  %v1694_v55 = vor.u32 %v2086_v44, %v1691_v45  ;;  %v1809_v18 = vld [vmem:[%s3198_s1 + $0x150] sm:$0xf] }
  0x3e   : > { %605 = vmatpush.bf16.msrb.mxu0 %v1542_v38  ;;  %v1827_v38 = vld [vmem:[%s3198_s1 + $0x178] sm:$0xf0]  ;;  %v1819_v52 = vld [vmem:[%s3198_s1 + $0x168] sm:$0xf0]  ;;  %v2117_v56 = vld [vmem:[%s3198_s1 + $0x154] sm:$0xf0]  ;;  %v1758_v57 = vor.u32 %v2102_v47, %v1755_v48 }
  0x3f   : > { %618 = vmatpush.bf16.msrb.mxu1 %v1606_v41  ;;  %890 = vmatpush.bf16.msrb.mxu3 %v1730_v54  ;;  %v2119_v41 = vld [vmem:[%s3198_s1 + $0x164] sm:$0xf0]  ;;  %v1830_v46 = vor.u32 %v2120_v37, %v1827_v38  ;;  %v2738_v54 = vpack.c.b16 %v2565_v19, %v2565_v19  ;;  %v1683_v19 = vld [vmem:[%s3198_s1 + $0x58] sm:$0xf0]  ;;  %v2100_v60 = vld [vmem:[%s3198_s1 + $0xd4] sm:$0xf]  ;;  %v1810_v62 = vor.u32 %v2117_v56, %v1809_v18 }
  0x40   : > { %877 = vmatpush.bf16.msrb.mxu2 %v1666_v50  ;;  %v1818_v50 = vor.u32 %v2119_v41, %v1817_v40  ;;  %v1747_v61 = vld [vmem:[%s3198_s1 + $0xd8] sm:$0xf0]  ;;  %v2116_v0 = vld [vmem:[%s3198_s1 + $0x154] sm:$0xf]  ;;  %v2082_v6 = vld [vmem:[%s3198_s1 + $0x44] sm:$0xf] }
  0x41   : > { %v1811_v1 = vld [vmem:[%s3198_s1 + $0x158] sm:$0xf0]  ;;  %v1750_v5 = vor.u32 %v2100_v60, %v1747_v61  ;;  %v1675_v7 = vld [vmem:[%s3198_s1 + $0x48] sm:$0xf0]  ;;  %v2114_v12 = vld [vmem:[%s3198_s1 + $0x144] sm:$0xf] }
  0x42   : > { %606 = vmatpush.bf16.msrb.mxu0 %v1534_v58  ;;  %v2084_v58 = vld [vmem:[%s3198_s1 + $0x54] sm:$0xf]  ;;  %v1739_v10 = vld [vmem:[%s3198_s1 + $0xc8] sm:$0xf0]  ;;  %v1678_v13 = vor.u32 %v2082_v6, %v1675_v7  ;;  %v1793_v14 = vld [vmem:[%s3198_s1 + $0x130] sm:$0xf] }
  0x43   : > { %619 = vmatpush.bf16.msrb.mxu1 %v1598_v59  ;;  %891 = vmatpush.bf16.msrb.mxu3 %v1722_v4  ;;  %v1822_v59 = vor.u32 %v2118_v51, %v1819_v52  ;;  %v1686_v2 = vor.u32 %v2084_v58, %v1683_v19  ;;  %v2115_v4 = vld [vmem:[%s3198_s1 + $0x144] sm:$0xf0]  ;;  %v2113_v16 = vld [vmem:[%s3198_s1 + $0x134] sm:$0xf0]  ;;  %v2080_v20 = vld [vmem:[%s3198_s1 + $0x34] sm:$0xf] }
  0x44   : > { %878 = vmatpush.bf16.msrb.mxu2 %v1658_v3  ;;  %v1801_v3 = vld [vmem:[%s3198_s1 + $0x140] sm:$0xf]  ;;  %v2096_v22 = vld [vmem:[%s3198_s1 + $0xb4] sm:$0xf]  ;;  %v1794_v24 = vor.u32 %v2113_v16, %v1793_v14  ;;  %v1795_v26 = vld [vmem:[%s3198_s1 + $0x138] sm:$0xf0] }
  0x45   : > { %v1802_v11 = vor.u32 %v2115_v4, %v1801_v3  ;;  %v2112_v25 = vld [vmem:[%s3198_s1 + $0x134] sm:$0xf]  ;;  %v2111_v30 = vld [vmem:[%s3198_s1 + $0x124] sm:$0xf0]  ;;  %v2078_v32 = vld [vmem:[%s3198_s1 + $0x24] sm:$0xf] }
  0x46   : > { %607 = vmatpush.bf16.msrb.mxu0 %v1526_v8  ;;  %v1814_v8 = vor.u32 %v2116_v0, %v1811_v1  ;;  %v2094_v37 = vld [vmem:[%s3198_s1 + $0xa4] sm:$0xf]  ;;  %v1723_v38 = vld [vmem:[%s3198_s1 + $0xa8] sm:$0xf0]  ;;  %v2109_v44 = vld [vmem:[%s3198_s1 + $0x114] sm:$0xf0] }
  0x47   : > { %620 = vmatpush.bf16.msrb.mxu1 %v1590_v9  ;;  %892 = vmatpush.bf16.msrb.mxu3 %v1714_v23  ;;  %v2098_v9 = vld [vmem:[%s3198_s1 + $0xc4] sm:$0xf]  ;;  %v1731_v23 = vld [vmem:[%s3198_s1 + $0xb8] sm:$0xf0]  ;;  %v1787_v41 = vld [vmem:[%s3198_s1 + $0x128] sm:$0xf0]  ;;  %v1726_v45 = vor.u32 %v2094_v37, %v1723_v38 }
  0x48   : > { %879 = vmatpush.bf16.msrb.mxu2 %v1650_v17  ;;  %v1742_v17 = vor.u32 %v2098_v9, %v1739_v10  ;;  %v1734_v31 = vor.u32 %v2096_v22, %v1731_v23  ;;  %v2110_v40 = vld [vmem:[%s3198_s1 + $0x124] sm:$0xf]  ;;  %v1651_v47 = vld [vmem:[%s3198_s1 + $0x18] sm:$0xf0]  ;;  %v2108_v52 = vld [vmem:[%s3198_s1 + $0x114] sm:$0xf]  ;;  %v629_v22 = vpack.c.b16 %v2561_v15, %v2561_v15 }
  0x49   : > { %v1790_v48 = vor.u32 %v2110_v40, %v1787_v41  ;;  %v1715_v51 = vld [vmem:[%s3198_s1 + $0x98] sm:$0xf0]  ;;  %v1769_v56 = vld [vmem:[%s3198_s1 + $0x100] sm:$0xf]  ;;  %v2074_v19 = vld [vmem:[%s3198_s1 + $0x4] sm:$0xf] }
  0x4a   : > { %608 = vmatpush.bf16.msrb.mxu0 %v1518_v28  ;;  %v1779_v18 = vld [vmem:[%s3198_s1 + $0x118] sm:$0xf0]  ;;  %v2090_v60 = vld [vmem:[%s3198_s1 + $0x84] sm:$0xf]  ;;  %v1937_v0 = vld [vmem:[%s3198_s1 + $0x370] sm:$0xf] }
  0x4b   : > { %621 = vmatpush.bf16.msrb.mxu1 %v1582_v29  ;;  %893 = vmatpush.bf16.msrb.mxu3 %v1706_v43  ;;  %v1785_v29 = vld [vmem:[%s3198_s1 + $0x120] sm:$0xf]  ;;  %v1777_v43 = vld [vmem:[%s3198_s1 + $0x110] sm:$0xf]  ;;  %v2185_v1 = vld [vmem:[%s3198_s1 + $0x374] sm:$0xf0] }
  0x4c   : > { %880 = vmatpush.bf16.msrb.mxu2 %v1642_v39  ;;  %v1786_v39 = vor.u32 %v2111_v30, %v1785_v29  ;;  %v2001_v3 = vld [vmem:[%s3198_s1 + $0x3f0] sm:$0xf]  ;;  %v2201_v4 = vld [vmem:[%s3198_s1 + $0x3f4] sm:$0xf0]  ;;  %v1771_v9 = vld [vmem:[%s3198_s1 + $0x108] sm:$0xf0] }
  0x4d   : > { %609 = vmatmul.bf16.vlgmr.msrb.gmra.mxu0 %v2636_v63  ;;  %v1803_v63 = vld [vmem:[%s3198_s1 + $0x148] sm:$0xf0]  ;;  %v2217_v7 = vld [vmem:[%s3198_s1 + $0x474] sm:$0xf0]  ;;  %v2183_v14 = vld [vmem:[%s3198_s1 + $0x364] sm:$0xf0] }
  0x4e   : > { %899 = vmatpush.bf16.msra.mxu0 %v1826_v34  ;;  %894 = vmatmul.bf16.vlgmr.msrb.gmra.mxu3 %v2738_v54  ;;  %v1806_v21 = vor.u32 %v2114_v12, %v1803_v63  ;;  %v1659_v34 = vld [vmem:[%s3198_s1 + $0x28] sm:$0xf0]  ;;  %v2002_v63 = vor.u32 %v2201_v4, %v2001_v3  ;;  %v2215_v23 = vld [vmem:[%s3198_s1 + $0x464] sm:$0xf0]  ;;  %v1921_v15 = vld [vmem:[%s3198_s1 + $0x350] sm:$0xf] }
  0x4f   : > { %912 = vmatpush.bf16.msra.mxu1 %v1702_v36  ;;  %938 = vmatpush.bf16.msra.mxu3 %v1830_v46  ;;  %v1798_v36 = vor.u32 %v2112_v25, %v1795_v26  ;;  %v2076_v46 = vld [vmem:[%s3198_s1 + $0x14] sm:$0xf]  ;;  %v1939_v25 = vld [vmem:[%s3198_s1 + $0x378] sm:$0xf0]  ;;  %v2181_v29 = vld [vmem:[%s3198_s1 + $0x354] sm:$0xf0] }
  0x50   : > { %925 = vmatpush.bf16.msra.mxu2 %v1766_v42  ;;  %622 = vmatmul.bf16.vlgmr.msrb.gmra.mxu1 %v2618_v53  ;;  %v1667_v53 = vld [vmem:[%s3198_s1 + $0x38] sm:$0xf0]  ;;  %v1662_v42 = vor.u32 %v2078_v32, %v1659_v34  ;;  %v1654_v58 = vor.u32 %v2076_v46, %v1651_v47  ;;  %v2197_v32 = vld [vmem:[%s3198_s1 + $0x3d4] sm:$0xf0]  ;;  %v2049_v34 = vld [vmem:[%s3198_s1 + $0x450] sm:$0xf]  ;;  %v1922_v40 = vor.u32 %v2181_v29, %v1921_v15 }
  0x51   : > { %881 = vmatmul.bf16.vlgmr.msrb.gmra.mxu2 %v2728_v49  ;;  %v1670_v28 = vor.u32 %v2080_v20, %v1667_v53  ;;  %v1993_v20 = vld [vmem:[%s3198_s1 + $0x3e0] sm:$0xf]  ;;  %v2199_v53 = vld [vmem:[%s3198_s1 + $0x3e4] sm:$0xf0]  ;;  %v2213_v37 = vld [vmem:[%s3198_s1 + $0x454] sm:$0xf0] }
  0x52   : > { %900 = vmatpush.bf16.msra.mxu0 %v1818_v50  ;;  %v2092_v50 = vld [vmem:[%s3198_s1 + $0x94] sm:$0xf]  ;;  %v2182_v38 = vld [vmem:[%s3198_s1 + $0x364] sm:$0xf]  ;;  %v2211_v47 = vld [vmem:[%s3198_s1 + $0x444] sm:$0xf0] }
  0x53   : > { %913 = vmatpush.bf16.msra.mxu1 %v1694_v55  ;;  %939 = vmatpush.bf16.msra.mxu3 %v1822_v59  ;;  %v1778_v55 = vor.u32 %v2109_v44, %v1777_v43  ;;  %v1643_v59 = vld [vmem:[%s3198_s1 + $0x8] sm:$0xf0]  ;;  %v1718_v61 = vor.u32 %v2092_v50, %v1715_v51  ;;  %v2050_v43 = vor.u32 %v2213_v37, %v2049_v34  ;;  %v1977_v44 = vld [vmem:[%s3198_s1 + $0x3c0] sm:$0xf]  ;;  %v1923_v50 = vld [vmem:[%s3198_s1 + $0x358] sm:$0xf0] }
  0x54   : > { %926 = vmatpush.bf16.msra.mxu2 %v1758_v57  ;;  %v2107_v57 = vld [vmem:[%s3198_s1 + $0x104] sm:$0xf0]  ;;  %v1646_v10 = vor.u32 %v2074_v19, %v1643_v59  ;;  %v2033_v19 = vld [vmem:[%s3198_s1 + $0x430] sm:$0xf]  ;;  %v1945_v29 = vld [vmem:[%s3198_s1 + $0x380] sm:$0xf] }
  0x55   : > { %v1770_v6 = vor.u32 %v2107_v57, %v1769_v56  ;;  %v1969_v57 = vld [vmem:[%s3198_s1 + $0x3b0] sm:$0xf]  ;;  %v2175_v3 = vld [vmem:[%s3198_s1 + $0x324] sm:$0xf0]  ;;  %v2200_v34 = vld [vmem:[%s3198_s1 + $0x3f4] sm:$0xf] }
  0x56   : > { %901 = vmatpush.bf16.msra.mxu0 %v1810_v62  ;;  %v1707_v62 = vld [vmem:[%s3198_s1 + $0x88] sm:$0xf0]  ;;  %v2171_v15 = vld [vmem:[%s3198_s1 + $0x304] sm:$0xf0] }
  0x57   : > { %914 = vmatpush.bf16.msra.mxu1 %v1686_v2  ;;  %940 = vmatpush.bf16.msra.mxu3 %v1814_v8  ;;  %v1782_v2 = vor.u32 %v2108_v52, %v1779_v18  ;;  %v2106_v8 = vld [vmem:[%s3198_s1 + $0x104] sm:$0xf]  ;;  %v1710_v12 = vor.u32 %v2090_v60, %v1707_v62  ;;  %v2177_v18 = vld [vmem:[%s3198_s1 + $0x334] sm:$0xf0]  ;;  %v1915_v62 = vld [vmem:[%s3198_s1 + $0x348] sm:$0xf0] }
  0x58   : > { %927 = vmatpush.bf16.msra.mxu2 %v1750_v5  ;;  %v2065_v5 = vld [vmem:[%s3198_s1 + $0x470] sm:$0xf]  ;;  %v2209_v60 = vld [vmem:[%s3198_s1 + $0x434] sm:$0xf0] }
  0x59   : > { %v2066_v16 = vor.u32 %v2217_v7, %v2065_v5  ;;  %v2034_v4 = vor.u32 %v2209_v60, %v2033_v19  ;;  %v1961_v5 = vld [vmem:[%s3198_s1 + $0x3a0] sm:$0xf]  ;;  %v2196_v19 = vld [vmem:[%s3198_s1 + $0x3d4] sm:$0xf] }
  0x5a   : > { %902 = vmatpush.bf16.msra.mxu0 %v1802_v11  ;;  %v1938_v11 = vor.u32 %v2185_v1, %v1937_v0  ;;  %v2025_v7 = vld [vmem:[%s3198_s1 + $0x420] sm:$0xf]  ;;  %v2212_v60 = vld [vmem:[%s3198_s1 + $0x454] sm:$0xf] }
  0x5b   : > { %915 = vmatpush.bf16.msra.mxu1 %v1678_v13  ;;  %941 = vmatpush.bf16.msra.mxu3 %v1806_v21  ;;  %v1929_v13 = vld [vmem:[%s3198_s1 + $0x360] sm:$0xf] }
  0x5c   : > { %928 = vmatpush.bf16.msra.mxu2 %v1742_v17  ;;  %v1774_v17 = vor.u32 %v2106_v8, %v1771_v9  ;;  %v2057_v21 = vld [vmem:[%s3198_s1 + $0x460] sm:$0xf]  ;;  %v1930_v26 = vor.u32 %v2183_v14, %v1929_v13  ;;  %v2207_v9 = vld [vmem:[%s3198_s1 + $0x424] sm:$0xf0]  ;;  %v1889_v13 = vld [vmem:[%s3198_s1 + $0x310] sm:$0xf] }
  0x5d   : > { %v2058_v30 = vor.u32 %v2215_v23, %v2057_v21  ;;  %v2173_v14 = vld [vmem:[%s3198_s1 + $0x314] sm:$0xf0]  ;;  %v2174_v23 = vld [vmem:[%s3198_s1 + $0x324] sm:$0xf] }
  0x5e   : > { %903 = vmatpush.bf16.msra.mxu0 %v1794_v24  ;;  %v2184_v24 = vld [vmem:[%s3198_s1 + $0x374] sm:$0xf] }
  0x5f   : > { %916 = vmatpush.bf16.msra.mxu1 %v1670_v28  ;;  %942 = vmatpush.bf16.msra.mxu3 %v1798_v36  ;;  %v1994_v28 = vor.u32 %v2199_v53, %v1993_v20  ;;  %v1942_v36 = vor.u32 %v2184_v24, %v1939_v25  ;;  %v2189_v20 = vld [vmem:[%s3198_s1 + $0x394] sm:$0xf0]  ;;  %v2017_v53 = vld [vmem:[%s3198_s1 + $0x410] sm:$0xf]  ;;  %v1899_v24 = vld [vmem:[%s3198_s1 + $0x328] sm:$0xf0]  ;;  %v1890_v25 = vor.u32 %v2173_v14, %v1889_v13 }
  0x60   : > { %929 = vmatpush.bf16.msra.mxu2 %v1734_v31  ;;  %v1985_v31 = vld [vmem:[%s3198_s1 + $0x3d0] sm:$0xf]  ;;  %v1902_v37 = vor.u32 %v2174_v23, %v1899_v24  ;;  %v1963_v13 = vld [vmem:[%s3198_s1 + $0x3a8] sm:$0xf0]  ;;  %v2206_v14 = vld [vmem:[%s3198_s1 + $0x424] sm:$0xf] }
  0x61   : > { %v1986_v41 = vor.u32 %v2197_v32, %v1985_v31  ;;  %v2009_v32 = vld [vmem:[%s3198_s1 + $0x400] sm:$0xf]  ;;  %v2019_v23 = vld [vmem:[%s3198_s1 + $0x418] sm:$0xf0] }
  0x62   : > { %904 = vmatpush.bf16.msra.mxu0 %v1786_v39  ;;  %v1931_v39 = vld [vmem:[%s3198_s1 + $0x368] sm:$0xf0] }
  0x63   : > { %917 = vmatpush.bf16.msra.mxu1 %v1662_v42  ;;  %943 = vmatpush.bf16.msra.mxu3 %v1790_v48  ;;  %v2179_v42 = vld [vmem:[%s3198_s1 + $0x344] sm:$0xf0]  ;;  %v1934_v46 = vor.u32 %v2182_v38, %v1931_v39  ;;  %v2180_v48 = vld [vmem:[%s3198_s1 + $0x354] sm:$0xf] }
  0x64   : > { %930 = vmatpush.bf16.msra.mxu2 %v1726_v45  ;;  %v2041_v45 = vld [vmem:[%s3198_s1 + $0x440] sm:$0xf]  ;;  %v1926_v59 = vor.u32 %v2180_v48, %v1923_v50  ;;  %v2203_v38 = vld [vmem:[%s3198_s1 + $0x404] sm:$0xf0]  ;;  %v2216_v39 = vld [vmem:[%s3198_s1 + $0x474] sm:$0xf] }
  0x65   : > { %v2042_v56 = vor.u32 %v2211_v47, %v2041_v45  ;;  %v1995_v47 = vld [vmem:[%s3198_s1 + $0x3e8] sm:$0xf0]  ;;  %v2214_v48 = vld [vmem:[%s3198_s1 + $0x464] sm:$0xf] }
  0x66   : > { %905 = vmatpush.bf16.msra.mxu0 %v1778_v55  ;;  %v1905_v55 = vld [vmem:[%s3198_s1 + $0x330] sm:$0xf]  ;;  %v2059_v50 = vld [vmem:[%s3198_s1 + $0x468] sm:$0xf0] }
  0x67   : > { %918 = vmatpush.bf16.msra.mxu1 %v1654_v58  ;;  %944 = vmatpush.bf16.msra.mxu3 %v1782_v2  ;;  %v2193_v58 = vld [vmem:[%s3198_s1 + $0x3b4] sm:$0xf0]  ;;  %v1906_v0 = vor.u32 %v2177_v18, %v1905_v55  ;;  %v1897_v2 = vld [vmem:[%s3198_s1 + $0x320] sm:$0xf]  ;;  %v1001_v55 = vrot.slane %v2595_v35, 1 }
  0x68   : > { %931 = vmatpush.bf16.msra.mxu2 %v1718_v61  ;;  %v2178_v61 = vld [vmem:[%s3198_s1 + $0x344] sm:$0xf]  ;;  %v1970_v1 = vor.u32 %v2193_v58, %v1969_v57  ;;  %v1002_v57 = vrot.slane %v2574_v27, 1  ;;  %v2051_v27 = vld [vmem:[%s3198_s1 + $0x458] sm:$0xf0] }
  0x69   : > { %v1918_v8 = vor.u32 %v2178_v61, %v1915_v62  ;;  %v2170_v18 = vld [vmem:[%s3198_s1 + $0x304] sm:$0xf] }
  0x6a   : > { %906 = vmatpush.bf16.msra.mxu0 %v1770_v6  ;;  %v2191_v6 = vld [vmem:[%s3198_s1 + $0x3a4] sm:$0xf0] }
  0x6b   : > { %919 = vmatpush.bf16.msra.mxu1 %v1646_v10  ;;  %945 = vmatpush.bf16.msra.mxu3 %v1774_v17  ;;  %v2176_v10 = vld [vmem:[%s3198_s1 + $0x334] sm:$0xf]  ;;  %v1953_v17 = vld [vmem:[%s3198_s1 + $0x390] sm:$0xf] }
  0x6c   : > { %932 = vmatpush.bf16.msra.mxu2 %v1710_v12  ;;  %v1898_v12 = vor.u32 %v2175_v3, %v1897_v2  ;;  %v1979_v2 = vld [vmem:[%s3198_s1 + $0x3c8] sm:$0xf0]  ;;  %v2210_v3 = vld [vmem:[%s3198_s1 + $0x444] sm:$0xf] }
  0x6d   : > { %907 = vmatmul.bf16.vlgmr.msra.gmra.mxu0 %v629_v22 }
  0x6e   : > { %1246 = vmatpush.bf16.msrb.mxu0 %v1938_v11  ;;  %920 = vmatmul.bf16.vlgmr.msra.gmra.mxu1 %v2728_v49  ;;  %v1913_v49 = vld [vmem:[%s3198_s1 + $0x340] sm:$0xf]  ;;  %v1907_v11 = vld [vmem:[%s3198_s1 + $0x338] sm:$0xf0] }
  0x6f   : > { %1259 = vmatpush.bf16.msrb.mxu1 %v2002_v63  ;;  %933 = vmatmul.bf16.vlgmr.msra.gmra.mxu2 %v2738_v54  ;;  %v2195_v54 = vld [vmem:[%s3198_s1 + $0x3c4] sm:$0xf0]  ;;  %v1914_v51 = vor.u32 %v2179_v42, %v1913_v49  ;;  %v1962_v63 = vor.u32 %v2191_v6, %v1961_v5  ;;  %v1910_v21 = vor.u32 %v2176_v10, %v1907_v11  ;;  %v2172_v49 = vld [vmem:[%s3198_s1 + $0x314] sm:$0xf]  ;;  %v1891_v42 = vld [vmem:[%s3198_s1 + $0x318] sm:$0xf0] }
  0x70   : > { %1272 = vmatpush.bf16.msrb.mxu2 %v2066_v16  ;;  %946 = vmatmul.bf16.vlgmr.msra.gmra.mxu3 %v629_v22  ;;  %v1978_v52 = vor.u32 %v2195_v54, %v1977_v44  ;;  %v2026_v16 = vor.u32 %v2207_v9, %v2025_v7  ;;  %v2205_v22 = vld [vmem:[%s3198_s1 + $0x414] sm:$0xf0]  ;;  %v2010_v54 = vor.u32 %v2203_v38, %v2009_v32  ;;  %v2192_v7 = vld [vmem:[%s3198_s1 + $0x3b4] sm:$0xf]  ;;  %v2035_v10 = vld [vmem:[%s3198_s1 + $0x438] sm:$0xf0] }
  0x71   : > { %1285 = vmatpush.bf16.msrb.mxu3 %v1942_v36  ;;  %v2018_v31 = vor.u32 %v2205_v22, %v2017_v53  ;;  %v2003_v36 = vld [vmem:[%s3198_s1 + $0x3f8] sm:$0xf0]  ;;  %v2208_v9 = vld [vmem:[%s3198_s1 + $0x434] sm:$0xf] }
  0x72   : > { %1247 = vmatpush.bf16.msrb.mxu0 %v1930_v26  ;;  %v1881_v26 = vld [vmem:[%s3198_s1 + $0x300] sm:$0xf]  ;;  %v2006_v44 = vor.u32 %v2200_v34, %v2003_v36  ;;  %v2188_v53 = vld [vmem:[%s3198_s1 + $0x394] sm:$0xf] }
  0x73   : > { %1260 = vmatpush.bf16.msrb.mxu1 %v1994_v28  ;;  %v1954_v28 = vor.u32 %v2189_v20, %v1953_v17  ;;  %v2204_v22 = vld [vmem:[%s3198_s1 + $0x414] sm:$0xf] }
  0x74   : > { %1273 = vmatpush.bf16.msrb.mxu2 %v2058_v30  ;;  %v2187_v30 = vld [vmem:[%s3198_s1 + $0x384] sm:$0xf0] }
  0x75   : > { %1286 = vmatpush.bf16.msrb.mxu3 %v1934_v46  ;;  %v2198_v46 = vld [vmem:[%s3198_s1 + $0x3e4] sm:$0xf] }
  0x76   : > { %1248 = vmatpush.bf16.msrb.mxu0 %v1922_v40  ;;  %v2067_v40 = vld [vmem:[%s3198_s1 + $0x478] sm:$0xf0]  ;;  %v1998_v58 = vor.u32 %v2198_v46, %v1995_v47 }
  0x77   : > { %1261 = vmatpush.bf16.msrb.mxu1 %v1986_v41  ;;  %v1882_v41 = vor.u32 %v2171_v15, %v1881_v26  ;;  %v2070_v45 = vor.u32 %v2216_v39, %v2067_v40  ;;  %v2186_v26 = vld [vmem:[%s3198_s1 + $0x384] sm:$0xf] }
  0x78   : > { %1274 = vmatpush.bf16.msrb.mxu2 %v2050_v43  ;;  %v1946_v43 = vor.u32 %v2187_v30, %v1945_v29  ;;  %v2202_v15 = vld [vmem:[%s3198_s1 + $0x404] sm:$0xf]  ;;  %v2011_v29 = vld [vmem:[%s3198_s1 + $0x408] sm:$0xf0] }
  0x79   : > { %1287 = vmatpush.bf16.msrb.mxu3 %v1926_v59  ;;  %v1987_v59 = vld [vmem:[%s3198_s1 + $0x3d8] sm:$0xf0] }
  0x7a   : > { %1249 = vmatpush.bf16.msrb.mxu0 %v1914_v51  ;;  %v1000_v51 = vrot.slane %v2589_v33, 1  ;;  %v2062_v33 = vor.u32 %v2214_v48, %v2059_v50  ;;  %v1990_v62 = vor.u32 %v2196_v19, %v1987_v59 }
  0x7b   : > { %1262 = vmatpush.bf16.msrb.mxu1 %v1978_v52  ;;  %v1894_v52 = vor.u32 %v2172_v49, %v1891_v42 }
  0x7c   : > { %1275 = vmatpush.bf16.msrb.mxu2 %v2042_v56  ;;  %v1883_v56 = vld [vmem:[%s3198_s1 + $0x308] sm:$0xf0] }
  0x7d   : > { %1288 = vmatpush.bf16.msrb.mxu3 %v1918_v8  ;;  %v1886_v61 = vor.u32 %v2170_v18, %v1883_v56  ;;  %v1971_v8 = vld [vmem:[%s3198_s1 + $0x3b8] sm:$0xf0] }
  0x7e   : > { %1250 = vmatpush.bf16.msrb.mxu0 %v1906_v0  ;;  %v2054_v0 = vor.u32 %v2212_v60, %v2051_v27  ;;  %v1974_v11 = vor.u32 %v2192_v7, %v1971_v8 }
  0x7f   : > { %1263 = vmatpush.bf16.msrb.mxu1 %v1970_v1  ;;  %v2194_v1 = vld [vmem:[%s3198_s1 + $0x3c4] sm:$0xf] }
  0x80   : > { %1276 = vmatpush.bf16.msrb.mxu2 %v2034_v4  ;;  %v2043_v4 = vld [vmem:[%s3198_s1 + $0x448] sm:$0xf0]  ;;  %v1982_v5 = vor.u32 %v2194_v1, %v1979_v2 }
  0x81   : > { %1289 = vmatpush.bf16.msrb.mxu3 %v1910_v21  ;;  %v2046_v6 = vor.u32 %v2210_v3, %v2043_v4  ;;  %v1955_v21 = vld [vmem:[%s3198_s1 + $0x398] sm:$0xf0] }
  0x82   : > { %1251 = vmatpush.bf16.msrb.mxu0 %v1898_v12  ;;  %v2038_v12 = vor.u32 %v2208_v9, %v2035_v10  ;;  %v1958_v24 = vor.u32 %v2188_v53, %v1955_v21  ;;  %v1326_v9 = vld [vmem:[%s3199_s2] sm:$0x3] }
  0x83   : > { %1264 = vmatpush.bf16.msrb.mxu1 %v1962_v63  ;;  %v2190_v63 = vld [vmem:[%s3198_s1 + $0x3a4] sm:$0xf] }
  0x84   : > { %1277 = vmatpush.bf16.msrb.mxu2 %v2026_v16  ;;  %v2027_v16 = vld [vmem:[%s3198_s1 + $0x428] sm:$0xf0]  ;;  %v1966_v17 = vor.u32 %v2190_v63, %v1963_v13  ;;  %v1328_v13 = vperm.slane %v1326_v9, 0 }
  0x85   : > { %1290 = vmatpush.bf16.msrb.mxu3 %v1902_v37  ;;  %v2030_v20 = vor.u32 %v2206_v14, %v2027_v16 }
  0x86   : > { %1252 = vmatpush.bf16.msrb.mxu0 %v1890_v25  ;;  %v2022_v25 = vor.u32 %v2204_v22, %v2019_v23 }
  0x87   : > { %1265 = vmatpush.bf16.msrb.mxu1 %v1954_v28  ;;  %v1947_v28 = vld [vmem:[%s3198_s1 + $0x388] sm:$0xf0] }
  0x88   : > { %1278 = vmatpush.bf16.msrb.mxu2 %v2018_v31  ;;  %v1950_v30 = vor.u32 %v2186_v26, %v1947_v28  ;;  %v2014_v31 = vor.u32 %v2202_v15, %v2011_v29 }
  0x89   : > { %1291 = vmatpush.bf16.msrb.mxu3 %v1894_v52 }
  0x8a   : > { %1253 = vmatpush.bf16.msrb.mxu0 %v1882_v41 }
  0x8b   : > { %1266 = vmatpush.bf16.msrb.mxu1 %v1946_v43 }
  0x8c   : > { %1279 = vmatpush.bf16.msrb.mxu2 %v2010_v54 }
  0x8d   : > { %1254 = vmatmul.bf16.vlgmr.msrb.gmra.mxu0 %v1000_v51  ;;  %1292 = vmatpush.bf16.msrb.mxu3 %v1886_v61 }
  0x8e   : > { %1298 = vmatpush.bf16.msra.mxu0 %v2006_v44  ;;  %1267 = vmatmul.bf16.vlgmr.msrb.gmra.mxu1 %v1001_v55 }
  0x8f   : > { %1311 = vmatpush.bf16.msra.mxu1 %v2070_v45  ;;  %1280 = vmatmul.bf16.vlgmr.msrb.gmra.mxu2 %v1002_v57 }
  0x90   : > { %1293 = vmatmul.bf16.vlgmr.msrb.gmra.mxu3 %v1000_v51 }
  0x92   : > { %1299 = vmatpush.bf16.msra.mxu0 %v1998_v58 }
  0x93   : > { %1312 = vmatpush.bf16.msra.mxu1 %v2062_v33 }
  0x96   : > { %1300 = vmatpush.bf16.msra.mxu0 %v1990_v62 }
  0x97   : > { %1313 = vmatpush.bf16.msra.mxu1 %v2054_v0 }
  0x9a   : > { %1301 = vmatpush.bf16.msra.mxu0 %v1982_v5 }
  0x9b   : > { %1314 = vmatpush.bf16.msra.mxu1 %v2046_v6 }
  0x9e   : > { %1302 = vmatpush.bf16.msra.mxu0 %v1974_v11 }
  0x9f   : > { %1315 = vmatpush.bf16.msra.mxu1 %v2038_v12 }
  0xa2   : > { %1303 = vmatpush.bf16.msra.mxu0 %v1966_v17 }
  0xa3   : > { %1316 = vmatpush.bf16.msra.mxu1 %v2030_v20  ;;  %v1329_v20 = vperm.slane %v1326_v9, 1 }
  0xa6   : > { %1304 = vmatpush.bf16.msra.mxu0 %v1958_v24 }
  0xa7   : > { %1317 = vmatpush.bf16.msra.mxu1 %v2022_v25 }
  0xaa   : > { %1305 = vmatpush.bf16.msra.mxu0 %v1950_v30 }
  0xab   : > { %1318 = vmatpush.bf16.msra.mxu1 %v2014_v31 }
  0xad   : > { %1306 = vmatmul.bf16.vlgmr.msra.gmra.mxu0 %v1001_v55 }
  0xae   : > { %1319 = vmatmul.bf16.vlgmr.msra.gmra.mxu1 %v1002_v57 }
  0xb6   : > { %v558_v32 = vpop.f32.mrf.mxu0  ;;  %v571_v34 = vpop.f32.mrf.mxu1 }
  0xb7   : > { %v572_v36 = vadd.f32 %v571_v34, %v558_v32 }
  0xb9   : > { %v584_v37 = vpop.f32.mrf.mxu2 }
  0xba   : > { %v585_v39 = vadd.f32 %v584_v37, %v572_v36 }
  0xbb   : > { %v597_v38 = vpop.f32.mrf.mxu3 }
  0xbe   : > { %v560_v40 = vpop.f32.mrf.mxu0  ;;  %v573_v41 = vpop.f32.mrf.mxu1 }
  0xc1   : > { %v586_v49 = vpop.f32.mrf.mxu2 }
  0xc3   : > { %v599_v42 = vpop.f32.mrf.mxu3 }
  0xca   : > { %v610_v43 = vpop.f32.mrf.mxu0 }
  0xcb   : > { %v611_v44 = vadd.f32 %v610_v43, %v597_v38 }
  0xcd   : > { %v623_v54 = vpop.f32.mrf.mxu1 }
  0xce   : > { %v624_v45 = vadd.f32 %v623_v54, %v611_v44 }
  0xd1   : > { %v895_v48 = vpop.f32.mrf.mxu3 }
  0xd2   : > { %v612_v50 = vpop.f32.mrf.mxu0 }
  0xd4   : > { %v882_v46 = vpop.f32.mrf.mxu2 }
  0xd5   : > { %v883_v47 = vadd.f32 %v882_v46, %v585_v39  ;;  %v625_v51 = vpop.f32.mrf.mxu1 }
  0xd7   : > { %v896_v35 = vadd.f32 %v895_v48, %v883_v47 }
  0xd9   : > { %v897_v55 = vpop.f32.mrf.mxu3 }
  0xdc   : > { %v884_v52 = vpop.f32.mrf.mxu2 }
  0xea   : > { %v908_v18 = vpop.f32.mrf.mxu0 }
  0xeb   : > { %v921_v56 = vpop.f32.mrf.mxu1  ;;  %v909_v11 = vadd.f32 %v908_v18, %v896_v35 }
  0xec   : > { %v922_v6 = vadd.f32 %v921_v56, %v624_v45 }
  0xf2   : > { %v934_v57 = vpop.f32.mrf.mxu2  ;;  %v910_v33 = vpop.f32.mrf.mxu0 }
  0xf3   : > { %v947_v58 = vpop.f32.mrf.mxu3  ;;  %v923_v19 = vpop.f32.mrf.mxu1  ;;  %v935_v7 = vadd.f32 %v934_v57, %v922_v6 }
  0xf5   : > { %v948_v14 = vadd.f32 %v947_v58, %v935_v7 }
  0xfa   : > { %v936_v59 = vpop.f32.mrf.mxu2 }
  0xfb   : > { %v949_v60 = vpop.f32.mrf.mxu3 }
 0x10a   : > { %v1255_v27 = vpop.f32.mrf.mxu0 }
 0x10b   : > { %v1268_v61 = vpop.f32.mrf.mxu1 }
 0x10c   : > { %v1269_v5 = vadd.f32 %v1268_v61, %v1255_v27 }
 0x112   : > { %v1281_v62 = vpop.f32.mrf.mxu2  ;;  %v1257_v0 = vpop.f32.mrf.mxu0 }
 0x113   : > { %v1270_v1 = vpop.f32.mrf.mxu1  ;;  %v1294_v2 = vpop.f32.mrf.mxu3  ;;  %v1282_v8 = vadd.f32 %v1281_v62, %v1269_v5 }
 0x115   : > { %v1324_v16 = vadd.f32 %v1282_v8, %v909_v11 }
 0x117   : > { %v1332_v21 = vadd.f32 %v1328_v13, %v1324_v16 }
 0x11a   : > { %v1283_v3 = vpop.f32.mrf.mxu2 }
 0x11b   : > { %v1296_v4 = vpop.f32.mrf.mxu3 }
 0x12a   : > { %v1307_v10 = vpop.f32.mrf.mxu0 }
 0x12b   : > { %v1308_v12 = vadd.f32 %v1307_v10, %v1294_v2  ;;  %v1320_v63 = vpop.f32.mrf.mxu1 }
 0x12d   : > { %v1321_v17 = vadd.f32 %v1320_v63, %v1308_v12 }
 0x12f   : > { %v1325_v53 = vadd.f32 %v1321_v17, %v948_v14 }
 0x131   : > { %v1333_v22 = vadd.f32 %v1329_v20, %v1325_v53 }
 0x132   : > { %v1309_v23 = vpop.f32.mrf.mxu0 }
 0x133   : > { %v1334_v24 = vpack.c.bf16 %v1333_v22, %v1332_v21  ;;  %v1322_v25 = vpop.f32.mrf.mxu1 }
 0x135   : > { %1335 = vst [vmem:[%s170_s24] sm:$0xff] %v1334_v24 }
 0x136 PF: > { %s13_s12 = sadd.s32 1, %s2233_s12  }
 0x137   : > { %p10_p4 = scmp.ge.s32.totalorder %s13_s12, 4  }
 0x139   :  { %12 = sbr.rel (!%p10_p4) target bundleno = 1 (0x1), region = 64 }

// kernel: tile.84
= control target key start
LH: loop header
LB: loop body
LE: loop exit
PB: predicated region body
PF: predicated region fallthrough
CT: control target
= control target key end

     0   :  { %s28_s0 = inlined_call_operand.vmem [shape: f32[4], index: 0, kind: input, shape index: {}]   ;;  %s29_s1 = inlined_call_operand.vmem [shape: f32[16,4], index: 1, kind: output, shape index: {}]  }
   0x1   :  { %v4_v0 = vld [vmem:[%s28_s0] ss:$0 sm:$0xff] }
   0x2   :  { %5 = vst [vmem:[%s29_s1] sm:$0xff] %v4_v0 }
   0x3   :  { %8 = vst [vmem:[%s29_s1 + $0x8] sm:$0xff] %v4_v0 }

// kernel: tile.85
= control target key start
LH: loop header
LB: loop body
LE: loop exit
PB: predicated region body
PF: predicated region fallthrough
CT: control target
= control target key end

     0   :  { %s131_s10 = smov 60   ;;  %s132_s11 = smov 52   ;;  %vm3_vm0 = vcmask 31744   ;;  %vm9_vm1 = vcmask 523744   ;;  %vm15_vm2 = vcmask 490944   ;;  %vm21_vm3 = vcmask 458144   ;;  %s207_s0 = inlined_call_operand.vmem [shape: f32[16,4], index: 0, kind: input, shape index: {}]   ;;  %s208_s1 = inlined_call_operand.vmem [shape: f32[64], index: 1, kind: output, shape index: {}]  }
   0x1   :  { %v101_v0 = vld [vmem:[%s207_s0 + $0xf] sm:$0x1]   ;;  %v103_v1 = vld [vmem:[%s207_s0 + $0xd] sm:$0x1]   ;;  %v105_v2 = vld [vmem:[%s207_s0 + $0xb] sm:$0x1]  }
   0x2   :  { %7 = vrot.lane.b32.xlu0 %v101_v0, %s131_s10  ;;  %19 = vrot.lane.b32.xlu1 %v103_v1, %s132_s11  ;;  %s133_s14 = smov 44   ;;  %v102_v3 = vld [vmem:[%s207_s0 + $0xe] sm:$0x1]   ;;  %v104_v4 = vld [vmem:[%s207_s0 + $0xc] sm:$0x1]   ;;  %s134_s19 = smov 56  }
   0x3   :  { %31 = vrot.lane.b32.xlu2 %v105_v2, %s133_s14  ;;  %s135_s20 = smov 48   ;;  %v106_v5 = vld [vmem:[%s207_s0 + $0xa] sm:$0x1]   ;;  %s136_s23 = smov 40   ;;  %v107_v6 = vld [vmem:[%s207_s0 + $0x9] sm:$0x1]  }
   0x4   :  { %v108_v7 = vld [vmem:[%s207_s0 + $0x8] sm:$0x1]   ;;  %s137_s28 = smov 36   ;;  %s138_s29 = smov 32   ;;  %v109_v8 = vld [vmem:[%s207_s0 + $0x7] sm:$0x1]  }
   0x5   :  { %s139_s3 = smov 28   ;;  %v110_v9 = vld [vmem:[%s207_s0 + $0x6] sm:$0x1]   ;;  %v111_v10 = vld [vmem:[%s207_s0 + $0x5] sm:$0x1]   ;;  %s140_s8 = smov 24  }
   0x6   :  { %s141_s9 = smov 20   ;;  %v112_v11 = vld [vmem:[%s207_s0 + $0x4] sm:$0x1]   ;;  %s142_s12 = smov 16   ;;  %v113_v12 = vld [vmem:[%s207_s0 + $0x3] sm:$0x1]  }
   0x7   :  { %v114_v13 = vld [vmem:[%s207_s0 + $0x2] sm:$0x1]   ;;  %s143_s17 = smov 12   ;;  %s144_s18 = smov 8   ;;  %v115_v14 = vld [vmem:[%s207_s0 + $0x1] sm:$0x1]  }
   0x8   :  { %s145_s21 = smov 4   ;;  %v2_v15 = vld [vmem:[%s207_s0] sm:$0x1]   ;;  %vm27_vm4 = vcmask 425344   ;;  %vm33_vm5 = vcmask 392544   ;;  %vm39_vm6 = vcmask 359744  }
   0x9   :  { %4 = vst.msk [vmem:[#allocation0] sm:$0x1] %vm3_vm0, %v2_v15   ;;  %vm45_vm7 = vcmask 326944   ;;  %vm51_vm8 = vcmask 294144   ;;  %vm57_vm9 = vcmask 261344   ;;  %vm63_vm10 = vcmask 228544  }
   0xa   :  { %13 = vrot.lane.b32.xlu0 %v102_v3, %s134_s19  ;;  %25 = vrot.lane.b32.xlu1 %v104_v4, %s135_s20  ;;  %vm69_vm11 = vcmask 195744   ;;  %vm75_vm12 = vcmask 162944   ;;  %vm81_vm13 = vcmask 130144   ;;  %vm87_vm14 = vcmask 97344  }
   0xb   :  { %37 = vrot.lane.b32.xlu2 %v106_v5, %s136_s23  ;;  %vm93_vm15 = vcmask 64544  }
  0x12   :  { %43 = vrot.lane.b32.xlu0 %v107_v6, %s137_s28  ;;  %49 = vrot.lane.b32.xlu1 %v108_v7, %s138_s29 }
  0x13   :  { %55 = vrot.lane.b32.xlu2 %v109_v8, %s139_s3 }
  0x1a   :  { %61 = vrot.lane.b32.xlu0 %v110_v9, %s140_s8  ;;  %67 = vrot.lane.b32.xlu1 %v111_v10, %s141_s9 }
  0x1b   :  { %73 = vrot.lane.b32.xlu2 %v112_v11, %s142_s12 }
  0x22   :  { %79 = vrot.lane.b32.xlu0 %v113_v12, %s143_s17  ;;  %85 = vrot.lane.b32.xlu1 %v114_v13, %s144_s18 }
  0x23   :  { %91 = vrot.lane.b32.xlu2 %v115_v14, %s145_s21 }
  0x5d   :  { %v32_v16 = vpop.permute.xlu2 %31  }
  0x65   :  { %v38_v17 = vpop.permute.xlu2 %37  }
  0x6d   :  { %v56_v18 = vpop.permute.xlu2 %55  }
  0x74   :  { %v8_v19 = vpop.permute.xlu0 %7   ;;  %v20_v20 = vpop.permute.xlu1 %19  }
  0x75   :  { %10 = vst.msk [vmem:[#allocation0] sm:$0x1] %vm9_vm1, %v8_v19   ;;  %v74_v21 = vpop.permute.xlu2 %73  }
  0x7c   :  { %v14_v22 = vpop.permute.xlu0 %13   ;;  %v26_v23 = vpop.permute.xlu1 %25  }
  0x7d   :  { %16 = vst.msk [vmem:[#allocation0] sm:$0x1] %vm15_vm2, %v14_v22   ;;  %v92_v24 = vpop.permute.xlu2 %91  }
  0x7e   :  { %22 = vst.msk [vmem:[#allocation0] sm:$0x1] %vm21_vm3, %v20_v20  }
  0x7f   :  { %28 = vst.msk [vmem:[#allocation0] sm:$0x1] %vm27_vm4, %v26_v23  }
  0x80   :  { %34 = vst.msk [vmem:[#allocation0] sm:$0x1] %vm33_vm5, %v32_v16  }
  0x81   :  { %40 = vst.msk [vmem:[#allocation0] sm:$0x1] %vm39_vm6, %v38_v17  }
  0x84   :  { %v44_v25 = vpop.permute.xlu0 %43   ;;  %v50_v26 = vpop.permute.xlu1 %49  }
  0x85   :  { %46 = vst.msk [vmem:[#allocation0] sm:$0x1] %vm45_vm7, %v44_v25  }
  0x86   :  { %52 = vst.msk [vmem:[#allocation0] sm:$0x1] %vm51_vm8, %v50_v26  }
  0x87   :  { %58 = vst.msk [vmem:[#allocation0] sm:$0x1] %vm57_vm9, %v56_v18  }
  0x8c   :  { %v62_v27 = vpop.permute.xlu0 %61   ;;  %v68_v28 = vpop.permute.xlu1 %67  }
  0x8d   :  { %64 = vst.msk [vmem:[#allocation0] sm:$0x1] %vm63_vm10, %v62_v27  }
  0x8e   :  { %70 = vst.msk [vmem:[#allocation0] sm:$0x1] %vm69_vm11, %v68_v28  }
  0x8f   :  { %76 = vst.msk [vmem:[#allocation0] sm:$0x1] %vm75_vm12, %v74_v21  }
  0x94   :  { %v80_v29 = vpop.permute.xlu0 %79   ;;  %v86_v30 = vpop.permute.xlu1 %85  }
  0x95   :  { %82 = vst.msk [vmem:[#allocation0] sm:$0x1] %vm81_vm13, %v80_v29  }
  0x96   :  { %88 = vst.msk [vmem:[#allocation0] sm:$0x1] %vm87_vm14, %v86_v30  }
  0x97   :  { %94 = vst.msk [vmem:[#allocation0] sm:$0x1] %vm93_vm15, %v92_v24  }
  0x9e   :  { %v97_v31 = vld [vmem:[#allocation0] sm:$0x1] }
  0x9f   :  { %100 = vst [vmem:[%s208_s1] sm:$0x1] %v97_v31 }

// kernel: unet_forward.13
= control target key start
LH: loop header
LB: loop body
LE: loop exit
PB: predicated region body
PF: predicated region fallthrough
CT: control target
= control target key end

     0   :  { %s1130_s12 = smov 0   ;;  %s1318_s0 = inlined_call_operand.vmem [shape: bf16[2,18,256], index: 0, kind: input, shape index: {}]   ;;  %s1319_s1 = inlined_call_operand.vmem [shape: bf16[3,256,128], index: 1, kind: input, shape index: {}]   ;;  %s1320_s2 = inlined_call_operand.vmem [shape: f32[1,128], index: 2, kind: input, shape index: {}]   ;;  %s1321_s3 = inlined_call_operand.vmem [shape: bf16[2,16,128], index: 3, kind: output, shape index: {}]  }
   0x1 LB: > { %s762_s13 = sadd.s32 4294967295, %s1108_s12   ;;  %p766_p0 = scmp.ge.s32.totalorder %s1108_s12, 1  ;;  %s1108_s12 = sphi %s1130_s12, %s13_s12  }
   0x2   : > { %p137_p1 = scmp.lt.s32.totalorder %s1108_s12, 3 }
   0x4   : > { %p138_p2 = pnand %p766_p0, %p137_p1 }
   0x5   : > { %p161_p3 = scmp.lt.s32.totalorder (!%p138_p2), %s762_s13, 1 }
   0x6   : > { %141 = sbr.rel (%p138_p2) target bundleno = 219 (0xdb), region = 32 }
   0xb   : > { %v1062_v0 = vld [vmem:[%s1319_s1 + $0xb8] sm:$0xff]  ;;  %v1061_v4 = vld [vmem:[%s1319_s1 + $0xb0] sm:$0xff]  ;;  %s1323_s13 = smov (!%p161_p3, %s762_s13), 1  ;;  %v1060_v8 = vld [vmem:[%s1319_s1 + $0xa8] sm:$0xff]  ;;  %vm252_vm0 = vsmask.f32 7424 }
   0xc   : > { %v1070_v1 = vld [vmem:[%s1319_s1 + $0xf8] sm:$0xff]  ;;  %375 = vmatpush.bf16.msra.mxu0 %v1062_v0  ;;  %v1069_v5 = vld [vmem:[%s1319_s1 + $0xf0] sm:$0xff]  ;;  %s1092_s30 = smul.u32 24, %s1323_s13  ;;  %v1068_v9 = vld [vmem:[%s1319_s1 + $0xe8] sm:$0xff]  ;;  %vm562_vm1 = vcmask 1046528  }
   0xd   : > { %v1046_v2 = vld [vmem:[%s1319_s1 + $0x38] sm:$0xff]  ;;  %389 = vmatpush.bf16.msra.mxu1 %v1070_v1  ;;  %v1045_v6 = vld [vmem:[%s1319_s1 + $0x30] sm:$0xff]  ;;  %v1044_v10 = vld [vmem:[%s1319_s1 + $0x28] sm:$0xff] }
   0xe   : > { %v1054_v3 = vld [vmem:[%s1319_s1 + $0x78] sm:$0xff]  ;;  %501 = vmatpush.bf16.msra.mxu2 %v1046_v2  ;;  %v1053_v7 = vld [vmem:[%s1319_s1 + $0x70] sm:$0xff]  ;;  %v1052_v11 = vld [vmem:[%s1319_s1 + $0x68] sm:$0xff]  ;;  %s165_s16 = scalar_lea.vmem %s1318_s0, %s1092_s30 }
   0xf   : > { %515 = vmatpush.bf16.msra.mxu3 %v1054_v3  ;;  %v1059_v12 = vld [vmem:[%s1319_s1 + $0xa0] sm:$0xff]  ;;  %v1038_v17 = vld [vmem:[%s165_s16 + $0x4] sm:$0xf0]  ;;  %v806_v20 = vld [vmem:[%s165_s16 + $0x8] sm:$0xf0] }
  0x10   : > { %376 = vmatpush.bf16.msra.mxu0 %v1061_v4  ;;  %v1067_v13 = vld [vmem:[%s1319_s1 + $0xe0] sm:$0xff]  ;;  %v173_v21 = vld [vmem:[%s165_s16 + $0x10] sm:$0x11]  ;;  %v1058_v22 = vld [vmem:[%s1319_s1 + $0x98] sm:$0xff] }
  0x11   : > { %390 = vmatpush.bf16.msra.mxu1 %v1069_v5  ;;  %v1043_v14 = vld [vmem:[%s1319_s1 + $0x20] sm:$0xff]  ;;  %v1066_v23 = vld [vmem:[%s1319_s1 + $0xd8] sm:$0xff]  ;;  %v246_v25 = vunpack.c.l.b16 %v173_v21  ;;  %v247_v28 = vunpack.c.h.b16 %v173_v21  ;;  %v1057_v30 = vld [vmem:[%s1319_s1 + $0x90] sm:$0xff] }
  0x12   : > { %502 = vmatpush.bf16.msra.mxu2 %v1045_v6  ;;  %v1051_v15 = vld [vmem:[%s1319_s1 + $0x60] sm:$0xff]  ;;  %v1042_v26 = vld [vmem:[%s1319_s1 + $0x18] sm:$0xff]  ;;  %v1065_v31 = vld [vmem:[%s1319_s1 + $0xd0] sm:$0xff] }
  0x13   : > { %516 = vmatpush.bf16.msra.mxu3 %v1053_v7  ;;  %v804_v16 = vld [vmem:[%s165_s16] sm:$0xf]  ;;  %v1037_v18 = vld [vmem:[%s165_s16 + $0x4] sm:$0xf]  ;;  %v1050_v27 = vld [vmem:[%s1319_s1 + $0x58] sm:$0xff]  ;;  %v1215_v32 = vpack.c.b16 %v246_v25, %v246_v25  ;;  %v1217_v33 = vpack.c.b16 %v247_v28, %v247_v28  ;;  %s1036_s16 = sshll.u32 %s1323_s13, 3 }
  0x14   : > { %377 = vmatpush.bf16.msra.mxu0 %v1060_v8  ;;  %v1192_v19 = vor.u32 %v1038_v17, %v804_v16  ;;  %v1200_v24 = vor.u32 %v1037_v18, %v806_v20  ;;  %v1041_v35 = vld [vmem:[%s1319_s1 + $0x10] sm:$0xff]  ;;  %v1056_v39 = vld [vmem:[%s1319_s1 + $0x88] sm:$0xff]  ;;  %v1055_v47 = vld [vmem:[%s1319_s1 + $0x80] sm:$0xff]  ;;  %s170_s19 = scalar_lea.vmem %s1321_s3, %s1036_s16 }
  0x15   : > { %391 = vmatpush.bf16.msra.mxu1 %v1068_v9  ;;  %v1049_v36 = vld [vmem:[%s1319_s1 + $0x50] sm:$0xff]  ;;  %v1064_v40 = vld [vmem:[%s1319_s1 + $0xc8] sm:$0xff]  ;;  %v261_v41 = vshll.u32 %v1215_v32, 16  ;;  %v273_v44 = vshll.u32 %v1217_v33, 16  ;;  %v1063_v48 = vld [vmem:[%s1319_s1 + $0xc0] sm:$0xff]  ;;  %v564_v9 = vrot.slane %v1215_v32, 1 }
  0x16   : > { %503 = vmatpush.bf16.msra.mxu2 %v1044_v10  ;;  %v256_v29 = vshll.u32 %v1192_v19, 16  ;;  %v268_v34 = vshll.u32 %v1200_v24, 16  ;;  %v254_v37 = vshrl.u32 %v1192_v19, 16  ;;  %v266_v42 = vshrl.u32 %v1200_v24, 16  ;;  %v1040_v45 = vld [vmem:[%s1319_s1 + $0x8] sm:$0xff]  ;;  %v1039_v53 = vld [vmem:[%s1319_s1] sm:$0xff] }
  0x17   : > { %517 = vmatpush.bf16.msra.mxu3 %v1052_v11  ;;  %v1048_v46 = vld [vmem:[%s1319_s1 + $0x48] sm:$0xff]  ;;  %v263_v50 = vrot.slane %v261_v41, 1  ;;  %v275_v52 = vrot.slane %v273_v44, 1  ;;  %v1078_v54 = vld [vmem:[%s1319_s1 + $0x138] sm:$0xff]  ;;  %v1047_v56 = vld [vmem:[%s1319_s1 + $0x40] sm:$0xff]  ;;  %v563_v8 = vrot.slane %v1192_v19, 1 }
  0x18   : > { %378 = vmatpush.bf16.msra.mxu0 %v1059_v12  ;;  %v258_v38 = vrot.slane %v256_v29, 1  ;;  %v270_v43 = vrot.slane %v268_v34, 1  ;;  %v1086_v55 = vld [vmem:[%s1319_s1 + $0x178] sm:$0xff]  ;;  %v1077_v59 = vld [vmem:[%s1319_s1 + $0x130] sm:$0xff]  ;;  %v1076_v61 = vld [vmem:[%s1319_s1 + $0x128] sm:$0xff]  ;;  %v566_v11 = vrot.slane %v1200_v24, 1 }
  0x19   : > { %392 = vmatpush.bf16.msra.mxu1 %v1067_v13  ;;  %v1085_v60 = vld [vmem:[%s1319_s1 + $0x170] sm:$0xff]  ;;  %v1084_v62 = vld [vmem:[%s1319_s1 + $0x168] sm:$0xff]  ;;  %v1075_v63 = vld [vmem:[%s1319_s1 + $0x120] sm:$0xff]  ;;  %v567_v12 = vrot.slane %v1217_v33, 1  ;;  %v565_v13 = vsel %vm562_vm1, %v563_v8, %v564_v9 }
  0x1a   : > { %504 = vmatpush.bf16.msra.mxu2 %v1043_v14  ;;  %v259_v49 = vor.u32 %v258_v38, %v254_v37  ;;  %v271_v51 = vor.u32 %v270_v43, %v266_v42  ;;  %v1083_v0 = vld [vmem:[%s1319_s1 + $0x160] sm:$0xff]  ;;  %v1074_v1 = vld [vmem:[%s1319_s1 + $0x118] sm:$0xff]  ;;  %v1073_v3 = vld [vmem:[%s1319_s1 + $0x110] sm:$0xff] }
  0x1b   : > { %518 = vmatpush.bf16.msra.mxu3 %v1051_v15  ;;  %v1082_v2 = vld [vmem:[%s1319_s1 + $0x158] sm:$0xff]  ;;  %v1081_v4 = vld [vmem:[%s1319_s1 + $0x150] sm:$0xff]  ;;  %v1072_v5 = vld [vmem:[%s1319_s1 + $0x108] sm:$0xff]  ;;  %v568_v14 = vsel %vm562_vm1, %v566_v11, %v567_v12 }
  0x1c   : > { %379 = vmatpush.bf16.msra.mxu0 %v1058_v22  ;;  %v264_v57 = vsel %vm252_vm0, %v259_v49, %v263_v50  ;;  %v276_v58 = vsel %vm252_vm0, %v271_v51, %v275_v52  ;;  %v1080_v6 = vld [vmem:[%s1319_s1 + $0x148] sm:$0xff]  ;;  %v1071_v7 = vld [vmem:[%s1319_s1 + $0x100] sm:$0xff] }
  0x1d   : > { %393 = vmatpush.bf16.msra.mxu1 %v1066_v23  ;;  %v1079_v10 = vld [vmem:[%s1319_s1 + $0x140] sm:$0xff] }
  0x1e   : > { %505 = vmatpush.bf16.msra.mxu2 %v1042_v26 }
  0x1f   : > { %519 = vmatpush.bf16.msra.mxu3 %v1050_v27 }
  0x20   : > { %380 = vmatpush.bf16.msra.mxu0 %v1057_v30 }
  0x21   : > { %394 = vmatpush.bf16.msra.mxu1 %v1065_v31 }
  0x22   : > { %506 = vmatpush.bf16.msra.mxu2 %v1041_v35  ;;  %v1101_v35 = vld [vmem:[%s1320_s2] ss:$0 sm:$0xff] }
  0x23   : > { %520 = vmatpush.bf16.msra.mxu3 %v1049_v36 }
  0x24   : > { %381 = vmatpush.bf16.msra.mxu0 %v1056_v39 }
  0x25   : > { %395 = vmatpush.bf16.msra.mxu1 %v1064_v40 }
  0x26   : > { %507 = vmatpush.bf16.msra.mxu2 %v1040_v45 }
  0x27   : > { %521 = vmatpush.bf16.msra.mxu3 %v1048_v46 }
  0x28   : > { %382 = vmatpush.bf16.msra.mxu0 %v1055_v47 }
  0x29   : > { %396 = vmatpush.bf16.msra.mxu1 %v1063_v48 }
  0x2a   : > { %508 = vmatpush.bf16.msra.mxu2 %v1039_v53 }
  0x2b   : > { %522 = vmatpush.bf16.msra.mxu3 %v1047_v56  ;;  %383 = vmatmul.bf16.vlgmr.msra.gmra.mxu0 %v264_v57 }
  0x2c   : > { %667 = vmatpush.bf16.msrb.mxu0 %v1078_v54  ;;  %397 = vmatmul.bf16.vlgmr.msra.gmra.mxu1 %v276_v58 }
  0x2d   : > { %681 = vmatpush.bf16.msrb.mxu1 %v1086_v55  ;;  %509 = vmatmul.bf16.vlgmr.msra.gmra.mxu2 %v1192_v19 }
  0x2e   : > { %523 = vmatmul.bf16.vlgmr.msra.gmra.mxu3 %v1200_v24 }
  0x30   : > { %668 = vmatpush.bf16.msrb.mxu0 %v1077_v59 }
  0x31   : > { %682 = vmatpush.bf16.msrb.mxu1 %v1085_v60 }
  0x34   : > { %669 = vmatpush.bf16.msrb.mxu0 %v1076_v61 }
  0x35   : > { %683 = vmatpush.bf16.msrb.mxu1 %v1084_v62 }
  0x38   : > { %670 = vmatpush.bf16.msrb.mxu0 %v1075_v63 }
  0x39   : > { %684 = vmatpush.bf16.msrb.mxu1 %v1083_v0 }
  0x3c   : > { %671 = vmatpush.bf16.msrb.mxu0 %v1074_v1 }
  0x3d   : > { %685 = vmatpush.bf16.msrb.mxu1 %v1082_v2 }
  0x40   : > { %672 = vmatpush.bf16.msrb.mxu0 %v1073_v3 }
  0x41   : > { %686 = vmatpush.bf16.msrb.mxu1 %v1081_v4 }
  0x44   : > { %673 = vmatpush.bf16.msrb.mxu0 %v1072_v5 }
  0x45   : > { %687 = vmatpush.bf16.msrb.mxu1 %v1080_v6 }
  0x48   : > { %674 = vmatpush.bf16.msrb.mxu0 %v1071_v7 }
  0x49   : > { %688 = vmatpush.bf16.msrb.mxu1 %v1079_v10 }
  0x4b   : > { %675 = vmatmul.bf16.vlgmr.msrb.gmra.mxu0 %v565_v13 }
  0x4c   : > { %689 = vmatmul.bf16.vlgmr.msrb.gmra.mxu1 %v568_v14 }
  0xa8   : > { %v384_v15 = vpop.f32.mrf.mxu0 }
  0xa9   : > { %v398_v16 = vpop.f32.mrf.mxu1 }
  0xaa   : > { %v399_v21 = vadd.f32 %v398_v16, %v384_v15 }
  0xb0   : > { %v386_v17 = vpop.f32.mrf.mxu0  ;;  %v510_v18 = vpop.f32.mrf.mxu2 }
  0xb1   : > { %v400_v19 = vpop.f32.mrf.mxu1  ;;  %v524_v20 = vpop.f32.mrf.mxu3  ;;  %v511_v26 = vadd.f32 %v510_v18, %v399_v21 }
  0xb2   : > { %v401_v25 = vadd.f32 %v400_v19, %v386_v17 }
  0xb3   : > { %v525_v30 = vadd.f32 %v524_v20, %v511_v26 }
  0xb8   : > { %v512_v24 = vpop.f32.mrf.mxu2 }
  0xb9   : > { %v513_v27 = vadd.f32 %v512_v24, %v401_v25  ;;  %v526_v29 = vpop.f32.mrf.mxu3 }
  0xbb   : > { %v527_v33 = vadd.f32 %v526_v29, %v513_v27 }
  0xc8   : > { %v676_v22 = vpop.f32.mrf.mxu0 }
  0xc9   : > { %v690_v23 = vpop.f32.mrf.mxu1 }
  0xca   : > { %v691_v28 = vadd.f32 %v690_v23, %v676_v22 }
  0xcc   : > { %v695_v34 = vadd.f32 %v691_v28, %v525_v30 }
  0xce   : > { %v701_v38 = vadd.f32 %v1101_v35, %v695_v34 }
  0xd0   : > { %v678_v31 = vpop.f32.mrf.mxu0 }
  0xd1   : > { %v692_v32 = vpop.f32.mrf.mxu1 }
  0xd2   : > { %v693_v36 = vadd.f32 %v692_v32, %v678_v31 }
  0xd4   : > { %v696_v37 = vadd.f32 %v693_v36, %v527_v33 }
  0xd6   : > { %v702_v39 = vadd.f32 %v1101_v35, %v696_v37 }
  0xd8   : > { %v1090_v40 = vpack.c.bf16 %v702_v39, %v701_v38 }
  0xda   : > { %1091 = vst [vmem:[%s170_s19] sm:$0xff] %v1090_v40  }
  0xdb PF: > { %s13_s12 = sadd.s32 1, %s1108_s12  }
  0xdc   : > { %p10_p4 = scmp.ge.s32.totalorder %s13_s12, 4  }
  0xde   :  { %12 = sbr.rel (!%p10_p4) target bundleno = 1 (0x1), region = 64 }

</bundles_post_ra>
